<compile_context>
chip_gen: v6e
topology: v6e:2x2x1
jax: 0.10.0
libtpu: 0.0.40
codegen_flags: <defaults>
</compile_context>

<pallas_src>
import functools
import typing

import jax
import jax.numpy as jnp
from jax import lax
from jax.experimental import pallas as pl
from jax.experimental.pallas import tpu as pltpu

CONV_KERNEL = 125
CONV_STRIDE = 2


class MixtureMeta(typing.NamedTuple):
    num_models: int
    k_static: int
    conv_feats: int


def _dot_t(a, b):
    """a @ b.T with f32 accumulation; b in native (out, in) layout."""
    return lax.dot_general(a, b, (((1,), (1,)), ((), ())),
                           preferred_element_type=jnp.float32)


def _round_up(x, m):
    return -(-x // m) * m


def _padded_block_bytes(shape, dtype):
    """VMEM bytes of one pipeline buffer for a block of `shape`/`dtype` (tile-padded)."""
    itemsize = jnp.dtype(dtype).itemsize
    shape = tuple(shape)
    if len(shape) < 2:
        shape = (1,) * (2 - len(shape)) + shape
    lead = 1
    for d in shape[:-2]:
        lead *= int(d)
    sub = max(8, 32 // itemsize)            # f32 -> 8 sublanes, bf16 -> 16
    rows = _round_up(int(shape[-2]), sub)
    cols = _round_up(int(shape[-1]), 128)
    return lead * rows * cols * itemsize


def _vmem_limit(blocks, headroom=8 << 20):
    """Double-buffered footprint of all pipeline blocks plus headroom (computed, not guessed)."""
    total = sum(_padded_block_bytes(s, d) for s, d in blocks)
    return int(min(2 * total + headroom, 100 << 20))


# ----------------------------- Pallas kernels ---------------------------------

def _conv1_kernel(p_ref, w_ref, b_ref, o_ref):
    """relu(patches @ conv1_w.T + b) for one model; patches shared across models."""
    y = _dot_t(p_ref[...], w_ref[0]) + b_ref[0]
    o_ref[0] = jnp.maximum(y, 0.0).astype(o_ref.dtype)


def _fused_gcn_kernel(p2_ref, w2c_ref, b2c_ref, xs_ref, w1s_ref, w1c_ref,
                      ahat_ref, w2g_ref, fc_w_ref, fc_b_ref, out_ref):
    """conv2 + gcn1 + gcn2 + fused fc heads for one model (single full-K step)."""
    # conv2 has Lout == 1 -> plain matmul over the flattened conv1 output.
    h2 = jnp.maximum(_dot_t(p2_ref[0], w2c_ref[0]) + b2c_ref[0], 0.0)        # (N, 64) f32
    # gcn1 feature transform X @ W1.T, split into conv / static contributions.
    xw = _dot_t(h2, w1c_ref[0]) + _dot_t(xs_ref[...], w1s_ref[0])            # (N, 64) f32
    a_hat = ahat_ref[...]
    h = jnp.maximum(jnp.dot(a_hat, xw, preferred_element_type=jnp.float32), 0.0)
    # gcn2: tanh(A_hat @ (h @ W2.T))
    h = jnp.tanh(jnp.dot(a_hat, _dot_t(h, w2g_ref[0]),
                         preferred_element_type=jnp.float32))
    # fused heads: columns [0, 5) = mean, [5, 10) = variance (softplus + 1e-6 applied here)
    y = _dot_t(h, fc_w_ref[0]) + fc_b_ref[0]                                 # (N, 10)
    softplus = jnp.maximum(y, 0.0) + jnp.log(1.0 + jnp.exp(-jnp.abs(y)))
    cols = lax.broadcasted_iota(jnp.int32, y.shape, 1)
    out_ref[0] = jnp.where(cols < y.shape[1] // 2, y, softplus + 1e-6)


# ------------------------------ Pallas wrappers --------------------------------

def conv1_all_models(patches, conv1_w, conv1_b):
    """patches: (rows, Cin*K) bf16 shared; conv1_w: (M, 32, Cin*K) bf16 -> (M, rows, 32) bf16."""
    num_models, cout, ck = conv1_w.shape
    rows = patches.shape[0]
    blocks = [((rows, ck), patches.dtype),
              ((1, cout, ck), conv1_w.dtype),
              ((1, 1, cout), conv1_b.dtype),
              ((1, rows, cout), jnp.bfloat16)]
    return pl.pallas_call(
        _conv1_kernel,
        out_shape=jax.ShapeDtypeStruct((num_models, rows, cout), jnp.bfloat16),
        grid=(num_models,),
        in_specs=[
            pl.BlockSpec((rows, ck), lambda m: (0, 0)),
            pl.BlockSpec((1, cout, ck), lambda m: (m, 0, 0)),
            pl.BlockSpec((1, 1, cout), lambda m: (m, 0, 0)),
        ],
        out_specs=pl.BlockSpec((1, rows, cout), lambda m: (m, 0, 0)),
        compiler_params=pltpu.CompilerParams(
            dimension_semantics=("parallel",),
            vmem_limit_bytes=_vmem_limit(blocks)),
    )(patches, conv1_w, conv1_b)


def fused_gcn_heads(patches2, xs, a_hat, P):
    """patches2: (M, N, 4000) bf16; xs: (N, 9987) bf16; a_hat: (N, N) f32 -> (M, N, 10) f32."""
    num_models, N, _ = patches2.shape
    n_heads = P["fc_w"].shape[1]            # 10 (mean ++ variance)

    def per_model(arr):
        blk = (1,) + tuple(arr.shape[1:])
        return pl.BlockSpec(blk, lambda m: (m,) + (0,) * (len(blk) - 1))

    def shared(arr):
        return pl.BlockSpec(tuple(arr.shape), lambda m: (0,) * arr.ndim)

    args = (patches2, P["conv2_w"], P["conv2_b"], xs, P["w1_static"],
            P["w1_conv"], a_hat, P["w2"], P["fc_w"], P["fc_b"])
    in_specs = [per_model(patches2), per_model(P["conv2_w"]), per_model(P["conv2_b"]),
                shared(xs), per_model(P["w1_static"]), per_model(P["w1_conv"]),
                shared(a_hat), per_model(P["w2"]), per_model(P["fc_w"]),
                per_model(P["fc_b"])]
    blocks = [((1,) + tuple(a.shape[1:]), a.dtype) if a.ndim == 3 else (a.shape, a.dtype)
              for a in args] + [((1, N, n_heads), jnp.float32)]

    return pl.pallas_call(
        _fused_gcn_kernel,
        out_shape=jax.ShapeDtypeStruct((num_models, N, n_heads), jnp.float32),
        grid=(num_models,),
        in_specs=in_specs,
        out_specs=pl.BlockSpec((1, N, n_heads), lambda m: (m, 0, 0)),
        compiler_params=pltpu.CompilerParams(
            dimension_semantics=("parallel",),
            vmem_limit_bytes=_vmem_limit(blocks)),
    )(*args)


# ------------------------------ Model glue ------------------------------------

def conv1_im2col(x1_ts, kernel=CONV_KERNEL, stride=CONV_STRIDE):
    """PyTorch-semantics Conv1d im2col (no padding): (N, Cin, L) -> (N*Lout, Cin*K)."""
    N, Cin, L = x1_ts.shape
    Lout = (L - kernel) // stride + 1
    idx = stride * jnp.arange(Lout)[:, None] + jnp.arange(kernel)[None, :]   # (Lout, K)
    patches = x1_ts[:, :, idx]                                               # (N, Cin, Lout, K)
    patches = jnp.transpose(patches, (0, 2, 1, 3)).reshape(N * Lout, Cin * kernel)
    return patches, Lout


def gcn_norm_dense(edge_index, edge_weight, num_nodes):
    """Dense D^-1/2 (A + I) D^-1/2 matching torch_geometric gcn_norm (fill_value=1).

    Assumes the graph has no preexisting self-loops (torch_geometric uses
    add_remaining_self_loops, so preexisting self-loops would differ)."""
    src, dst = edge_index[0], edge_index[1]
    A = jnp.zeros((num_nodes, num_nodes), jnp.float32).at[dst, src].add(edge_weight)
    A = A + jnp.eye(num_nodes, dtype=jnp.float32)
    deg = A.sum(axis=1)
    dinv = jnp.where(deg > 0, 1.0 / jnp.sqrt(deg), 0.0)
    return dinv[:, None] * A * dinv[None, :]


def mixture_combine(means, variances, scheme):
    """means/variances: (num_models, N, 5) -> (mean, variance), each (N, 5)."""
    if scheme == "uniform":
        weights = jnp.full_like(variances, 1.0 / means.shape[0])
    elif scheme == "weighted":
        weights = jax.nn.softmax(-variances, axis=0)
    else:
        raise ValueError(f"Unknown weighting scheme: {scheme}")
    mean = jnp.sum(weights * means, axis=0)
    variance = jnp.sum(weights * (variances + means * means), axis=0) - mean * mean
    return mean, variance


def prepare_mixture_params(all_params):
    """Stack / permute / split / cast all model weights ONCE (outside the hot path)."""
    num_models = len(all_params)
    in_gcn1 = all_params[0]["gcn1_w"].shape[1]       # 10051
    conv_feats = all_params[0]["conv2_w"].shape[0]   # 64 (conv2 out * Lout2 == 1)
    k_static = in_gcn1 - conv_feats

    def stk(name, fn=lambda a: a, dtype=jnp.float32):
        return jnp.stack([fn(jnp.asarray(p[name], jnp.float32)) for p in all_params],
                         axis=0).astype(dtype)

    def cat_heads(p, names):
        return jnp.concatenate([jnp.asarray(p[n], jnp.float32) for n in names], axis=0)

    prepared = {
        # conv1 weights flattened to (cin, k) column order matching the im2col patches
        "conv1_w": stk("conv1_w", lambda w: w.reshape(w.shape[0], -1), jnp.bfloat16),
        "conv1_b": stk("conv1_b", lambda b: b.reshape(1, -1)),
        # conv2 weights permuted to (lout1, cout1) column order -> h1 needs NO transpose
        "conv2_w": stk("conv2_w",
                       lambda w: jnp.transpose(w, (0, 2, 1)).reshape(w.shape[0], -1),
                       jnp.bfloat16),
        "conv2_b": stk("conv2_b", lambda b: b.reshape(1, -1)),
        "w1_conv": stk("gcn1_w", lambda w: w[:, :conv_feats]),              # (M, 64, 64)
        "w1_static": stk("gcn1_w", lambda w: w[:, conv_feats:], jnp.bfloat16),  # (M, 64, 9987)
        "w2": stk("gcn2_w"),                                                # (M, 64, 64)
        # fused mean/variance head: (M, 10, 64) weight, (M, 1, 10) bias
        "fc_w": jnp.stack([cat_heads(p, ("fc_mean_w", "fc_var_w")) for p in all_params]),
        "fc_b": jnp.stack([cat_heads(p, ("fc_mean_b", "fc_var_b")).reshape(1, -1)
                           for p in all_params]),
    }
    meta = MixtureMeta(num_models=num_models, k_static=k_static, conv_feats=conv_feats)
    return prepared, meta


@functools.partial(jax.jit, static_argnames=("meta", "scheme"))
def mixture_forward(prepared, x1_ts, x2_static, edge_index, edge_weight, *,
                    meta, scheme="uniform"):
    N = x1_ts.shape[0]
    assert x2_static.shape[1] == meta.k_static
    a_hat = gcn_norm_dense(edge_index, edge_weight, N)

    # conv1 for all models in one Pallas call
    patches1, lout1 = conv1_im2col(x1_ts.astype(jnp.float32))
    # TODO(synk): the fused kernel assumes conv2's Lout == 1 (true for L = 373 as in the spec).
    assert (lout1 - CONV_KERNEL) // CONV_STRIDE + 1 == 1
    h1 = conv1_all_models(patches1.astype(jnp.bfloat16),
                          prepared["conv1_w"], prepared["conv1_b"])   # (M, N*125, 32) bf16

    # Pure row-major reshape to (M, N, lout1*cout1); conv2_w was permuted to match at prep
    # time, so no transpose / relayout of the activation is needed between the two kernels.
    M = meta.num_models
    c1_out = prepared["conv1_w"].shape[1]
    patches2 = h1.reshape(M, N, lout1 * c1_out)                        # (M, N, 4000) bf16

    out = fused_gcn_heads(patches2, x2_static.astype(jnp.bfloat16), a_hat, prepared)
    half = out.shape[-1] // 2
    means, variances = out[..., :half], out[..., half:]
    return mixture_combine(means, variances, scheme)


def init_model_params(key):
    ks = jax.random.split(key, 10)

    def w(k, shape, fan_in):
        return jax.random.normal(k, shape, jnp.float32) / jnp.sqrt(float(fan_in))

    return {
        "conv1_w": w(ks[0], (32, 3, CONV_KERNEL), 3 * CONV_KERNEL),
        "conv1_b": w(ks[1], (32,), 32),
        "conv2_w": w(ks[2], (64, 32, CONV_KERNEL), 32 * CONV_KERNEL),
        "conv2_b": w(ks[3], (64,), 64),
        "gcn1_w": w(ks[4], (64, 10051), 10051),
        "gcn2_w": w(ks[5], (64, 64), 64),
        "fc_mean_w": w(ks[6], (5, 64), 64),
        "fc_mean_b": w(ks[7], (5,), 64),
        "fc_var_w": w(ks[8], (5, 64), 64),
        "fc_var_b": w(ks[9], (5,), 64),
    }


if __name__ == "__main__":
    key = jax.random.PRNGKey(0)
    k_in, k_static, k_ew, k_models = jax.random.split(key, 4)

    N_NODES = 8            # graph nodes == batch rows
    L = 373                # conv1 -> 125, conv2 -> 1  => flatten gives 64 features
    STATIC = 10051 - 64    # so concat matches GCNConv in_channels = 10051
    NUM_MODELS = 2

    x1_ts = jax.random.normal(k_in, (N_NODES, 3, L), jnp.float32)
    x2_static = jax.random.normal(k_static, (N_NODES, STATIC), jnp.float32)

    # simple bidirectional ring graph, no preexisting self-loops
    src = jnp.arange(N_NODES, dtype=jnp.int32)
    dst = (src + 1) % N_NODES
    edge_index = jnp.stack(
        [jnp.concatenate([src, dst]), jnp.concatenate([dst, src])], axis=0)
    edge_weight = jax.random.uniform(k_ew, (edge_index.shape[1],), jnp.float32, 0.5, 1.5)

    all_params = [init_model_params(k) for k in jax.random.split(k_models, NUM_MODELS)]
    prepared, meta = prepare_mixture_params(all_params)

    mean, variance = mixture_forward(prepared, x1_ts, x2_static, edge_index, edge_weight,
                                     meta=meta, scheme="uniform")
    jax.block_until_ready((mean, variance))
    assert mean.shape == (N_NODES, 5) and variance.shape == (N_NODES, 5)
    assert bool(jnp.all(jnp.isfinite(mean))) and bool(jnp.all(variance > 0))
    print("KERNEL_OK")
</pallas_src>

<mosaic_0001>
module attributes {stable_mosaic.version = 11 : i64} {
  func.func private @main(%arg0: i32) attributes {dimension_semantics = [#tpu.dimension_semantics<core_parallel>], iteration_bounds = array<i64: 2>, tpu.core_type = #tpu.core_type<sc_scalar_subcore>, window_params = []} {
    return
  }
}

module attributes {stable_mosaic.version = 11 : i64} {
  func.func private @main(%arg0: i32) attributes {dimension_semantics = [#tpu.dimension_semantics<core_parallel>], iteration_bounds = array<i64: 2>, tpu.core_type = #tpu.core_type<sc_scalar_subcore>, window_params = []} {
    return
  }
}

module attributes {stable_mosaic.version = 11 : i64} {
  func.func @_conv1_kernel(%arg0: i32, %arg1: memref<1000x375xbf16, #tpu.memory_space<vmem>>, %arg2: memref<1x32x375xbf16, #tpu.memory_space<vmem>>, %arg3: memref<1x1x32xf32, #tpu.memory_space<vmem>>, %arg4: memref<1x1000x32xbf16, #tpu.memory_space<vmem>>) attributes {dimension_semantics = [#tpu.dimension_semantics<parallel>], iteration_bounds = array<i64: 2>, scalar_prefetch = 0 : i64, scratch_operands = 0 : i64, tpu.core_type = #tpu.core_type<tc>, window_params = [{pipeline_mode = #tpu.pipeline_mode<synchronous>, transform_indices = @transform_0, window_bounds = array<i64: 1000, 375>}, {transform_indices = @transform_1, window_bounds = array<i64: 1, 32, 375>}, {transform_indices = @transform_2, window_bounds = array<i64: 1, 1, 32>}, {transform_indices = @transform_3, window_bounds = array<i64: 1, 1000, 32>}]} {
    %c0 = arith.constant 0 : index
    %c0_0 = arith.constant 0 : index
    %0 = vector.load %arg1[%c0, %c0_0] : memref<1000x375xbf16, #tpu.memory_space<vmem>>, vector<1000x375xbf16>
    %c0_1 = arith.constant 0 : index
    %c0_2 = arith.constant 0 : index
    %c0_3 = arith.constant 0 : index
    %1 = vector.load %arg2[%c0_1, %c0_2, %c0_3] : memref<1x32x375xbf16, #tpu.memory_space<vmem>>, vector<1x32x375xbf16>
    %2 = vector.shape_cast %1 : vector<1x32x375xbf16> to vector<32x375xbf16>
    %cst = arith.constant dense<0.000000e+00> : vector<1000x32xf32>
    %3 = tpu.matmul %0, %2, %cst {dimension_numbers = #tpu.dot_dimension_numbers<[1], [1], [0], [0], [0, 0, 1, 0], [], []>} : vector<1000x375xbf16>, vector<32x375xbf16>, vector<1000x32xf32> -> vector<1000x32xf32>
    %c0_4 = arith.constant 0 : index
    %c0_5 = arith.constant 0 : index
    %c0_6 = arith.constant 0 : index
    %4 = vector.load %arg3[%c0_4, %c0_5, %c0_6] : memref<1x1x32xf32, #tpu.memory_space<vmem>>, vector<1x1x32xf32>
    %5 = vector.shape_cast %4 : vector<1x1x32xf32> to vector<1x32xf32>
    %6 = vector.broadcast %5 : vector<1x32xf32> to vector<1000x32xf32>
    %7 = arith.addf %3, %6 : vector<1000x32xf32>
    %cst_7 = arith.constant 0.000000e+00 : f32
    %8 = vector.broadcast %cst_7 : f32 to vector<1000x32xf32>
    %9 = arith.maximumf %7, %8 : vector<1000x32xf32>
    %10 = arith.truncf %9 : vector<1000x32xf32> to vector<1000x32xbf16>
    %c0_8 = arith.constant 0 : index
    %c0_9 = arith.constant 0 : index
    %c0_10 = arith.constant 0 : index
    %11 = vector.load %arg4[%c0_8, %c0_9, %c0_10] : memref<1x1000x32xbf16, #tpu.memory_space<vmem>>, vector<1x1000x32xbf16>
    %12 = vector.shape_cast %11 : vector<1x1000x32xbf16> to vector<1000x32xbf16>
    %13 = vector.shape_cast %10 : vector<1000x32xbf16> to vector<1x1000x32xbf16>
    tpu.vector_store %arg4[%c0_8, %c0_9, %c0_10], %13 {strides = array<i32>} : memref<1x1000x32xbf16, #tpu.memory_space<vmem>>, vector<1x1000x32xbf16>,
    return
  }
  func.func @transform_0(%arg0: i32) -> (i32, i32) {
    %c0_i32 = arith.constant 0 : i32
    %c0_i32_0 = arith.constant 0 : i32
    %c0_i32_1 = arith.constant 0 : i32
    return %c0_i32, %c0_i32_0 : i32, i32
  }
  func.func @transform_1(%arg0: i32) -> (i32, i32, i32) {
    %c0_i32 = arith.constant 0 : i32
    %c0_i32_0 = arith.constant 0 : i32
    %c0_i32_1 = arith.constant 0 : i32
    return %arg0, %c0_i32, %c0_i32_0 : i32, i32, i32
  }
  func.func @transform_2(%arg0: i32) -> (i32, i32, i32) {
    %c0_i32 = arith.constant 0 : i32
    %c0_i32_0 = arith.constant 0 : i32
    %c0_i32_1 = arith.constant 0 : i32
    return %arg0, %c0_i32, %c0_i32_0 : i32, i32, i32
  }
  func.func @transform_3(%arg0: i32) -> (i32, i32, i32) {
    %c0_i32 = arith.constant 0 : i32
    %c0_i32_0 = arith.constant 0 : i32
    %c0_i32_1 = arith.constant 0 : i32
    return %arg0, %c0_i32, %c0_i32_0 : i32, i32, i32
  }
}

module attributes {stable_mosaic.version = 11 : i64} {
  func.func @_fused_gcn_kernel(%arg0: i32, %arg1: memref<1x8x4000xbf16, #tpu.memory_space<vmem>>, %arg2: memref<1x64x4000xbf16, #tpu.memory_space<vmem>>, %arg3: memref<1x1x64xf32, #tpu.memory_space<vmem>>, %arg4: memref<8x9987xbf16, #tpu.memory_space<vmem>>, %arg5: memref<1x64x9987xbf16, #tpu.memory_space<vmem>>, %arg6: memref<1x64x64xf32, #tpu.memory_space<vmem>>, %arg7: memref<8x8xf32, #tpu.memory_space<vmem>>, %arg8: memref<1x64x64xf32, #tpu.memory_space<vmem>>, %arg9: memref<1x10x64xf32, #tpu.memory_space<vmem>>, %arg10: memref<1x1x10xf32, #tpu.memory_space<vmem>>, %arg11: memref<1x8x10xf32, #tpu.memory_space<vmem>>) attributes {dimension_semantics = [#tpu.dimension_semantics<parallel>], iteration_bounds = array<i64: 2>, scalar_prefetch = 0 : i64, scratch_operands = 0 : i64, tpu.core_type = #tpu.core_type<tc>, window_params = [{transform_indices = @transform_0, window_bounds = array<i64: 1, 8, 4000>}, {transform_indices = @transform_1, window_bounds = array<i64: 1, 64, 4000>}, {transform_indices = @transform_2, window_bounds = array<i64: 1, 1, 64>}, {pipeline_mode = #tpu.pipeline_mode<synchronous>, transform_indices = @transform_3, window_bounds = array<i64: 8, 9987>}, {transform_indices = @transform_4, window_bounds = array<i64: 1, 64, 9987>}, {transform_indices = @transform_5, window_bounds = array<i64: 1, 64, 64>}, {pipeline_mode = #tpu.pipeline_mode<synchronous>, transform_indices = @transform_6, window_bounds = array<i64: 8, 8>}, {transform_indices = @transform_7, window_bounds = array<i64: 1, 64, 64>}, {transform_indices = @transform_8, window_bounds = array<i64: 1, 10, 64>}, {transform_indices = @transform_9, window_bounds = array<i64: 1, 1, 10>}, {transform_indices = @transform_10, window_bounds = array<i64: 1, 8, 10>}]} {
    %c0 = arith.constant 0 : index
    %c0_0 = arith.constant 0 : index
    %c0_1 = arith.constant 0 : index
    %0 = vector.load %arg1[%c0, %c0_0, %c0_1] : memref<1x8x4000xbf16, #tpu.memory_space<vmem>>, vector<1x8x4000xbf16>
    %1 = vector.shape_cast %0 : vector<1x8x4000xbf16> to vector<8x4000xbf16>
    %c0_2 = arith.constant 0 : index
    %c0_3 = arith.constant 0 : index
    %c0_4 = arith.constant 0 : index
    %2 = vector.load %arg2[%c0_2, %c0_3, %c0_4] : memref<1x64x4000xbf16, #tpu.memory_space<vmem>>, vector<1x64x4000xbf16>
    %3 = vector.shape_cast %2 : vector<1x64x4000xbf16> to vector<64x4000xbf16>
    %cst = arith.constant dense<0.000000e+00> : vector<8x64xf32>
    %4 = tpu.matmul %1, %3, %cst {dimension_numbers = #tpu.dot_dimension_numbers<[1], [1], [0], [0], [0, 0, 1, 0], [], []>} : vector<8x4000xbf16>, vector<64x4000xbf16>, vector<8x64xf32> -> vector<8x64xf32>
    %c0_5 = arith.constant 0 : index
    %c0_6 = arith.constant 0 : index
    %c0_7 = arith.constant 0 : index
    %5 = vector.load %arg3[%c0_5, %c0_6, %c0_7] : memref<1x1x64xf32, #tpu.memory_space<vmem>>, vector<1x1x64xf32>
    %6 = vector.shape_cast %5 : vector<1x1x64xf32> to vector<1x64xf32>
    %7 = vector.broadcast %6 : vector<1x64xf32> to vector<8x64xf32>
    %8 = arith.addf %4, %7 : vector<8x64xf32>
    %cst_8 = arith.constant 0.000000e+00 : f32
    %9 = vector.broadcast %cst_8 : f32 to vector<8x64xf32>
    %10 = arith.maximumf %8, %9 : vector<8x64xf32>
    %c0_9 = arith.constant 0 : index
    %c0_10 = arith.constant 0 : index
    %c0_11 = arith.constant 0 : index
    %11 = vector.load %arg6[%c0_9, %c0_10, %c0_11] : memref<1x64x64xf32, #tpu.memory_space<vmem>>, vector<1x64x64xf32>
    %12 = vector.shape_cast %11 : vector<1x64x64xf32> to vector<64x64xf32>
    %cst_12 = arith.constant dense<0.000000e+00> : vector<8x64xf32>
    %13 = tpu.matmul %10, %12, %cst_12 {dimension_numbers = #tpu.dot_dimension_numbers<[1], [1], [0], [0], [0, 0, 1, 0], [], []>} : vector<8x64xf32>, vector<64x64xf32>, vector<8x64xf32> -> vector<8x64xf32>
    %c0_13 = arith.constant 0 : index
    %c0_14 = arith.constant 0 : index
    %14 = vector.load %arg4[%c0_13, %c0_14] : memref<8x9987xbf16, #tpu.memory_space<vmem>>, vector<8x9987xbf16>
    %c0_15 = arith.constant 0 : index
    %c0_16 = arith.constant 0 : index
    %c0_17 = arith.constant 0 : index
    %15 = vector.load %arg5[%c0_15, %c0_16, %c0_17] : memref<1x64x9987xbf16, #tpu.memory_space<vmem>>, vector<1x64x9987xbf16>
    %16 = vector.shape_cast %15 : vector<1x64x9987xbf16> to vector<64x9987xbf16>
    %cst_18 = arith.constant dense<0.000000e+00> : vector<8x64xf32>
    %17 = tpu.matmul %14, %16, %cst_18 {dimension_numbers = #tpu.dot_dimension_numbers<[1], [1], [0], [0], [0, 0, 1, 0], [], []>} : vector<8x9987xbf16>, vector<64x9987xbf16>, vector<8x64xf32> -> vector<8x64xf32>
    %18 = arith.addf %13, %17 : vector<8x64xf32>
    %c0_19 = arith.constant 0 : index
    %c0_20 = arith.constant 0 : index
    %19 = vector.load %arg7[%c0_19, %c0_20] : memref<8x8xf32, #tpu.memory_space<vmem>>, vector<8x8xf32>
    %cst_21 = arith.constant dense<0.000000e+00> : vector<8x64xf32>
    %20 = tpu.matmul %19, %18, %cst_21 {dimension_numbers = #tpu.dot_dimension_numbers<[1], [0], [0], [1], [0, 0, 1, 1], [], []>} : vector<8x8xf32>, vector<8x64xf32>, vector<8x64xf32> -> vector<8x64xf32>
    %cst_22 = arith.constant 0.000000e+00 : f32
    %21 = vector.broadcast %cst_22 : f32 to vector<8x64xf32>
    %22 = arith.maximumf %20, %21 : vector<8x64xf32>
    %c0_23 = arith.constant 0 : index
    %c0_24 = arith.constant 0 : index
    %c0_25 = arith.constant 0 : index
    %23 = vector.load %arg8[%c0_23, %c0_24, %c0_25] : memref<1x64x64xf32, #tpu.memory_space<vmem>>, vector<1x64x64xf32>
    %24 = vector.shape_cast %23 : vector<1x64x64xf32> to vector<64x64xf32>
    %cst_26 = arith.constant dense<0.000000e+00> : vector<8x64xf32>
    %25 = tpu.matmul %22, %24, %cst_26 {dimension_numbers = #tpu.dot_dimension_numbers<[1], [1], [0], [0], [0, 0, 1, 0], [], []>} : vector<8x64xf32>, vector<64x64xf32>, vector<8x64xf32> -> vector<8x64xf32>
    %cst_27 = arith.constant dense<0.000000e+00> : vector<8x64xf32>
    %26 = tpu.matmul %19, %25, %cst_27 {dimension_numbers = #tpu.dot_dimension_numbers<[1], [0], [0], [1], [0, 0, 1, 1], [], []>} : vector<8x8xf32>, vector<8x64xf32>, vector<8x64xf32> -> vector<8x64xf32>
    %27 = math.tanh %26 : vector<8x64xf32>
    %c0_28 = arith.constant 0 : index
    %c0_29 = arith.constant 0 : index
    %c0_30 = arith.constant 0 : index
    %28 = vector.load %arg9[%c0_28, %c0_29, %c0_30] : memref<1x10x64xf32, #tpu.memory_space<vmem>>, vector<1x10x64xf32>
    %29 = vector.shape_cast %28 : vector<1x10x64xf32> to vector<10x64xf32>
    %cst_31 = arith.constant dense<0.000000e+00> : vector<8x10xf32>
    %30 = tpu.matmul %27, %29, %cst_31 {dimension_numbers = #tpu.dot_dimension_numbers<[1], [1], [0], [0], [0, 0, 1, 0], [], []>} : vector<8x64xf32>, vector<10x64xf32>, vector<8x10xf32> -> vector<8x10xf32>
    %c0_32 = arith.constant 0 : index
    %c0_33 = arith.constant 0 : index
    %c0_34 = arith.constant 0 : index
    %31 = vector.load %arg10[%c0_32, %c0_33, %c0_34] : memref<1x1x10xf32, #tpu.memory_space<vmem>>, vector<1x1x10xf32>
    %32 = vector.shape_cast %31 : vector<1x1x10xf32> to vector<1x10xf32>
    %33 = vector.broadcast %32 : vector<1x10xf32> to vector<8x10xf32>
    %34 = arith.addf %30, %33 : vector<8x10xf32>
    %cst_35 = arith.constant 0.000000e+00 : f32
    %35 = vector.broadcast %cst_35 : f32 to vector<8x10xf32>
    %36 = arith.maximumf %34, %35 : vector<8x10xf32>
    %37 = math.absf %34 : vector<8x10xf32>
    %cst_36 = arith.constant 0.000000e+00 : f32
    %38 = vector.broadcast %cst_36 : f32 to vector<8x10xf32>
    %39 = arith.subf %38, %37 : vector<8x10xf32>
    %40 = math.exp %39 : vector<8x10xf32>
    %cst_37 = arith.constant 1.000000e+00 : f32
    %41 = vector.broadcast %cst_37 : f32 to vector<8x10xf32>
    %42 = arith.addf %41, %40 : vector<8x10xf32>
    %43 = math.log %42 : vector<8x10xf32>
    %44 = arith.addf %36, %43 : vector<8x10xf32>
    %45 = tpu.iota {dimensions = array<i32: 1>} : vector<8x10xi32>
    %c5_i32 = arith.constant 5 : i32
    %46 = vector.broadcast %c5_i32 : i32 to vector<8x10xi32>
    %47 = arith.cmpi slt, %45, %46 : vector<8x10xi32>
    %cst_38 = arith.constant 9.99999997E-7 : f32
    %48 = vector.broadcast %cst_38 : f32 to vector<8x10xf32>
    %49 = arith.addf %44, %48 : vector<8x10xf32>
    %50 = arith.select %47, %34, %49 : vector<8x10xi1>, vector<8x10xf32>
    %c0_39 = arith.constant 0 : index
    %c0_40 = arith.constant 0 : index
    %c0_41 = arith.constant 0 : index
    %51 = vector.load %arg11[%c0_39, %c0_40, %c0_41] : memref<1x8x10xf32, #tpu.memory_space<vmem>>, vector<1x8x10xf32>
    %52 = vector.shape_cast %51 : vector<1x8x10xf32> to vector<8x10xf32>
    %53 = vector.shape_cast %50 : vector<8x10xf32> to vector<1x8x10xf32>
    tpu.vector_store %arg11[%c0_39, %c0_40, %c0_41], %53 {strides = array<i32>} : memref<1x8x10xf32, #tpu.memory_space<vmem>>, vector<1x8x10xf32>,
    return
  }
  func.func @transform_0(%arg0: i32) -> (i32, i32, i32) {
    %c0_i32 = arith.constant 0 : i32
    %c0_i32_0 = arith.constant 0 : i32
    %c0_i32_1 = arith.constant 0 : i32
    return %arg0, %c0_i32, %c0_i32_0 : i32, i32, i32
  }
  func.func @transform_1(%arg0: i32) -> (i32, i32, i32) {
    %c0_i32 = arith.constant 0 : i32
    %c0_i32_0 = arith.constant 0 : i32
    %c0_i32_1 = arith.constant 0 : i32
    return %arg0, %c0_i32, %c0_i32_0 : i32, i32, i32
  }
  func.func @transform_2(%arg0: i32) -> (i32, i32, i32) {
    %c0_i32 = arith.constant 0 : i32
    %c0_i32_0 = arith.constant 0 : i32
    %c0_i32_1 = arith.constant 0 : i32
    return %arg0, %c0_i32, %c0_i32_0 : i32, i32, i32
  }
  func.func @transform_3(%arg0: i32) -> (i32, i32) {
    %c0_i32 = arith.constant 0 : i32
    %c0_i32_0 = arith.constant 0 : i32
    %c0_i32_1 = arith.constant 0 : i32
    return %c0_i32, %c0_i32_0 : i32, i32
  }
  func.func @transform_4(%arg0: i32) -> (i32, i32, i32) {
    %c0_i32 = arith.constant 0 : i32
    %c0_i32_0 = arith.constant 0 : i32
    %c0_i32_1 = arith.constant 0 : i32
    return %arg0, %c0_i32, %c0_i32_0 : i32, i32, i32
  }
  func.func @transform_5(%arg0: i32) -> (i32, i32, i32) {
    %c0_i32 = arith.constant 0 : i32
    %c0_i32_0 = arith.constant 0 : i32
    %c0_i32_1 = arith.constant 0 : i32
    return %arg0, %c0_i32, %c0_i32_0 : i32, i32, i32
  }
  func.func @transform_6(%arg0: i32) -> (i32, i32) {
    %c0_i32 = arith.constant 0 : i32
    %c0_i32_0 = arith.constant 0 : i32
    %c0_i32_1 = arith.constant 0 : i32
    return %c0_i32, %c0_i32_0 : i32, i32
  }
  func.func @transform_7(%arg0: i32) -> (i32, i32, i32) {
    %c0_i32 = arith.constant 0 : i32
    %c0_i32_0 = arith.constant 0 : i32
    %c0_i32_1 = arith.constant 0 : i32
    return %arg0, %c0_i32, %c0_i32_0 : i32, i32, i32
  }
  func.func @transform_8(%arg0: i32) -> (i32, i32, i32) {
    %c0_i32 = arith.constant 0 : i32
    %c0_i32_0 = arith.constant 0 : i32
    %c0_i32_1 = arith.constant 0 : i32
    return %arg0, %c0_i32, %c0_i32_0 : i32, i32, i32
  }
  func.func @transform_9(%arg0: i32) -> (i32, i32, i32) {
    %c0_i32 = arith.constant 0 : i32
    %c0_i32_0 = arith.constant 0 : i32
    %c0_i32_1 = arith.constant 0 : i32
    return %arg0, %c0_i32, %c0_i32_0 : i32, i32, i32
  }
  func.func @transform_10(%arg0: i32) -> (i32, i32, i32) {
    %c0_i32 = arith.constant 0 : i32
    %c0_i32_0 = arith.constant 0 : i32
    %c0_i32_1 = arith.constant 0 : i32
    return %arg0, %c0_i32, %c0_i32_0 : i32, i32, i32
  }
}

</mosaic_0001>

<bundles_post_ra>
// kernel: mixture_forward.2
= control target key start
LH: loop header
LB: loop body
LE: loop exit
PB: predicated region body
PF: predicated region fallthrough
CT: control target
= control target key end

     0   :  { %s4647_s12 = smov 0   ;;  %s5817_s0 = inlined_call_operand.vmem [shape: bf16[1000,375], index: 0, kind: input, shape index: {}]   ;;  %s5818_s1 = inlined_call_operand.vmem [shape: bf16[2,32,375], index: 1, kind: input, shape index: {}]   ;;  %s5819_s2 = inlined_call_operand.vmem [shape: f32[2,1,32], index: 2, kind: input, shape index: {}]   ;;  %s5820_s3 = inlined_call_operand.vmem [shape: bf16[2,1000,32], index: 3, kind: output, shape index: {}]  }
   0x1 LB: > { %s3505_s13 = sadd.s32 4294967295, %s4623_s12   ;;  %p3509_p0 = scmp.ge.s32.totalorder %s4623_s12, 1  ;;  %s4623_s12 = sphi %s4647_s12, %s13_s12  }
   0x2   : > { %p145_p1 = scmp.lt.s32.totalorder %s4623_s12, 3 }
   0x4   : > { %p146_p2 = pnand %p3509_p0, %p145_p1 }
   0x5   : > { %p172_p3 = scmp.lt.s32.totalorder (!%p146_p2), %s3505_s13, 1 }
   0x6   : > { %149 = sbr.rel (%p146_p2) target bundleno = 730 (0x2da), region = 32 }
   0xb   : > { %v4625_v0 = vmov 0.0   ;;  %v4366_v1 = vld [vmem:[%s5817_s0 + $0x4] ss:$12 sps:$4 sm:$0xff]   ;;  %vm4626_vm0 = vmmov 0   ;;  %s5822_s13 = smov (!%p172_p3, %s3505_s13), 1  ;;  %vm1421_vm1 = vcmask 973824  }
   0xc   : > { %4088 = vmatprep.subr.bf16.mxu1 %v4625_v0  ;;  %4092 = vmatprep.mubr.msk.bf16.mxu1 %vm4626_vm0, %v4625_v0  ;;  %s4344_s16 = smul.u32 48, %s5822_s13  ;;  %v4364_v10 = vld [vmem:[%s5817_s0] ss:$12 sps:$4 sm:$0xff]   ;;  %v4368_v11 = vld [vmem:[%s5817_s0 + $0x1c] ss:$12 sps:$4 sm:$0xff]   ;;  %vm3315_vm2 = vcmask 257024  }
   0xd   : > { %1649 = vmatprep.mubr.bf16.mxu0 %v4366_v1  ;;  %v4367_v12 = vld [vmem:[%s5817_s0 + $0x8] ss:$12 sps:$4 sm:$0xff]   ;;  %v4370_v13 = vld [vmem:[%s5817_s0 + $0x18] ss:$12 sps:$4 sm:$0xff]   ;;  %v4371_v15 = vld [vmem:[%s5817_s0 + $0x20] ss:$12 sps:$4 sm:$0xff]  }
   0xe   : > { %s176_s19 = scalar_lea.vmem %s5818_s1, %s4344_s16  ;;  %v4372_v14 = vld [vmem:[%s5817_s0 + $0x34] ss:$12 sps:$4 sm:$0xff]   ;;  %v4374_v16 = vld [vmem:[%s5817_s0 + $0x30] ss:$12 sps:$4 sm:$0xff]   ;;  %v4376_v17 = vld [vmem:[%s5817_s0 + $0x4c] ss:$12 sps:$4 sm:$0xff]   ;;  %s4962_s16 = scalar_lea.vmem %s5819_s2, %s5822_s13 }
   0xf   : > { %v4356_v2 = vld [vmem:[%s176_s19 + $0x1c] ss:$12 sps:$4 sm:$0xff]   ;;  %v4358_v3 = vld [vmem:[%s176_s19 + $0x18] ss:$12 sps:$4 sm:$0xff]   ;;  %v4359_v4 = vld [vmem:[%s176_s19 + $0x20] ss:$12 sps:$4 sm:$0xff]  }
  0x10   : > { %1629 = vmatprep.subr.bf16.mxu0 %v4356_v2  ;;  %v4360_v5 = vld [vmem:[%s176_s19 + $0x4] ss:$12 sps:$4 sm:$0xff]   ;;  %v1615_v6 = vsel %vm1421_vm1, %v4359_v4, 0  ;;  %v4363_v7 = vld [vmem:[%s176_s19 + $0x8] ss:$12 sps:$4 sm:$0xff]   ;;  %s4345_s23 = smul.u32 500, %s5822_s13 }
  0x11   : > { %1630 = vmatpush1.bf16.xpose.msra.mxu0 %v4358_v3  ;;  %4089 = vmatpush3.bf16.xpose.msra.mxu1 %v1615_v6  ;;  %v4362_v8 = vld [vmem:[%s176_s19] ss:$12 sps:$4 sm:$0xff]   ;;  %v1612_v9 = vsel %vm1421_vm1, %v4363_v7, 0  ;;  %v4375_v18 = vld [vmem:[%s5817_s0 + $0x38] ss:$12 sps:$4 sm:$0xff]  }
  0x12   : > { %1631 = vmatprep.subr.bf16.mxu0 %v4360_v5  ;;  %4090 = vmatprep.subr.bf16.mxu1 %v4625_v0  ;;  %v4378_v19 = vld [vmem:[%s5817_s0 + $0x48] ss:$12 sps:$4 sm:$0xff]   ;;  %v4380_v20 = vld [vmem:[%s5817_s0 + $0x64] ss:$12 sps:$4 sm:$0xff]   ;;  %v4382_v22 = vld [vmem:[%s5817_s0 + $0x60] ss:$12 sps:$4 sm:$0xff]   ;;  %s4991_s29 = scalar_lea.vmem %s5820_s3, %s4345_s23 }
  0x13   : > { %v4379_v21 = vld [vmem:[%s5817_s0 + $0x50] ss:$12 sps:$4 sm:$0xff]   ;;  %v4383_v24 = vld [vmem:[%s5817_s0 + $0x68] ss:$12 sps:$4 sm:$0xff]   ;;  %v4386_v25 = vld [vmem:[%s5817_s0 + $0x78] ss:$12 sps:$4 sm:$0xff]  }
  0x14   : > { %v4384_v23 = vld [vmem:[%s5817_s0 + $0x7c] ss:$12 sps:$4 sm:$0xff]   ;;  %v4388_v26 = vld [vmem:[%s5817_s0 + $0x94] ss:$12 sps:$4 sm:$0xff]   ;;  %v4392_v29 = vld [vmem:[%s5817_s0 + $0xac] ss:$12 sps:$4 sm:$0xff]  }
  0x15   : > { %v4387_v27 = vld [vmem:[%s5817_s0 + $0x80] ss:$12 sps:$4 sm:$0xff]   ;;  %v4390_v28 = vld [vmem:[%s5817_s0 + $0x90] ss:$12 sps:$4 sm:$0xff]   ;;  %v4391_v30 = vld [vmem:[%s5817_s0 + $0x98] ss:$12 sps:$4 sm:$0xff]  }
  0x16   : > { %v4394_v31 = vld [vmem:[%s5817_s0 + $0xa8] ss:$12 sps:$4 sm:$0xff]   ;;  %v4396_v32 = vld [vmem:[%s5817_s0 + $0xc4] ss:$12 sps:$4 sm:$0xff]   ;;  %v4398_v34 = vld [vmem:[%s5817_s0 + $0xc0] ss:$12 sps:$4 sm:$0xff]  }
  0x17   : > { %v4395_v33 = vld [vmem:[%s5817_s0 + $0xb0] ss:$12 sps:$4 sm:$0xff]   ;;  %v4399_v35 = vld [vmem:[%s5817_s0 + $0xc8] ss:$12 sps:$4 sm:$0xff]   ;;  %v4402_v37 = vld [vmem:[%s5817_s0 + $0xd8] ss:$12 sps:$4 sm:$0xff]  }
  0x18   : > { %v4400_v36 = vld [vmem:[%s5817_s0 + $0xdc] ss:$12 sps:$4 sm:$0xff]   ;;  %v4404_v38 = vld [vmem:[%s5817_s0 + $0xf4] ss:$12 sps:$4 sm:$0xff]   ;;  %v4408_v41 = vld [vmem:[%s5817_s0 + $0x10c] ss:$12 sps:$4 sm:$0xff]  }
  0x19   : > { %1632 = vmatpush1.bf16.xpose.msra.mxu0 %v4362_v8  ;;  %4091 = vmatpush3.bf16.xpose.msra.mxu1 %v1612_v9  ;;  %v4403_v39 = vld [vmem:[%s5817_s0 + $0xe0] ss:$12 sps:$4 sm:$0xff]   ;;  %v4406_v40 = vld [vmem:[%s5817_s0 + $0xf0] ss:$12 sps:$4 sm:$0xff]   ;;  %v4407_v42 = vld [vmem:[%s5817_s0 + $0xf8] ss:$12 sps:$4 sm:$0xff]  }
  0x1a   : > { %v4410_v43 = vld [vmem:[%s5817_s0 + $0x108] ss:$12 sps:$4 sm:$0xff]   ;;  %v4412_v44 = vld [vmem:[%s5817_s0 + $0x124] ss:$12 sps:$4 sm:$0xff]   ;;  %v4414_v46 = vld [vmem:[%s5817_s0 + $0x120] ss:$12 sps:$4 sm:$0xff]  }
  0x1b   : > { %v4411_v45 = vld [vmem:[%s5817_s0 + $0x110] ss:$12 sps:$4 sm:$0xff]   ;;  %v4415_v48 = vld [vmem:[%s5817_s0 + $0x128] ss:$12 sps:$4 sm:$0xff]   ;;  %v4418_v49 = vld [vmem:[%s5817_s0 + $0x138] ss:$12 sps:$4 sm:$0xff]  }
  0x1c   : > { %v4416_v47 = vld [vmem:[%s5817_s0 + $0x13c] ss:$12 sps:$4 sm:$0xff]   ;;  %v4420_v50 = vld [vmem:[%s5817_s0 + $0x154] ss:$12 sps:$4 sm:$0xff]   ;;  %v4424_v53 = vld [vmem:[%s5817_s0 + $0x16c] ss:$12 sps:$4 sm:$0xff]  }
  0x1d   : > { %v4419_v51 = vld [vmem:[%s5817_s0 + $0x140] ss:$12 sps:$4 sm:$0xff]   ;;  %v4422_v52 = vld [vmem:[%s5817_s0 + $0x150] ss:$12 sps:$4 sm:$0xff]   ;;  %v4423_v54 = vld [vmem:[%s5817_s0 + $0x158] ss:$12 sps:$4 sm:$0xff]  }
  0x1e   : > { %v4426_v55 = vld [vmem:[%s5817_s0 + $0x168] ss:$12 sps:$4 sm:$0xff]   ;;  %v4428_v56 = vld [vmem:[%s5817_s0 + $0x184] ss:$12 sps:$4 sm:$0xff]   ;;  %v4430_v58 = vld [vmem:[%s5817_s0 + $0x180] ss:$12 sps:$4 sm:$0xff]  }
  0x1f   : > { %v4427_v57 = vld [vmem:[%s5817_s0 + $0x170] ss:$12 sps:$4 sm:$0xff]   ;;  %v4431_v60 = vld [vmem:[%s5817_s0 + $0x188] ss:$12 sps:$4 sm:$0xff]   ;;  %v4434_v61 = vld [vmem:[%s5817_s0 + $0x198] ss:$12 sps:$4 sm:$0xff]  }
  0x20   : > { %1650 = vmatmul.mubr.bf16.vlgmr.msra.gmra.mxu0 %v4364_v10  ;;  %4093 = vmatmul.mubr.msk.bf16.vlgmr.msra.gmra.mxu1 %vm1421_vm1, %v4367_v12  ;;  %v4432_v59 = vld [vmem:[%s5817_s0 + $0x19c] ss:$12 sps:$4 sm:$0xff]   ;;  %v4436_v62 = vld [vmem:[%s5817_s0 + $0x1b4] ss:$12 sps:$4 sm:$0xff]   ;;  %v4440_v2 = vld [vmem:[%s5817_s0 + $0x1cc] ss:$12 sps:$4 sm:$0xff]  }
  0x21   : > { %1657 = vmatprep.mubr.bf16.mxu0 %v4368_v11  ;;  %4096 = vmatprep.mubr.msk.bf16.mxu1 %vm4626_vm0, %v4625_v0  ;;  %v4435_v63 = vld [vmem:[%s5817_s0 + $0x1a0] ss:$12 sps:$4 sm:$0xff]   ;;  %v4438_v1 = vld [vmem:[%s5817_s0 + $0x1b0] ss:$12 sps:$4 sm:$0xff]   ;;  %v4439_v3 = vld [vmem:[%s5817_s0 + $0x1b8] ss:$12 sps:$4 sm:$0xff]  }
  0x22   : > { %v4442_v4 = vld [vmem:[%s5817_s0 + $0x1c8] ss:$12 sps:$4 sm:$0xff]   ;;  %v4444_v5 = vld [vmem:[%s5817_s0 + $0x1e4] ss:$12 sps:$4 sm:$0xff]   ;;  %v4446_v7 = vld [vmem:[%s5817_s0 + $0x1e0] ss:$12 sps:$4 sm:$0xff]  }
  0x23   : > { %v4443_v6 = vld [vmem:[%s5817_s0 + $0x1d0] ss:$12 sps:$4 sm:$0xff]   ;;  %v4447_v9 = vld [vmem:[%s5817_s0 + $0x1e8] ss:$12 sps:$4 sm:$0xff]   ;;  %v4450_v10 = vld [vmem:[%s5817_s0 + $0x1f8] ss:$12 sps:$4 sm:$0xff]  }
  0x24   : > { %v4448_v8 = vld [vmem:[%s5817_s0 + $0x1fc] ss:$12 sps:$4 sm:$0xff]   ;;  %v4452_v11 = vld [vmem:[%s5817_s0 + $0x214] ss:$12 sps:$4 sm:$0xff]  }
  0x25   : > { %v4451_v12 = vld [vmem:[%s5817_s0 + $0x200] ss:$12 sps:$4 sm:$0xff]  }
  0x28   : > { %1658 = vmatmul.mubr.bf16.gmra.mxu0 %v4370_v13  ;;  %4097 = vmatmul.mubr.msk.bf16.gmra.mxu1 %vm1421_vm1, %v4371_v15  ;;  %v4454_v13 = vld [vmem:[%s5817_s0 + $0x210] ss:$12 sps:$4 sm:$0xff]   ;;  %v4455_v15 = vld [vmem:[%s5817_s0 + $0x218] ss:$12 sps:$4 sm:$0xff]  }
  0x29   : > { %1665 = vmatprep.mubr.bf16.mxu0 %v4372_v14  ;;  %4100 = vmatprep.mubr.msk.bf16.mxu1 %vm4626_vm0, %v4625_v0  ;;  %v4456_v14 = vld [vmem:[%s5817_s0 + $0x22c] ss:$12 sps:$4 sm:$0xff]  }
  0x30   : > { %1666 = vmatmul.mubr.bf16.gmra.mxu0 %v4374_v16  ;;  %4101 = vmatmul.mubr.msk.bf16.gmra.mxu1 %vm1421_vm1, %v4375_v18  ;;  %v4458_v16 = vld [vmem:[%s5817_s0 + $0x228] ss:$12 sps:$4 sm:$0xff]   ;;  %v4459_v18 = vld [vmem:[%s5817_s0 + $0x230] ss:$12 sps:$4 sm:$0xff]  }
  0x31   : > { %1673 = vmatprep.mubr.bf16.mxu0 %v4376_v17  ;;  %4104 = vmatprep.mubr.msk.bf16.mxu1 %vm4626_vm0, %v4625_v0  ;;  %v4460_v17 = vld [vmem:[%s5817_s0 + $0x244] ss:$12 sps:$4 sm:$0xff]  }
  0x38   : > { %1674 = vmatmul.mubr.bf16.gmra.mxu0 %v4378_v19  ;;  %4105 = vmatmul.mubr.msk.bf16.gmra.mxu1 %vm1421_vm1, %v4379_v21  ;;  %v4462_v19 = vld [vmem:[%s5817_s0 + $0x240] ss:$12 sps:$4 sm:$0xff]  }
  0x39   : > { %1681 = vmatprep.mubr.bf16.mxu0 %v4380_v20  ;;  %4108 = vmatprep.mubr.msk.bf16.mxu1 %vm4626_vm0, %v4625_v0  ;;  %v4464_v20 = vld [vmem:[%s5817_s0 + $0x25c] ss:$12 sps:$4 sm:$0xff]   ;;  %v4971_v21 = vld [vmem:[%s4962_s16] ss:$0 sm:$0xff] }
  0x40   : > { %1682 = vmatmul.mubr.bf16.gmra.mxu0 %v4382_v22  ;;  %4109 = vmatmul.mubr.msk.bf16.gmra.mxu1 %vm1421_vm1, %v4383_v24  ;;  %v4463_v22 = vld [vmem:[%s5817_s0 + $0x248] ss:$12 sps:$4 sm:$0xff]  }
  0x41   : > { %1689 = vmatprep.mubr.bf16.mxu0 %v4384_v23  ;;  %4112 = vmatprep.mubr.msk.bf16.mxu1 %vm4626_vm0, %v4625_v0 }
  0x48   : > { %1690 = vmatmul.mubr.bf16.gmra.mxu0 %v4386_v25  ;;  %4113 = vmatmul.mubr.msk.bf16.gmra.mxu1 %vm1421_vm1, %v4387_v27 }
  0x49   : > { %1697 = vmatprep.mubr.bf16.mxu0 %v4388_v26  ;;  %4116 = vmatprep.mubr.msk.bf16.mxu1 %vm4626_vm0, %v4625_v0 }
  0x50   : > { %1698 = vmatmul.mubr.bf16.gmra.mxu0 %v4390_v28  ;;  %4117 = vmatmul.mubr.msk.bf16.gmra.mxu1 %vm1421_vm1, %v4391_v30  ;;  %v4466_v30 = vld [vmem:[%s5817_s0 + $0x258] ss:$12 sps:$4 sm:$0xff]  }
  0x51   : > { %1705 = vmatprep.mubr.bf16.mxu0 %v4392_v29  ;;  %4120 = vmatprep.mubr.msk.bf16.mxu1 %vm4626_vm0, %v4625_v0 }
  0x58   : > { %1706 = vmatmul.mubr.bf16.gmra.mxu0 %v4394_v31  ;;  %4121 = vmatmul.mubr.msk.bf16.gmra.mxu1 %vm1421_vm1, %v4395_v33  ;;  %v4468_v33 = vld [vmem:[%s5817_s0 + $0x274] ss:$12 sps:$4 sm:$0xff]  }
  0x59   : > { %1713 = vmatprep.mubr.bf16.mxu0 %v4396_v32  ;;  %4124 = vmatprep.mubr.msk.bf16.mxu1 %vm4626_vm0, %v4625_v0 }
  0x60   : > { %1714 = vmatmul.mubr.bf16.gmra.mxu0 %v4398_v34  ;;  %4125 = vmatmul.mubr.msk.bf16.gmra.mxu1 %vm1421_vm1, %v4399_v35 }
  0x61   : > { %1721 = vmatprep.mubr.bf16.mxu0 %v4400_v36  ;;  %4128 = vmatprep.mubr.msk.bf16.mxu1 %vm4626_vm0, %v4625_v0  ;;  %v4467_v36 = vld [vmem:[%s5817_s0 + $0x260] ss:$12 sps:$4 sm:$0xff]  }
  0x68   : > { %1722 = vmatmul.mubr.bf16.gmra.mxu0 %v4402_v37  ;;  %4129 = vmatmul.mubr.msk.bf16.gmra.mxu1 %vm1421_vm1, %v4403_v39 }
  0x69   : > { %1729 = vmatprep.mubr.bf16.mxu0 %v4404_v38  ;;  %4132 = vmatprep.mubr.msk.bf16.mxu1 %vm4626_vm0, %v4625_v0 }
  0x70   : > { %1730 = vmatmul.mubr.bf16.gmra.mxu0 %v4406_v40  ;;  %4133 = vmatmul.mubr.msk.bf16.gmra.mxu1 %vm1421_vm1, %v4407_v42 }
  0x71   : > { %1737 = vmatprep.mubr.bf16.mxu0 %v4408_v41  ;;  %4136 = vmatprep.mubr.msk.bf16.mxu1 %vm4626_vm0, %v4625_v0 }
  0x78   : > { %1738 = vmatmul.mubr.bf16.gmra.mxu0 %v4410_v43  ;;  %4137 = vmatmul.mubr.msk.bf16.gmra.mxu1 %vm1421_vm1, %v4411_v45 }
  0x79   : > { %1745 = vmatprep.mubr.bf16.mxu0 %v4412_v44  ;;  %4140 = vmatprep.mubr.msk.bf16.mxu1 %vm4626_vm0, %v4625_v0 }
  0x80   : > { %1746 = vmatmul.mubr.bf16.gmra.mxu0 %v4414_v46  ;;  %4141 = vmatmul.mubr.msk.bf16.gmra.mxu1 %vm1421_vm1, %v4415_v48 }
  0x81   : > { %1753 = vmatprep.mubr.bf16.mxu0 %v4416_v47  ;;  %4144 = vmatprep.mubr.msk.bf16.mxu1 %vm4626_vm0, %v4625_v0 }
  0x88   : > { %1754 = vmatmul.mubr.bf16.gmra.mxu0 %v4418_v49  ;;  %4145 = vmatmul.mubr.msk.bf16.gmra.mxu1 %vm1421_vm1, %v4419_v51  ;;  %v4470_v49 = vld [vmem:[%s5817_s0 + $0x270] ss:$12 sps:$4 sm:$0xff]  }
  0x89   : > { %1761 = vmatprep.mubr.bf16.mxu0 %v4420_v50  ;;  %4148 = vmatprep.mubr.msk.bf16.mxu1 %vm4626_vm0, %v4625_v0 }
  0x90   : > { %1762 = vmatmul.mubr.bf16.gmra.mxu0 %v4422_v52  ;;  %4149 = vmatmul.mubr.msk.bf16.gmra.mxu1 %vm1421_vm1, %v4423_v54  ;;  %v4472_v52 = vld [vmem:[%s5817_s0 + $0x28c] ss:$12 sps:$4 sm:$0xff]  }
  0x91   : > { %1769 = vmatprep.mubr.bf16.mxu0 %v4424_v53  ;;  %4152 = vmatprep.mubr.msk.bf16.mxu1 %vm4626_vm0, %v4625_v0 }
  0x98   : > { %1770 = vmatmul.mubr.bf16.gmra.mxu0 %v4426_v55  ;;  %4153 = vmatmul.mubr.msk.bf16.gmra.mxu1 %vm1421_vm1, %v4427_v57  ;;  %v4471_v55 = vld [vmem:[%s5817_s0 + $0x278] ss:$12 sps:$4 sm:$0xff]  }
  0x99   : > { %1777 = vmatprep.mubr.bf16.mxu0 %v4428_v56  ;;  %4156 = vmatprep.mubr.msk.bf16.mxu1 %vm4626_vm0, %v4625_v0 }
  0xa0   : > { %1778 = vmatmul.mubr.bf16.gmra.mxu0 %v4430_v58  ;;  %4157 = vmatmul.mubr.msk.bf16.gmra.mxu1 %vm1421_vm1, %v4431_v60 }
  0xa1   : > { %1785 = vmatprep.mubr.bf16.mxu0 %v4432_v59  ;;  %4160 = vmatprep.mubr.msk.bf16.mxu1 %vm4626_vm0, %v4625_v0 }
  0xa8   : > { %1786 = vmatmul.mubr.bf16.gmra.mxu0 %v4434_v61  ;;  %4161 = vmatmul.mubr.msk.bf16.gmra.mxu1 %vm1421_vm1, %v4435_v63 }
  0xa9   : > { %1793 = vmatprep.mubr.bf16.mxu0 %v4436_v62  ;;  %4164 = vmatprep.mubr.msk.bf16.mxu1 %vm4626_vm0, %v4625_v0 }
  0xb0   : > { %1794 = vmatmul.mubr.bf16.gmra.mxu0 %v4438_v1  ;;  %4165 = vmatmul.mubr.msk.bf16.gmra.mxu1 %vm1421_vm1, %v4439_v3 }
  0xb1   : > { %1801 = vmatprep.mubr.bf16.mxu0 %v4440_v2  ;;  %4168 = vmatprep.mubr.msk.bf16.mxu1 %vm4626_vm0, %v4625_v0 }
  0xb8   : > { %1802 = vmatmul.mubr.bf16.gmra.mxu0 %v4442_v4  ;;  %4169 = vmatmul.mubr.msk.bf16.gmra.mxu1 %vm1421_vm1, %v4443_v6 }
  0xb9   : > { %1809 = vmatprep.mubr.bf16.mxu0 %v4444_v5  ;;  %4172 = vmatprep.mubr.msk.bf16.mxu1 %vm4626_vm0, %v4625_v0  ;;  %v4474_v5 = vld [vmem:[%s5817_s0 + $0x288] ss:$12 sps:$4 sm:$0xff]  }
  0xc0   : > { %1810 = vmatmul.mubr.bf16.gmra.mxu0 %v4446_v7  ;;  %4173 = vmatmul.mubr.msk.bf16.gmra.mxu1 %vm1421_vm1, %v4447_v9 }
  0xc1   : > { %1817 = vmatprep.mubr.bf16.mxu0 %v4448_v8  ;;  %4176 = vmatprep.mubr.msk.bf16.mxu1 %vm4626_vm0, %v4625_v0  ;;  %v4478_v8 = vld [vmem:[%s5817_s0 + $0x2a4] ss:$12 sps:$4 sm:$0xff]  }
  0xc8   : > { %1818 = vmatmul.mubr.bf16.gmra.mxu0 %v4450_v10  ;;  %4177 = vmatmul.mubr.msk.bf16.gmra.mxu1 %vm1421_vm1, %v4451_v12 }
  0xc9   : > { %1825 = vmatprep.mubr.bf16.mxu0 %v4452_v11  ;;  %4180 = vmatprep.mubr.msk.bf16.mxu1 %vm4626_vm0, %v4625_v0  ;;  %v4475_v11 = vld [vmem:[%s5817_s0 + $0x290] ss:$12 sps:$4 sm:$0xff]  }
  0xd0   : > { %1826 = vmatmul.mubr.bf16.gmra.mxu0 %v4454_v13  ;;  %4181 = vmatmul.mubr.msk.bf16.gmra.mxu1 %vm1421_vm1, %v4455_v15 }
  0xd1   : > { %1833 = vmatprep.mubr.bf16.mxu0 %v4456_v14  ;;  %4184 = vmatprep.mubr.msk.bf16.mxu1 %vm4626_vm0, %v4625_v0 }
  0xd8   : > { %1834 = vmatmul.mubr.bf16.gmra.mxu0 %v4458_v16  ;;  %4185 = vmatmul.mubr.msk.bf16.gmra.mxu1 %vm1421_vm1, %v4459_v18 }
  0xd9   : > { %1841 = vmatprep.mubr.bf16.mxu0 %v4460_v17  ;;  %4188 = vmatprep.mubr.msk.bf16.mxu1 %vm4626_vm0, %v4625_v0 }
  0xe0   : > { %v1651_v23 = vpop.f32.mrf.mxu0  ;;  %1842 = vmatmul.mubr.bf16.gmra.mxu0 %v4462_v19  ;;  %v2187_v25 = vpop.f32.mrf.mxu1  ;;  %4189 = vmatmul.mubr.msk.bf16.gmra.mxu1 %vm1421_vm1, %v4463_v22 }
  0xe1   : > { %v1652_v24 = vadd.f32 %v4971_v21, %v1651_v23  ;;  %1849 = vmatprep.mubr.bf16.mxu0 %v4464_v20  ;;  %4192 = vmatprep.mubr.msk.bf16.mxu1 %vm4626_vm0, %v4625_v0 }
  0xe2   : > { %v1653_v26 = vpop.f32.mrf.mxu0  ;;  %v4094_v28 = vpop.f32.mrf.mxu1 }
  0xe3   : > { %v2188_v27 = vadd.f32 %v2187_v25, %v1652_v24  ;;  %v4476_v25 = vld [vmem:[%s5817_s0 + $0x2a0] ss:$12 sps:$4 sm:$0xff]   ;;  %v4482_v28 = vld [vmem:[%s5817_s0 + $0x2bc] ss:$12 sps:$4 sm:$0xff]  }
  0xe4   : > { %v1654_v29 = vpop.f32.mrf.mxu0  ;;  %v2190_v34 = vpop.f32.mrf.mxu1 }
  0xe5   : > { %v2689_v31 = vmax.f32 %v2188_v27, 0.0  ;;  %v1655_v32 = vadd.f32 %v4971_v21, %v1654_v29 }
  0xe6   : > { %v1656_v35 = vpop.f32.mrf.mxu0  ;;  %v4095_v39 = vpop.f32.mrf.mxu1 }
  0xe7   : > { %v3898_v37 = vpack.c.bf16 %v2689_v31, %v2689_v31  ;;  %v2191_v38 = vadd.f32 %v2190_v34, %v1655_v32  ;;  %v4479_v31 = vld [vmem:[%s5817_s0 + $0x2a8] ss:$12 sps:$4 sm:$0xff]  }
  0xe8   : > { %v1659_v40 = vpop.f32.mrf.mxu0  ;;  %1850 = vmatmul.mubr.bf16.gmra.mxu0 %v4466_v30  ;;  %v2195_v43 = vpop.f32.mrf.mxu1  ;;  %4193 = vmatmul.mubr.msk.bf16.gmra.mxu1 %vm1421_vm1, %v4467_v36 }
  0xe9   : > { %3316 = vst.msk [vmem:[%s4991_s29] sm:$0xf] %vm3315_vm2, %v3898_v37  ;;  %v2690_v41 = vmax.f32 %v2191_v38, 0.0  ;;  %v1660_v42 = vadd.f32 %v4971_v21, %v1659_v40  ;;  %1857 = vmatprep.mubr.bf16.mxu0 %v4468_v33  ;;  %4196 = vmatprep.mubr.msk.bf16.mxu1 %vm4626_vm0, %v4625_v0 }
  0xea   : > { %v1661_v44 = vpop.f32.mrf.mxu0  ;;  %v4098_v47 = vpop.f32.mrf.mxu1 }
  0xeb   : > { %v3899_v45 = vpack.c.bf16 %v2690_v41, %v2690_v41  ;;  %v2196_v46 = vadd.f32 %v2195_v43, %v1660_v42  ;;  %v4480_v44 = vld [vmem:[%s5817_s0 + $0x2b8] ss:$12 sps:$4 sm:$0xff]   ;;  %v4486_v47 = vld [vmem:[%s5817_s0 + $0x2d4] ss:$12 sps:$4 sm:$0xff]  }
  0xec   : > { %v1662_v48 = vpop.f32.mrf.mxu0  ;;  %v2198_v53 = vpop.f32.mrf.mxu1 }
  0xed   : > { %3317 = vst.msk [vmem:[%s4991_s29 + $0x4] sm:$0xf] %vm3315_vm2, %v3899_v45  ;;  %v2691_v50 = vmax.f32 %v2196_v46, 0.0  ;;  %v1663_v51 = vadd.f32 %v4971_v21, %v1662_v48 }
  0xee   : > { %v1664_v54 = vpop.f32.mrf.mxu0  ;;  %v4099_v58 = vpop.f32.mrf.mxu1 }
  0xef   : > { %v3900_v56 = vpack.c.bf16 %v2691_v50, %v2691_v50  ;;  %v2199_v57 = vadd.f32 %v2198_v53, %v1663_v51  ;;  %v4483_v50 = vld [vmem:[%s5817_s0 + $0x2c0] ss:$12 sps:$4 sm:$0xff]  }
  0xf0   : > { %v1667_v59 = vpop.f32.mrf.mxu0  ;;  %1858 = vmatmul.mubr.bf16.gmra.mxu0 %v4470_v49  ;;  %v2203_v62 = vpop.f32.mrf.mxu1  ;;  %4197 = vmatmul.mubr.msk.bf16.gmra.mxu1 %vm1421_vm1, %v4471_v55 }
  0xf1   : > { %3318 = vst.msk [vmem:[%s4991_s29 + $0x8] sm:$0xf] %vm3315_vm2, %v3900_v56  ;;  %v2692_v60 = vmax.f32 %v2199_v57, 0.0  ;;  %v1668_v61 = vadd.f32 %v4971_v21, %v1667_v59  ;;  %1865 = vmatprep.mubr.bf16.mxu0 %v4472_v52  ;;  %4200 = vmatprep.mubr.msk.bf16.mxu1 %vm4626_vm0, %v4625_v0 }
  0xf2   : > { %v1669_v63 = vpop.f32.mrf.mxu0  ;;  %v4102_v3 = vpop.f32.mrf.mxu1 }
  0xf3   : > { %v3901_v1 = vpack.c.bf16 %v2692_v60, %v2692_v60  ;;  %v2204_v2 = vadd.f32 %v2203_v62, %v1668_v61  ;;  %v4484_v63 = vld [vmem:[%s5817_s0 + $0x2d0] ss:$12 sps:$4 sm:$0xff]   ;;  %v4490_v3 = vld [vmem:[%s5817_s0 + $0x2ec] ss:$12 sps:$4 sm:$0xff]  }
  0xf4   : > { %v1670_v4 = vpop.f32.mrf.mxu0  ;;  %v2206_v9 = vpop.f32.mrf.mxu1 }
  0xf5   : > { %3319 = vst.msk [vmem:[%s4991_s29 + $0xc] sm:$0xf] %vm3315_vm2, %v3901_v1  ;;  %v2693_v6 = vmax.f32 %v2204_v2, 0.0  ;;  %v1671_v7 = vadd.f32 %v4971_v21, %v1670_v4 }
  0xf6   : > { %v1672_v10 = vpop.f32.mrf.mxu0  ;;  %v4103_v14 = vpop.f32.mrf.mxu1 }
  0xf7   : > { %v3902_v12 = vpack.c.bf16 %v2693_v6, %v2693_v6  ;;  %v2207_v13 = vadd.f32 %v2206_v9, %v1671_v7  ;;  %v4487_v6 = vld [vmem:[%s5817_s0 + $0x2d8] ss:$12 sps:$4 sm:$0xff]  }
  0xf8   : > { %v1675_v15 = vpop.f32.mrf.mxu0  ;;  %1866 = vmatmul.mubr.bf16.gmra.mxu0 %v4474_v5  ;;  %v2211_v18 = vpop.f32.mrf.mxu1  ;;  %4201 = vmatmul.mubr.msk.bf16.gmra.mxu1 %vm1421_vm1, %v4475_v11 }
  0xf9   : > { %3320 = vst.msk [vmem:[%s4991_s29 + $0x10] sm:$0xf] %vm3315_vm2, %v3902_v12  ;;  %v2694_v16 = vmax.f32 %v2207_v13, 0.0  ;;  %v1676_v17 = vadd.f32 %v4971_v21, %v1675_v15  ;;  %1873 = vmatprep.mubr.bf16.mxu0 %v4478_v8  ;;  %4204 = vmatprep.mubr.msk.bf16.mxu1 %vm4626_vm0, %v4625_v0 }
  0xfa   : > { %v1677_v19 = vpop.f32.mrf.mxu0  ;;  %v4106_v23 = vpop.f32.mrf.mxu1 }
  0xfb   : > { %v3903_v20 = vpack.c.bf16 %v2694_v16, %v2694_v16  ;;  %v2212_v22 = vadd.f32 %v2211_v18, %v1676_v17  ;;  %v4488_v19 = vld [vmem:[%s5817_s0 + $0x2e8] ss:$12 sps:$4 sm:$0xff]   ;;  %v4494_v23 = vld [vmem:[%s5817_s0 + $0x304] ss:$12 sps:$4 sm:$0xff]  }
  0xfc   : > { %v1678_v24 = vpop.f32.mrf.mxu0  ;;  %v2214_v29 = vpop.f32.mrf.mxu1 }
  0xfd   : > { %3321 = vst.msk [vmem:[%s4991_s29 + $0x14] sm:$0xf] %vm3315_vm2, %v3903_v20  ;;  %v2695_v26 = vmax.f32 %v2212_v22, 0.0  ;;  %v1679_v27 = vadd.f32 %v4971_v21, %v1678_v24 }
  0xfe   : > { %v1680_v30 = vpop.f32.mrf.mxu0  ;;  %v4107_v34 = vpop.f32.mrf.mxu1 }
  0xff   : > { %v3904_v32 = vpack.c.bf16 %v2695_v26, %v2695_v26  ;;  %v2215_v33 = vadd.f32 %v2214_v29, %v1679_v27  ;;  %v4491_v26 = vld [vmem:[%s5817_s0 + $0x2f0] ss:$12 sps:$4 sm:$0xff]  }
 0x100   : > { %v1683_v35 = vpop.f32.mrf.mxu0  ;;  %1874 = vmatmul.mubr.bf16.gmra.mxu0 %v4476_v25  ;;  %v2219_v38 = vpop.f32.mrf.mxu1  ;;  %4205 = vmatmul.mubr.msk.bf16.gmra.mxu1 %vm1421_vm1, %v4479_v31 }
 0x101   : > { %3322 = vst.msk [vmem:[%s4991_s29 + $0x18] sm:$0xf] %vm3315_vm2, %v3904_v32  ;;  %v2696_v36 = vmax.f32 %v2215_v33, 0.0  ;;  %v1684_v37 = vadd.f32 %v4971_v21, %v1683_v35  ;;  %1881 = vmatprep.mubr.bf16.mxu0 %v4482_v28  ;;  %4208 = vmatprep.mubr.msk.bf16.mxu1 %vm4626_vm0, %v4625_v0 }
 0x102   : > { %v1685_v39 = vpop.f32.mrf.mxu0  ;;  %v4110_v42 = vpop.f32.mrf.mxu1 }
 0x103   : > { %v3905_v40 = vpack.c.bf16 %v2696_v36, %v2696_v36  ;;  %v2220_v41 = vadd.f32 %v2219_v38, %v1684_v37  ;;  %v4492_v39 = vld [vmem:[%s5817_s0 + $0x300] ss:$12 sps:$4 sm:$0xff]   ;;  %v4498_v42 = vld [vmem:[%s5817_s0 + $0x31c] ss:$12 sps:$4 sm:$0xff]  }
 0x104   : > { %v1686_v43 = vpop.f32.mrf.mxu0  ;;  %v2222_v48 = vpop.f32.mrf.mxu1 }
 0x105   : > { %3323 = vst.msk [vmem:[%s4991_s29 + $0x1c] sm:$0xf] %vm3315_vm2, %v3905_v40  ;;  %v2697_v45 = vmax.f32 %v2220_v41, 0.0  ;;  %v1687_v46 = vadd.f32 %v4971_v21, %v1686_v43 }
 0x106   : > { %v1688_v49 = vpop.f32.mrf.mxu0  ;;  %v4111_v53 = vpop.f32.mrf.mxu1 }
 0x107   : > { %v3906_v51 = vpack.c.bf16 %v2697_v45, %v2697_v45  ;;  %v2223_v52 = vadd.f32 %v2222_v48, %v1687_v46  ;;  %v4495_v45 = vld [vmem:[%s5817_s0 + $0x308] ss:$12 sps:$4 sm:$0xff]  }
 0x108   : > { %v1691_v54 = vpop.f32.mrf.mxu0  ;;  %1882 = vmatmul.mubr.bf16.gmra.mxu0 %v4480_v44  ;;  %v2227_v57 = vpop.f32.mrf.mxu1  ;;  %4209 = vmatmul.mubr.msk.bf16.gmra.mxu1 %vm1421_vm1, %v4483_v50 }
 0x109   : > { %3324 = vst.msk [vmem:[%s4991_s29 + $0x20] sm:$0xf] %vm3315_vm2, %v3906_v51  ;;  %v2698_v55 = vmax.f32 %v2223_v52, 0.0  ;;  %v1692_v56 = vadd.f32 %v4971_v21, %v1691_v54  ;;  %1889 = vmatprep.mubr.bf16.mxu0 %v4486_v47  ;;  %4212 = vmatprep.mubr.msk.bf16.mxu1 %vm4626_vm0, %v4625_v0 }
 0x10a   : > { %v1693_v58 = vpop.f32.mrf.mxu0  ;;  %v4114_v61 = vpop.f32.mrf.mxu1 }
 0x10b   : > { %v3907_v59 = vpack.c.bf16 %v2698_v55, %v2698_v55  ;;  %v2228_v60 = vadd.f32 %v2227_v57, %v1692_v56  ;;  %v4496_v58 = vld [vmem:[%s5817_s0 + $0x318] ss:$12 sps:$4 sm:$0xff]   ;;  %v4502_v61 = vld [vmem:[%s5817_s0 + $0x334] ss:$12 sps:$4 sm:$0xff]  }
 0x10c   : > { %v1694_v62 = vpop.f32.mrf.mxu0  ;;  %v2230_v4 = vpop.f32.mrf.mxu1 }
 0x10d   : > { %3325 = vst.msk [vmem:[%s4991_s29 + $0x24] sm:$0xf] %vm3315_vm2, %v3907_v59  ;;  %v2699_v1 = vmax.f32 %v2228_v60, 0.0  ;;  %v1695_v2 = vadd.f32 %v4971_v21, %v1694_v62 }
 0x10e   : > { %v1696_v5 = vpop.f32.mrf.mxu0  ;;  %v4115_v9 = vpop.f32.mrf.mxu1 }
 0x10f   : > { %v3908_v7 = vpack.c.bf16 %v2699_v1, %v2699_v1  ;;  %v2231_v8 = vadd.f32 %v2230_v4, %v1695_v2  ;;  %v4499_v1 = vld [vmem:[%s5817_s0 + $0x320] ss:$12 sps:$4 sm:$0xff]  }
 0x110   : > { %v1699_v10 = vpop.f32.mrf.mxu0  ;;  %1890 = vmatmul.mubr.bf16.gmra.mxu0 %v4484_v63  ;;  %v2235_v13 = vpop.f32.mrf.mxu1  ;;  %4213 = vmatmul.mubr.msk.bf16.gmra.mxu1 %vm1421_vm1, %v4487_v6 }
 0x111   : > { %3326 = vst.msk [vmem:[%s4991_s29 + $0x28] sm:$0xf] %vm3315_vm2, %v3908_v7  ;;  %v2700_v11 = vmax.f32 %v2231_v8, 0.0  ;;  %v1700_v12 = vadd.f32 %v4971_v21, %v1699_v10  ;;  %1897 = vmatprep.mubr.bf16.mxu0 %v4490_v3  ;;  %4216 = vmatprep.mubr.msk.bf16.mxu1 %vm4626_vm0, %v4625_v0 }
 0x112   : > { %v1701_v14 = vpop.f32.mrf.mxu0  ;;  %v4118_v17 = vpop.f32.mrf.mxu1 }
 0x113   : > { %v3909_v15 = vpack.c.bf16 %v2700_v11, %v2700_v11  ;;  %v2236_v16 = vadd.f32 %v2235_v13, %v1700_v12  ;;  %v4500_v14 = vld [vmem:[%s5817_s0 + $0x330] ss:$12 sps:$4 sm:$0xff]   ;;  %v4506_v17 = vld [vmem:[%s5817_s0 + $0x34c] ss:$12 sps:$4 sm:$0xff]  }
 0x114   : > { %v1702_v18 = vpop.f32.mrf.mxu0  ;;  %v2238_v24 = vpop.f32.mrf.mxu1 }
 0x115   : > { %3327 = vst.msk [vmem:[%s4991_s29 + $0x2c] sm:$0xf] %vm3315_vm2, %v3909_v15  ;;  %v2701_v20 = vmax.f32 %v2236_v16, 0.0  ;;  %v1703_v22 = vadd.f32 %v4971_v21, %v1702_v18 }
 0x116   : > { %v1704_v25 = vpop.f32.mrf.mxu0  ;;  %v4119_v29 = vpop.f32.mrf.mxu1 }
 0x117   : > { %v3910_v27 = vpack.c.bf16 %v2701_v20, %v2701_v20  ;;  %v2239_v28 = vadd.f32 %v2238_v24, %v1703_v22  ;;  %v4503_v20 = vld [vmem:[%s5817_s0 + $0x338] ss:$12 sps:$4 sm:$0xff]  }
 0x118   : > { %v1707_v30 = vpop.f32.mrf.mxu0  ;;  %1898 = vmatmul.mubr.bf16.gmra.mxu0 %v4488_v19  ;;  %v2243_v33 = vpop.f32.mrf.mxu1  ;;  %4217 = vmatmul.mubr.msk.bf16.gmra.mxu1 %vm1421_vm1, %v4491_v26 }
 0x119   : > { %3328 = vst.msk [vmem:[%s4991_s29 + $0x30] sm:$0xf] %vm3315_vm2, %v3910_v27  ;;  %v2702_v31 = vmax.f32 %v2239_v28, 0.0  ;;  %v1708_v32 = vadd.f32 %v4971_v21, %v1707_v30  ;;  %1905 = vmatprep.mubr.bf16.mxu0 %v4494_v23  ;;  %4220 = vmatprep.mubr.msk.bf16.mxu1 %vm4626_vm0, %v4625_v0 }
 0x11a   : > { %v1709_v34 = vpop.f32.mrf.mxu0  ;;  %v4122_v37 = vpop.f32.mrf.mxu1 }
 0x11b   : > { %v3911_v35 = vpack.c.bf16 %v2702_v31, %v2702_v31  ;;  %v2244_v36 = vadd.f32 %v2243_v33, %v1708_v32  ;;  %v4504_v34 = vld [vmem:[%s5817_s0 + $0x348] ss:$12 sps:$4 sm:$0xff]   ;;  %v4510_v37 = vld [vmem:[%s5817_s0 + $0x364] ss:$12 sps:$4 sm:$0xff]  }
 0x11c   : > { %v1710_v38 = vpop.f32.mrf.mxu0  ;;  %v2246_v43 = vpop.f32.mrf.mxu1 }
 0x11d   : > { %3329 = vst.msk [vmem:[%s4991_s29 + $0x34] sm:$0xf] %vm3315_vm2, %v3911_v35  ;;  %v2703_v40 = vmax.f32 %v2244_v36, 0.0  ;;  %v1711_v41 = vadd.f32 %v4971_v21, %v1710_v38 }
 0x11e   : > { %v1712_v44 = vpop.f32.mrf.mxu0  ;;  %v4123_v48 = vpop.f32.mrf.mxu1 }
 0x11f   : > { %v3912_v46 = vpack.c.bf16 %v2703_v40, %v2703_v40  ;;  %v2247_v47 = vadd.f32 %v2246_v43, %v1711_v41  ;;  %v4507_v40 = vld [vmem:[%s5817_s0 + $0x350] ss:$12 sps:$4 sm:$0xff]  }
 0x120   : > { %v1715_v49 = vpop.f32.mrf.mxu0  ;;  %1906 = vmatmul.mubr.bf16.gmra.mxu0 %v4492_v39  ;;  %v2251_v52 = vpop.f32.mrf.mxu1  ;;  %4221 = vmatmul.mubr.msk.bf16.gmra.mxu1 %vm1421_vm1, %v4495_v45 }
 0x121   : > { %3330 = vst.msk [vmem:[%s4991_s29 + $0x38] sm:$0xf] %vm3315_vm2, %v3912_v46  ;;  %v2704_v50 = vmax.f32 %v2247_v47, 0.0  ;;  %v1716_v51 = vadd.f32 %v4971_v21, %v1715_v49  ;;  %1913 = vmatprep.mubr.bf16.mxu0 %v4498_v42  ;;  %4224 = vmatprep.mubr.msk.bf16.mxu1 %vm4626_vm0, %v4625_v0 }
 0x122   : > { %v1717_v53 = vpop.f32.mrf.mxu0  ;;  %v4126_v56 = vpop.f32.mrf.mxu1 }
 0x123   : > { %v3913_v54 = vpack.c.bf16 %v2704_v50, %v2704_v50  ;;  %v2252_v55 = vadd.f32 %v2251_v52, %v1716_v51  ;;  %v4508_v53 = vld [vmem:[%s5817_s0 + $0x360] ss:$12 sps:$4 sm:$0xff]   ;;  %v4514_v56 = vld [vmem:[%s5817_s0 + $0x37c] ss:$12 sps:$4 sm:$0xff]  }
 0x124   : > { %v1718_v57 = vpop.f32.mrf.mxu0  ;;  %v2254_v62 = vpop.f32.mrf.mxu1 }
 0x125   : > { %3331 = vst.msk [vmem:[%s4991_s29 + $0x3c] sm:$0xf] %vm3315_vm2, %v3913_v54  ;;  %v2705_v59 = vmax.f32 %v2252_v55, 0.0  ;;  %v1719_v60 = vadd.f32 %v4971_v21, %v1718_v57 }
 0x126   : > { %v1720_v63 = vpop.f32.mrf.mxu0  ;;  %v4127_v4 = vpop.f32.mrf.mxu1 }
 0x127   : > { %v3914_v2 = vpack.c.bf16 %v2705_v59, %v2705_v59  ;;  %v2255_v3 = vadd.f32 %v2254_v62, %v1719_v60  ;;  %v4511_v59 = vld [vmem:[%s5817_s0 + $0x368] ss:$12 sps:$4 sm:$0xff]  }
 0x128   : > { %v1723_v5 = vpop.f32.mrf.mxu0  ;;  %1914 = vmatmul.mubr.bf16.gmra.mxu0 %v4496_v58  ;;  %v2259_v8 = vpop.f32.mrf.mxu1  ;;  %4225 = vmatmul.mubr.msk.bf16.gmra.mxu1 %vm1421_vm1, %v4499_v1 }
 0x129   : > { %3332 = vst.msk [vmem:[%s4991_s29 + $0x40] sm:$0xf] %vm3315_vm2, %v3914_v2  ;;  %v2706_v6 = vmax.f32 %v2255_v3, 0.0  ;;  %v1724_v7 = vadd.f32 %v4971_v21, %v1723_v5  ;;  %1921 = vmatprep.mubr.bf16.mxu0 %v4502_v61  ;;  %4228 = vmatprep.mubr.msk.bf16.mxu1 %vm4626_vm0, %v4625_v0 }
 0x12a   : > { %v1725_v9 = vpop.f32.mrf.mxu0  ;;  %v4130_v12 = vpop.f32.mrf.mxu1 }
 0x12b   : > { %v3915_v10 = vpack.c.bf16 %v2706_v6, %v2706_v6  ;;  %v2260_v11 = vadd.f32 %v2259_v8, %v1724_v7  ;;  %v4512_v9 = vld [vmem:[%s5817_s0 + $0x378] ss:$12 sps:$4 sm:$0xff]   ;;  %v4518_v12 = vld [vmem:[%s5817_s0 + $0x394] ss:$12 sps:$4 sm:$0xff]  }
 0x12c   : > { %v1726_v13 = vpop.f32.mrf.mxu0  ;;  %v2262_v18 = vpop.f32.mrf.mxu1 }
 0x12d   : > { %3333 = vst.msk [vmem:[%s4991_s29 + $0x44] sm:$0xf] %vm3315_vm2, %v3915_v10  ;;  %v2707_v15 = vmax.f32 %v2260_v11, 0.0  ;;  %v1727_v16 = vadd.f32 %v4971_v21, %v1726_v13 }
 0x12e   : > { %v1728_v19 = vpop.f32.mrf.mxu0  ;;  %v4131_v24 = vpop.f32.mrf.mxu1 }
 0x12f   : > { %v3916_v22 = vpack.c.bf16 %v2707_v15, %v2707_v15  ;;  %v2263_v23 = vadd.f32 %v2262_v18, %v1727_v16  ;;  %v4515_v15 = vld [vmem:[%s5817_s0 + $0x380] ss:$12 sps:$4 sm:$0xff]  }
 0x130   : > { %v1731_v25 = vpop.f32.mrf.mxu0  ;;  %1922 = vmatmul.mubr.bf16.gmra.mxu0 %v4500_v14  ;;  %v2267_v28 = vpop.f32.mrf.mxu1  ;;  %4229 = vmatmul.mubr.msk.bf16.gmra.mxu1 %vm1421_vm1, %v4503_v20 }
 0x131   : > { %3334 = vst.msk [vmem:[%s4991_s29 + $0x48] sm:$0xf] %vm3315_vm2, %v3916_v22  ;;  %v2708_v26 = vmax.f32 %v2263_v23, 0.0  ;;  %v1732_v27 = vadd.f32 %v4971_v21, %v1731_v25  ;;  %1929 = vmatprep.mubr.bf16.mxu0 %v4506_v17  ;;  %4232 = vmatprep.mubr.msk.bf16.mxu1 %vm4626_vm0, %v4625_v0 }
 0x132   : > { %v1733_v29 = vpop.f32.mrf.mxu0  ;;  %v4134_v32 = vpop.f32.mrf.mxu1 }
 0x133   : > { %v3917_v30 = vpack.c.bf16 %v2708_v26, %v2708_v26  ;;  %v2268_v31 = vadd.f32 %v2267_v28, %v1732_v27  ;;  %v4516_v29 = vld [vmem:[%s5817_s0 + $0x390] ss:$12 sps:$4 sm:$0xff]   ;;  %v4522_v32 = vld [vmem:[%s5817_s0 + $0x3ac] ss:$12 sps:$4 sm:$0xff]  }
 0x134   : > { %v1734_v33 = vpop.f32.mrf.mxu0  ;;  %v2270_v38 = vpop.f32.mrf.mxu1 }
 0x135   : > { %3335 = vst.msk [vmem:[%s4991_s29 + $0x4c] sm:$0xf] %vm3315_vm2, %v3917_v30  ;;  %v2709_v35 = vmax.f32 %v2268_v31, 0.0  ;;  %v1735_v36 = vadd.f32 %v4971_v21, %v1734_v33 }
 0x136   : > { %v1736_v39 = vpop.f32.mrf.mxu0  ;;  %v4135_v43 = vpop.f32.mrf.mxu1 }
 0x137   : > { %v3918_v41 = vpack.c.bf16 %v2709_v35, %v2709_v35  ;;  %v2271_v42 = vadd.f32 %v2270_v38, %v1735_v36  ;;  %v4519_v35 = vld [vmem:[%s5817_s0 + $0x398] ss:$12 sps:$4 sm:$0xff]  }
 0x138   : > { %v1739_v44 = vpop.f32.mrf.mxu0  ;;  %1930 = vmatmul.mubr.bf16.gmra.mxu0 %v4504_v34  ;;  %v2275_v47 = vpop.f32.mrf.mxu1  ;;  %4233 = vmatmul.mubr.msk.bf16.gmra.mxu1 %vm1421_vm1, %v4507_v40 }
 0x139   : > { %3336 = vst.msk [vmem:[%s4991_s29 + $0x50] sm:$0xf] %vm3315_vm2, %v3918_v41  ;;  %v2710_v45 = vmax.f32 %v2271_v42, 0.0  ;;  %v1740_v46 = vadd.f32 %v4971_v21, %v1739_v44  ;;  %1937 = vmatprep.mubr.bf16.mxu0 %v4510_v37  ;;  %4236 = vmatprep.mubr.msk.bf16.mxu1 %vm4626_vm0, %v4625_v0 }
 0x13a   : > { %v1741_v48 = vpop.f32.mrf.mxu0  ;;  %v4138_v51 = vpop.f32.mrf.mxu1 }
 0x13b   : > { %v3919_v49 = vpack.c.bf16 %v2710_v45, %v2710_v45  ;;  %v2276_v50 = vadd.f32 %v2275_v47, %v1740_v46  ;;  %v4520_v48 = vld [vmem:[%s5817_s0 + $0x3a8] ss:$12 sps:$4 sm:$0xff]   ;;  %v4526_v51 = vld [vmem:[%s5817_s0 + $0x3c4] ss:$12 sps:$4 sm:$0xff]  }
 0x13c   : > { %v1742_v52 = vpop.f32.mrf.mxu0  ;;  %v2278_v57 = vpop.f32.mrf.mxu1 }
 0x13d   : > { %3337 = vst.msk [vmem:[%s4991_s29 + $0x54] sm:$0xf] %vm3315_vm2, %v3919_v49  ;;  %v2711_v54 = vmax.f32 %v2276_v50, 0.0  ;;  %v1743_v55 = vadd.f32 %v4971_v21, %v1742_v52 }
 0x13e   : > { %v1744_v58 = vpop.f32.mrf.mxu0  ;;  %v4139_v62 = vpop.f32.mrf.mxu1 }
 0x13f   : > { %v3920_v60 = vpack.c.bf16 %v2711_v54, %v2711_v54  ;;  %v2279_v61 = vadd.f32 %v2278_v57, %v1743_v55  ;;  %v4523_v54 = vld [vmem:[%s5817_s0 + $0x3b0] ss:$12 sps:$4 sm:$0xff]  }
 0x140   : > { %v1747_v63 = vpop.f32.mrf.mxu0  ;;  %1938 = vmatmul.mubr.bf16.gmra.mxu0 %v4508_v53  ;;  %v2283_v3 = vpop.f32.mrf.mxu1  ;;  %4237 = vmatmul.mubr.msk.bf16.gmra.mxu1 %vm1421_vm1, %v4511_v59 }
 0x141   : > { %3338 = vst.msk [vmem:[%s4991_s29 + $0x58] sm:$0xf] %vm3315_vm2, %v3920_v60  ;;  %v2712_v1 = vmax.f32 %v2279_v61, 0.0  ;;  %v1748_v2 = vadd.f32 %v4971_v21, %v1747_v63  ;;  %1945 = vmatprep.mubr.bf16.mxu0 %v4514_v56  ;;  %4240 = vmatprep.mubr.msk.bf16.mxu1 %vm4626_vm0, %v4625_v0 }
 0x142   : > { %v1749_v4 = vpop.f32.mrf.mxu0  ;;  %v4142_v7 = vpop.f32.mrf.mxu1 }
 0x143   : > { %v3921_v5 = vpack.c.bf16 %v2712_v1, %v2712_v1  ;;  %v2284_v6 = vadd.f32 %v2283_v3, %v1748_v2  ;;  %v4524_v4 = vld [vmem:[%s5817_s0 + $0x3c0] ss:$12 sps:$4 sm:$0xff]   ;;  %v4530_v7 = vld [vmem:[%s5817_s0 + $0x3dc] ss:$12 sps:$4 sm:$0xff]  }
 0x144   : > { %v1750_v8 = vpop.f32.mrf.mxu0  ;;  %v2286_v13 = vpop.f32.mrf.mxu1 }
 0x145   : > { %3339 = vst.msk [vmem:[%s4991_s29 + $0x5c] sm:$0xf] %vm3315_vm2, %v3921_v5  ;;  %v2713_v10 = vmax.f32 %v2284_v6, 0.0  ;;  %v1751_v11 = vadd.f32 %v4971_v21, %v1750_v8 }
 0x146   : > { %v1752_v14 = vpop.f32.mrf.mxu0  ;;  %v4143_v18 = vpop.f32.mrf.mxu1 }
 0x147   : > { %v3922_v16 = vpack.c.bf16 %v2713_v10, %v2713_v10  ;;  %v2287_v17 = vadd.f32 %v2286_v13, %v1751_v11  ;;  %v4527_v10 = vld [vmem:[%s5817_s0 + $0x3c8] ss:$12 sps:$4 sm:$0xff]  }
 0x148   : > { %v1755_v19 = vpop.f32.mrf.mxu0  ;;  %1946 = vmatmul.mubr.bf16.gmra.mxu0 %v4512_v9  ;;  %v2291_v23 = vpop.f32.mrf.mxu1  ;;  %4241 = vmatmul.mubr.msk.bf16.gmra.mxu1 %vm1421_vm1, %v4515_v15 }
 0x149   : > { %3340 = vst.msk [vmem:[%s4991_s29 + $0x60] sm:$0xf] %vm3315_vm2, %v3922_v16  ;;  %v2714_v20 = vmax.f32 %v2287_v17, 0.0  ;;  %v1756_v22 = vadd.f32 %v4971_v21, %v1755_v19  ;;  %1953 = vmatprep.mubr.bf16.mxu0 %v4518_v12  ;;  %4244 = vmatprep.mubr.msk.bf16.mxu1 %vm4626_vm0, %v4625_v0 }
 0x14a   : > { %v1757_v24 = vpop.f32.mrf.mxu0  ;;  %v4146_v27 = vpop.f32.mrf.mxu1 }
 0x14b   : > { %v3923_v25 = vpack.c.bf16 %v2714_v20, %v2714_v20  ;;  %v2292_v26 = vadd.f32 %v2291_v23, %v1756_v22  ;;  %v4528_v24 = vld [vmem:[%s5817_s0 + $0x3d8] ss:$12 sps:$4 sm:$0xff]   ;;  %v4534_v27 = vld [vmem:[%s5817_s0 + $0x3f4] ss:$12 sps:$4 sm:$0xff]  }
 0x14c   : > { %v1758_v28 = vpop.f32.mrf.mxu0  ;;  %v2294_v33 = vpop.f32.mrf.mxu1 }
 0x14d   : > { %3341 = vst.msk [vmem:[%s4991_s29 + $0x64] sm:$0xf] %vm3315_vm2, %v3923_v25  ;;  %v2715_v30 = vmax.f32 %v2292_v26, 0.0  ;;  %v1759_v31 = vadd.f32 %v4971_v21, %v1758_v28 }
 0x14e   : > { %v1760_v34 = vpop.f32.mrf.mxu0  ;;  %v4147_v38 = vpop.f32.mrf.mxu1 }
 0x14f   : > { %v3924_v36 = vpack.c.bf16 %v2715_v30, %v2715_v30  ;;  %v2295_v37 = vadd.f32 %v2294_v33, %v1759_v31  ;;  %v4531_v30 = vld [vmem:[%s5817_s0 + $0x3e0] ss:$12 sps:$4 sm:$0xff]  }
 0x150   : > { %v1763_v39 = vpop.f32.mrf.mxu0  ;;  %1954 = vmatmul.mubr.bf16.gmra.mxu0 %v4516_v29  ;;  %v2299_v42 = vpop.f32.mrf.mxu1  ;;  %4245 = vmatmul.mubr.msk.bf16.gmra.mxu1 %vm1421_vm1, %v4519_v35 }
 0x151   : > { %3342 = vst.msk [vmem:[%s4991_s29 + $0x68] sm:$0xf] %vm3315_vm2, %v3924_v36  ;;  %v2716_v40 = vmax.f32 %v2295_v37, 0.0  ;;  %v1764_v41 = vadd.f32 %v4971_v21, %v1763_v39  ;;  %1961 = vmatprep.mubr.bf16.mxu0 %v4522_v32  ;;  %4248 = vmatprep.mubr.msk.bf16.mxu1 %vm4626_vm0, %v4625_v0 }
 0x152   : > { %v1765_v43 = vpop.f32.mrf.mxu0  ;;  %v4150_v46 = vpop.f32.mrf.mxu1 }
 0x153   : > { %v3925_v44 = vpack.c.bf16 %v2716_v40, %v2716_v40  ;;  %v2300_v45 = vadd.f32 %v2299_v42, %v1764_v41  ;;  %v4532_v43 = vld [vmem:[%s5817_s0 + $0x3f0] ss:$12 sps:$4 sm:$0xff]   ;;  %v4538_v46 = vld [vmem:[%s5817_s0 + $0x40c] ss:$12 sps:$4 sm:$0xff]  }
 0x154   : > { %v1766_v47 = vpop.f32.mrf.mxu0  ;;  %v2302_v52 = vpop.f32.mrf.mxu1 }
 0x155   : > { %3343 = vst.msk [vmem:[%s4991_s29 + $0x6c] sm:$0xf] %vm3315_vm2, %v3925_v44  ;;  %v2717_v49 = vmax.f32 %v2300_v45, 0.0  ;;  %v1767_v50 = vadd.f32 %v4971_v21, %v1766_v47 }
 0x156   : > { %v1768_v53 = vpop.f32.mrf.mxu0  ;;  %v4151_v57 = vpop.f32.mrf.mxu1 }
 0x157   : > { %v3926_v55 = vpack.c.bf16 %v2717_v49, %v2717_v49  ;;  %v2303_v56 = vadd.f32 %v2302_v52, %v1767_v50  ;;  %v4535_v49 = vld [vmem:[%s5817_s0 + $0x3f8] ss:$12 sps:$4 sm:$0xff]  }
 0x158   : > { %v1771_v58 = vpop.f32.mrf.mxu0  ;;  %1962 = vmatmul.mubr.bf16.gmra.mxu0 %v4520_v48  ;;  %v2307_v61 = vpop.f32.mrf.mxu1  ;;  %4249 = vmatmul.mubr.msk.bf16.gmra.mxu1 %vm1421_vm1, %v4523_v54 }
 0x159   : > { %3344 = vst.msk [vmem:[%s4991_s29 + $0x70] sm:$0xf] %vm3315_vm2, %v3926_v55  ;;  %v2718_v59 = vmax.f32 %v2303_v56, 0.0  ;;  %v1772_v60 = vadd.f32 %v4971_v21, %v1771_v58  ;;  %1969 = vmatprep.mubr.bf16.mxu0 %v4526_v51  ;;  %4252 = vmatprep.mubr.msk.bf16.mxu1 %vm4626_vm0, %v4625_v0 }
 0x15a   : > { %v1773_v62 = vpop.f32.mrf.mxu0  ;;  %v4154_v2 = vpop.f32.mrf.mxu1 }
 0x15b   : > { %v3927_v63 = vpack.c.bf16 %v2718_v59, %v2718_v59  ;;  %v2308_v1 = vadd.f32 %v2307_v61, %v1772_v60  ;;  %v4536_v62 = vld [vmem:[%s5817_s0 + $0x408] ss:$12 sps:$4 sm:$0xff]   ;;  %v4542_v2 = vld [vmem:[%s5817_s0 + $0x424] ss:$12 sps:$4 sm:$0xff]  }
 0x15c   : > { %v1774_v3 = vpop.f32.mrf.mxu0  ;;  %v2310_v8 = vpop.f32.mrf.mxu1 }
 0x15d   : > { %3345 = vst.msk [vmem:[%s4991_s29 + $0x74] sm:$0xf] %vm3315_vm2, %v3927_v63  ;;  %v2719_v5 = vmax.f32 %v2308_v1, 0.0  ;;  %v1775_v6 = vadd.f32 %v4971_v21, %v1774_v3 }
 0x15e   : > { %v1776_v9 = vpop.f32.mrf.mxu0  ;;  %v4155_v13 = vpop.f32.mrf.mxu1 }
 0x15f   : > { %v3928_v11 = vpack.c.bf16 %v2719_v5, %v2719_v5  ;;  %v2311_v12 = vadd.f32 %v2310_v8, %v1775_v6  ;;  %v4539_v5 = vld [vmem:[%s5817_s0 + $0x410] ss:$12 sps:$4 sm:$0xff]  }
 0x160   : > { %v1779_v14 = vpop.f32.mrf.mxu0  ;;  %1970 = vmatmul.mubr.bf16.gmra.mxu0 %v4524_v4  ;;  %v2315_v17 = vpop.f32.mrf.mxu1  ;;  %4253 = vmatmul.mubr.msk.bf16.gmra.mxu1 %vm1421_vm1, %v4527_v10 }
 0x161   : > { %3346 = vst.msk [vmem:[%s4991_s29 + $0x78] sm:$0xf] %vm3315_vm2, %v3928_v11  ;;  %v2720_v15 = vmax.f32 %v2311_v12, 0.0  ;;  %v1780_v16 = vadd.f32 %v4971_v21, %v1779_v14  ;;  %1977 = vmatprep.mubr.bf16.mxu0 %v4530_v7  ;;  %4256 = vmatprep.mubr.msk.bf16.mxu1 %vm4626_vm0, %v4625_v0 }
 0x162   : > { %v1781_v18 = vpop.f32.mrf.mxu0  ;;  %v4158_v22 = vpop.f32.mrf.mxu1 }
 0x163   : > { %v3929_v19 = vpack.c.bf16 %v2720_v15, %v2720_v15  ;;  %v2316_v20 = vadd.f32 %v2315_v17, %v1780_v16  ;;  %v4540_v18 = vld [vmem:[%s5817_s0 + $0x420] ss:$12 sps:$4 sm:$0xff]   ;;  %v4546_v22 = vld [vmem:[%s5817_s0 + $0x43c] ss:$12 sps:$4 sm:$0xff]  }
 0x164   : > { %v1782_v23 = vpop.f32.mrf.mxu0  ;;  %v2318_v28 = vpop.f32.mrf.mxu1 }
 0x165   : > { %3347 = vst.msk [vmem:[%s4991_s29 + $0x7c] sm:$0xf] %vm3315_vm2, %v3929_v19  ;;  %v2721_v25 = vmax.f32 %v2316_v20, 0.0  ;;  %v1783_v26 = vadd.f32 %v4971_v21, %v1782_v23 }
 0x166   : > { %v1784_v29 = vpop.f32.mrf.mxu0  ;;  %v4159_v33 = vpop.f32.mrf.mxu1 }
 0x167   : > { %v3930_v31 = vpack.c.bf16 %v2721_v25, %v2721_v25  ;;  %v2319_v32 = vadd.f32 %v2318_v28, %v1783_v26  ;;  %v4543_v25 = vld [vmem:[%s5817_s0 + $0x428] ss:$12 sps:$4 sm:$0xff]  }
 0x168   : > { %v1787_v34 = vpop.f32.mrf.mxu0  ;;  %1978 = vmatmul.mubr.bf16.gmra.mxu0 %v4528_v24  ;;  %v2323_v37 = vpop.f32.mrf.mxu1  ;;  %4257 = vmatmul.mubr.msk.bf16.gmra.mxu1 %vm1421_vm1, %v4531_v30 }
 0x169   : > { %3348 = vst.msk [vmem:[%s4991_s29 + $0x80] sm:$0xf] %vm3315_vm2, %v3930_v31  ;;  %v2722_v35 = vmax.f32 %v2319_v32, 0.0  ;;  %v1788_v36 = vadd.f32 %v4971_v21, %v1787_v34  ;;  %1985 = vmatprep.mubr.bf16.mxu0 %v4534_v27  ;;  %4260 = vmatprep.mubr.msk.bf16.mxu1 %vm4626_vm0, %v4625_v0 }
 0x16a   : > { %v1789_v38 = vpop.f32.mrf.mxu0  ;;  %v4162_v41 = vpop.f32.mrf.mxu1 }
 0x16b   : > { %v3931_v39 = vpack.c.bf16 %v2722_v35, %v2722_v35  ;;  %v2324_v40 = vadd.f32 %v2323_v37, %v1788_v36  ;;  %v4544_v38 = vld [vmem:[%s5817_s0 + $0x438] ss:$12 sps:$4 sm:$0xff]   ;;  %v4550_v41 = vld [vmem:[%s5817_s0 + $0x454] ss:$12 sps:$4 sm:$0xff]  }
 0x16c   : > { %v1790_v42 = vpop.f32.mrf.mxu0  ;;  %v2326_v47 = vpop.f32.mrf.mxu1 }
 0x16d   : > { %3349 = vst.msk [vmem:[%s4991_s29 + $0x84] sm:$0xf] %vm3315_vm2, %v3931_v39  ;;  %v2723_v44 = vmax.f32 %v2324_v40, 0.0  ;;  %v1791_v45 = vadd.f32 %v4971_v21, %v1790_v42  ;;  %v5350_v39 = vld [vmem:[%s4962_s16] ss:$0 sm:$0xff] }
 0x16e   : > { %v1792_v48 = vpop.f32.mrf.mxu0  ;;  %v4163_v52 = vpop.f32.mrf.mxu1 }
 0x16f   : > { %v3932_v50 = vpack.c.bf16 %v2723_v44, %v2723_v44  ;;  %v2327_v51 = vadd.f32 %v2326_v47, %v1791_v45  ;;  %v4547_v44 = vld [vmem:[%s5817_s0 + $0x440] ss:$12 sps:$4 sm:$0xff]  }
 0x170   : > { %v1795_v53 = vpop.f32.mrf.mxu0  ;;  %1986 = vmatmul.mubr.bf16.gmra.mxu0 %v4532_v43  ;;  %v2331_v56 = vpop.f32.mrf.mxu1  ;;  %4261 = vmatmul.mubr.msk.bf16.gmra.mxu1 %vm1421_vm1, %v4535_v49 }
 0x171   : > { %3350 = vst.msk [vmem:[%s4991_s29 + $0x88] sm:$0xf] %vm3315_vm2, %v3932_v50  ;;  %v2724_v54 = vmax.f32 %v2327_v51, 0.0  ;;  %v1796_v55 = vadd.f32 %v4971_v21, %v1795_v53  ;;  %1993 = vmatprep.mubr.bf16.mxu0 %v4538_v46  ;;  %4264 = vmatprep.mubr.msk.bf16.mxu1 %vm4626_vm0, %v4625_v0 }
 0x172   : > { %v1797_v57 = vpop.f32.mrf.mxu0  ;;  %v4166_v60 = vpop.f32.mrf.mxu1 }
 0x173   : > { %v3933_v58 = vpack.c.bf16 %v2724_v54, %v2724_v54  ;;  %v2332_v59 = vadd.f32 %v2331_v56, %v1796_v55  ;;  %v4548_v57 = vld [vmem:[%s5817_s0 + $0x450] ss:$12 sps:$4 sm:$0xff]   ;;  %v4554_v60 = vld [vmem:[%s5817_s0 + $0x46c] ss:$12 sps:$4 sm:$0xff]  }
 0x174   : > { %v1798_v61 = vpop.f32.mrf.mxu0  ;;  %v2334_v3 = vpop.f32.mrf.mxu1 }
 0x175   : > { %3351 = vst.msk [vmem:[%s4991_s29 + $0x8c] sm:$0xf] %vm3315_vm2, %v3933_v58  ;;  %v2725_v63 = vmax.f32 %v2332_v59, 0.0  ;;  %v1799_v1 = vadd.f32 %v4971_v21, %v1798_v61 }
 0x176   : > { %v1800_v4 = vpop.f32.mrf.mxu0  ;;  %v4167_v8 = vpop.f32.mrf.mxu1 }
 0x177   : > { %v3934_v6 = vpack.c.bf16 %v2725_v63, %v2725_v63  ;;  %v2335_v7 = vadd.f32 %v2334_v3, %v1799_v1  ;;  %v4551_v63 = vld [vmem:[%s5817_s0 + $0x458] ss:$12 sps:$4 sm:$0xff]  }
 0x178   : > { %v1803_v9 = vpop.f32.mrf.mxu0  ;;  %1994 = vmatmul.mubr.bf16.gmra.mxu0 %v4536_v62  ;;  %v2339_v12 = vpop.f32.mrf.mxu1  ;;  %4265 = vmatmul.mubr.msk.bf16.gmra.mxu1 %vm1421_vm1, %v4539_v5 }
 0x179   : > { %3352 = vst.msk [vmem:[%s4991_s29 + $0x90] sm:$0xf] %vm3315_vm2, %v3934_v6  ;;  %v2726_v10 = vmax.f32 %v2335_v7, 0.0  ;;  %v1804_v11 = vadd.f32 %v4971_v21, %v1803_v9  ;;  %2001 = vmatprep.mubr.bf16.mxu0 %v4542_v2  ;;  %4268 = vmatprep.mubr.msk.bf16.mxu1 %vm4626_vm0, %v4625_v0 }
 0x17a   : > { %v1805_v13 = vpop.f32.mrf.mxu0  ;;  %v4170_v16 = vpop.f32.mrf.mxu1 }
 0x17b   : > { %v3935_v14 = vpack.c.bf16 %v2726_v10, %v2726_v10  ;;  %v2340_v15 = vadd.f32 %v2339_v12, %v1804_v11  ;;  %v4552_v13 = vld [vmem:[%s5817_s0 + $0x468] ss:$12 sps:$4 sm:$0xff]   ;;  %v4558_v16 = vld [vmem:[%s5817_s0 + $0x484] ss:$12 sps:$4 sm:$0xff]  }
 0x17c   : > { %v1806_v17 = vpop.f32.mrf.mxu0  ;;  %v2342_v23 = vpop.f32.mrf.mxu1 }
 0x17d   : > { %3353 = vst.msk [vmem:[%s4991_s29 + $0x94] sm:$0xf] %vm3315_vm2, %v3935_v14  ;;  %v2727_v19 = vmax.f32 %v2340_v15, 0.0  ;;  %v1807_v20 = vadd.f32 %v4971_v21, %v1806_v17 }
 0x17e   : > { %v1808_v24 = vpop.f32.mrf.mxu0  ;;  %v4171_v28 = vpop.f32.mrf.mxu1 }
 0x17f   : > { %v3936_v26 = vpack.c.bf16 %v2727_v19, %v2727_v19  ;;  %v2343_v27 = vadd.f32 %v2342_v23, %v1807_v20  ;;  %v4555_v19 = vld [vmem:[%s5817_s0 + $0x470] ss:$12 sps:$4 sm:$0xff]  }
 0x180   : > { %v1811_v29 = vpop.f32.mrf.mxu0  ;;  %2002 = vmatmul.mubr.bf16.gmra.mxu0 %v4540_v18  ;;  %v2347_v32 = vpop.f32.mrf.mxu1  ;;  %4269 = vmatmul.mubr.msk.bf16.gmra.mxu1 %vm1421_vm1, %v4543_v25 }
 0x181   : > { %3354 = vst.msk [vmem:[%s4991_s29 + $0x98] sm:$0xf] %vm3315_vm2, %v3936_v26  ;;  %v2728_v30 = vmax.f32 %v2343_v27, 0.0  ;;  %v1812_v31 = vadd.f32 %v4971_v21, %v1811_v29  ;;  %2009 = vmatprep.mubr.bf16.mxu0 %v4546_v22  ;;  %4272 = vmatprep.mubr.msk.bf16.mxu1 %vm4626_vm0, %v4625_v0 }
 0x182   : > { %v1813_v33 = vpop.f32.mrf.mxu0  ;;  %v4174_v36 = vpop.f32.mrf.mxu1 }
 0x183   : > { %v3937_v34 = vpack.c.bf16 %v2728_v30, %v2728_v30  ;;  %v2348_v35 = vadd.f32 %v2347_v32, %v1812_v31  ;;  %v4556_v33 = vld [vmem:[%s5817_s0 + $0x480] ss:$12 sps:$4 sm:$0xff]   ;;  %v4562_v36 = vld [vmem:[%s5817_s0 + $0x49c] ss:$12 sps:$4 sm:$0xff]  }
 0x184   : > { %v1814_v37 = vpop.f32.mrf.mxu0  ;;  %v2350_v42 = vpop.f32.mrf.mxu1 }
 0x185   : > { %3355 = vst.msk [vmem:[%s4991_s29 + $0x9c] sm:$0xf] %vm3315_vm2, %v3937_v34  ;;  %v2729_v21 = vmax.f32 %v2348_v35, 0.0  ;;  %v1815_v40 = vadd.f32 %v5350_v39, %v1814_v37 }
 0x186   : > { %v1816_v43 = vpop.f32.mrf.mxu0  ;;  %v4175_v47 = vpop.f32.mrf.mxu1 }
 0x187   : > { %v3938_v45 = vpack.c.bf16 %v2729_v21, %v2729_v21  ;;  %v2351_v46 = vadd.f32 %v2350_v42, %v1815_v40  ;;  %v4559_v21 = vld [vmem:[%s5817_s0 + $0x488] ss:$12 sps:$4 sm:$0xff]  }
 0x188   : > { %v1819_v48 = vpop.f32.mrf.mxu0  ;;  %2010 = vmatmul.mubr.bf16.gmra.mxu0 %v4544_v38  ;;  %v2355_v51 = vpop.f32.mrf.mxu1  ;;  %4273 = vmatmul.mubr.msk.bf16.gmra.mxu1 %vm1421_vm1, %v4547_v44 }
 0x189   : > { %3356 = vst.msk [vmem:[%s4991_s29 + $0xa0] sm:$0xf] %vm3315_vm2, %v3938_v45  ;;  %v2730_v49 = vmax.f32 %v2351_v46, 0.0  ;;  %v1820_v50 = vadd.f32 %v5350_v39, %v1819_v48  ;;  %2017 = vmatprep.mubr.bf16.mxu0 %v4550_v41  ;;  %4276 = vmatprep.mubr.msk.bf16.mxu1 %vm4626_vm0, %v4625_v0 }
 0x18a   : > { %v1821_v52 = vpop.f32.mrf.mxu0  ;;  %v4178_v55 = vpop.f32.mrf.mxu1 }
 0x18b   : > { %v3939_v53 = vpack.c.bf16 %v2730_v49, %v2730_v49  ;;  %v2356_v54 = vadd.f32 %v2355_v51, %v1820_v50  ;;  %v4560_v52 = vld [vmem:[%s5817_s0 + $0x498] ss:$12 sps:$4 sm:$0xff]   ;;  %v4566_v55 = vld [vmem:[%s5817_s0 + $0x4b4] ss:$12 sps:$4 sm:$0xff]  }
 0x18c   : > { %v1822_v56 = vpop.f32.mrf.mxu0  ;;  %v2358_v61 = vpop.f32.mrf.mxu1 }
 0x18d   : > { %3357 = vst.msk [vmem:[%s4991_s29 + $0xa4] sm:$0xf] %vm3315_vm2, %v3939_v53  ;;  %v2731_v58 = vmax.f32 %v2356_v54, 0.0  ;;  %v1823_v59 = vadd.f32 %v5350_v39, %v1822_v56 }
 0x18e   : > { %v1824_v62 = vpop.f32.mrf.mxu0  ;;  %v4179_v3 = vpop.f32.mrf.mxu1 }
 0x18f   : > { %v3940_v1 = vpack.c.bf16 %v2731_v58, %v2731_v58  ;;  %v2359_v2 = vadd.f32 %v2358_v61, %v1823_v59  ;;  %v4563_v58 = vld [vmem:[%s5817_s0 + $0x4a0] ss:$12 sps:$4 sm:$0xff]  }
 0x190   : > { %v1827_v4 = vpop.f32.mrf.mxu0  ;;  %2018 = vmatmul.mubr.bf16.gmra.mxu0 %v4548_v57  ;;  %v2363_v7 = vpop.f32.mrf.mxu1  ;;  %4277 = vmatmul.mubr.msk.bf16.gmra.mxu1 %vm1421_vm1, %v4551_v63 }
 0x191   : > { %3358 = vst.msk [vmem:[%s4991_s29 + $0xa8] sm:$0xf] %vm3315_vm2, %v3940_v1  ;;  %v2732_v5 = vmax.f32 %v2359_v2, 0.0  ;;  %v1828_v6 = vadd.f32 %v5350_v39, %v1827_v4  ;;  %2025 = vmatprep.mubr.bf16.mxu0 %v4554_v60  ;;  %4280 = vmatprep.mubr.msk.bf16.mxu1 %vm4626_vm0, %v4625_v0 }
 0x192   : > { %v1829_v8 = vpop.f32.mrf.mxu0  ;;  %v4182_v11 = vpop.f32.mrf.mxu1 }
 0x193   : > { %v3941_v9 = vpack.c.bf16 %v2732_v5, %v2732_v5  ;;  %v2364_v10 = vadd.f32 %v2363_v7, %v1828_v6  ;;  %v4564_v8 = vld [vmem:[%s5817_s0 + $0x4b0] ss:$12 sps:$4 sm:$0xff]   ;;  %v4570_v11 = vld [vmem:[%s5817_s0 + $0x4cc] ss:$12 sps:$4 sm:$0xff]  }
 0x194   : > { %v1830_v12 = vpop.f32.mrf.mxu0  ;;  %v2366_v17 = vpop.f32.mrf.mxu1 }
 0x195   : > { %3359 = vst.msk [vmem:[%s4991_s29 + $0xac] sm:$0xf] %vm3315_vm2, %v3941_v9  ;;  %v2733_v14 = vmax.f32 %v2364_v10, 0.0  ;;  %v1831_v15 = vadd.f32 %v5350_v39, %v1830_v12 }
 0x196   : > { %v1832_v18 = vpop.f32.mrf.mxu0  ;;  %v4183_v23 = vpop.f32.mrf.mxu1 }
 0x197   : > { %v3942_v20 = vpack.c.bf16 %v2733_v14, %v2733_v14  ;;  %v2367_v22 = vadd.f32 %v2366_v17, %v1831_v15  ;;  %v4567_v14 = vld [vmem:[%s5817_s0 + $0x4b8] ss:$12 sps:$4 sm:$0xff]  }
 0x198   : > { %v1835_v24 = vpop.f32.mrf.mxu0  ;;  %2026 = vmatmul.mubr.bf16.gmra.mxu0 %v4552_v13  ;;  %v2371_v27 = vpop.f32.mrf.mxu1  ;;  %4281 = vmatmul.mubr.msk.bf16.gmra.mxu1 %vm1421_vm1, %v4555_v19 }
 0x199   : > { %3360 = vst.msk [vmem:[%s4991_s29 + $0xb0] sm:$0xf] %vm3315_vm2, %v3942_v20  ;;  %v2734_v25 = vmax.f32 %v2367_v22, 0.0  ;;  %v1836_v26 = vadd.f32 %v5350_v39, %v1835_v24  ;;  %2033 = vmatprep.mubr.bf16.mxu0 %v4558_v16  ;;  %4284 = vmatprep.mubr.msk.bf16.mxu1 %vm4626_vm0, %v4625_v0 }
 0x19a   : > { %v1837_v28 = vpop.f32.mrf.mxu0  ;;  %v4186_v31 = vpop.f32.mrf.mxu1 }
 0x19b   : > { %v3943_v29 = vpack.c.bf16 %v2734_v25, %v2734_v25  ;;  %v2372_v30 = vadd.f32 %v2371_v27, %v1836_v26  ;;  %v4568_v28 = vld [vmem:[%s5817_s0 + $0x4c8] ss:$12 sps:$4 sm:$0xff]   ;;  %v4574_v31 = vld [vmem:[%s5817_s0 + $0x4e4] ss:$12 sps:$4 sm:$0xff]  }
 0x19c   : > { %v1838_v32 = vpop.f32.mrf.mxu0  ;;  %v2374_v37 = vpop.f32.mrf.mxu1 }
 0x19d   : > { %3361 = vst.msk [vmem:[%s4991_s29 + $0xb4] sm:$0xf] %vm3315_vm2, %v3943_v29  ;;  %v2735_v34 = vmax.f32 %v2372_v30, 0.0  ;;  %v1839_v35 = vadd.f32 %v5350_v39, %v1838_v32 }
 0x19e   : > { %v1840_v38 = vpop.f32.mrf.mxu0  ;;  %v4187_v42 = vpop.f32.mrf.mxu1 }
 0x19f   : > { %v3944_v40 = vpack.c.bf16 %v2735_v34, %v2735_v34  ;;  %v2375_v41 = vadd.f32 %v2374_v37, %v1839_v35  ;;  %v4571_v34 = vld [vmem:[%s5817_s0 + $0x4d0] ss:$12 sps:$4 sm:$0xff]  }
 0x1a0   : > { %v1843_v43 = vpop.f32.mrf.mxu0  ;;  %2034 = vmatmul.mubr.bf16.gmra.mxu0 %v4556_v33  ;;  %v2379_v46 = vpop.f32.mrf.mxu1  ;;  %4285 = vmatmul.mubr.msk.bf16.gmra.mxu1 %vm1421_vm1, %v4559_v21 }
 0x1a1   : > { %3362 = vst.msk [vmem:[%s4991_s29 + $0xb8] sm:$0xf] %vm3315_vm2, %v3944_v40  ;;  %v2736_v44 = vmax.f32 %v2375_v41, 0.0  ;;  %v1844_v45 = vadd.f32 %v5350_v39, %v1843_v43  ;;  %2041 = vmatprep.mubr.bf16.mxu0 %v4562_v36  ;;  %4288 = vmatprep.mubr.msk.bf16.mxu1 %vm4626_vm0, %v4625_v0 }
 0x1a2   : > { %v1845_v47 = vpop.f32.mrf.mxu0  ;;  %v4190_v50 = vpop.f32.mrf.mxu1 }
 0x1a3   : > { %v3945_v48 = vpack.c.bf16 %v2736_v44, %v2736_v44  ;;  %v2380_v49 = vadd.f32 %v2379_v46, %v1844_v45  ;;  %v4572_v47 = vld [vmem:[%s5817_s0 + $0x4e0] ss:$12 sps:$4 sm:$0xff]   ;;  %v4578_v50 = vld [vmem:[%s5817_s0 + $0x4fc] ss:$12 sps:$4 sm:$0xff]  }
 0x1a4   : > { %v1846_v51 = vpop.f32.mrf.mxu0  ;;  %v2382_v56 = vpop.f32.mrf.mxu1 }
 0x1a5   : > { %3363 = vst.msk [vmem:[%s4991_s29 + $0xbc] sm:$0xf] %vm3315_vm2, %v3945_v48  ;;  %v2737_v53 = vmax.f32 %v2380_v49, 0.0  ;;  %v1847_v54 = vadd.f32 %v5350_v39, %v1846_v51 }
 0x1a6   : > { %v1848_v57 = vpop.f32.mrf.mxu0  ;;  %v4191_v61 = vpop.f32.mrf.mxu1 }
 0x1a7   : > { %v3946_v59 = vpack.c.bf16 %v2737_v53, %v2737_v53  ;;  %v2383_v60 = vadd.f32 %v2382_v56, %v1847_v54  ;;  %v4575_v53 = vld [vmem:[%s5817_s0 + $0x4e8] ss:$12 sps:$4 sm:$0xff]  }
 0x1a8   : > { %v1851_v62 = vpop.f32.mrf.mxu0  ;;  %2042 = vmatmul.mubr.bf16.gmra.mxu0 %v4560_v52  ;;  %v2387_v2 = vpop.f32.mrf.mxu1  ;;  %4289 = vmatmul.mubr.msk.bf16.gmra.mxu1 %vm1421_vm1, %v4563_v58 }
 0x1a9   : > { %3364 = vst.msk [vmem:[%s4991_s29 + $0xc0] sm:$0xf] %vm3315_vm2, %v3946_v59  ;;  %v2738_v63 = vmax.f32 %v2383_v60, 0.0  ;;  %v1852_v1 = vadd.f32 %v5350_v39, %v1851_v62  ;;  %2049 = vmatprep.mubr.bf16.mxu0 %v4566_v55  ;;  %4292 = vmatprep.mubr.msk.bf16.mxu1 %vm4626_vm0, %v4625_v0 }
 0x1aa   : > { %v1853_v3 = vpop.f32.mrf.mxu0  ;;  %v4194_v6 = vpop.f32.mrf.mxu1 }
 0x1ab   : > { %v3947_v4 = vpack.c.bf16 %v2738_v63, %v2738_v63  ;;  %v2388_v5 = vadd.f32 %v2387_v2, %v1852_v1  ;;  %v4576_v3 = vld [vmem:[%s5817_s0 + $0x4f8] ss:$12 sps:$4 sm:$0xff]   ;;  %v4582_v6 = vld [vmem:[%s5817_s0 + $0x514] ss:$12 sps:$4 sm:$0xff]  }
 0x1ac   : > { %v1854_v7 = vpop.f32.mrf.mxu0  ;;  %v2390_v12 = vpop.f32.mrf.mxu1 }
 0x1ad   : > { %3365 = vst.msk [vmem:[%s4991_s29 + $0xc4] sm:$0xf] %vm3315_vm2, %v3947_v4  ;;  %v2739_v9 = vmax.f32 %v2388_v5, 0.0  ;;  %v1855_v10 = vadd.f32 %v5350_v39, %v1854_v7 }
 0x1ae   : > { %v1856_v13 = vpop.f32.mrf.mxu0  ;;  %v4195_v17 = vpop.f32.mrf.mxu1 }
 0x1af   : > { %v3948_v15 = vpack.c.bf16 %v2739_v9, %v2739_v9  ;;  %v2391_v16 = vadd.f32 %v2390_v12, %v1855_v10  ;;  %v4579_v9 = vld [vmem:[%s5817_s0 + $0x500] ss:$12 sps:$4 sm:$0xff]  }
 0x1b0   : > { %v1859_v18 = vpop.f32.mrf.mxu0  ;;  %2050 = vmatmul.mubr.bf16.gmra.mxu0 %v4564_v8  ;;  %v2395_v22 = vpop.f32.mrf.mxu1  ;;  %4293 = vmatmul.mubr.msk.bf16.gmra.mxu1 %vm1421_vm1, %v4567_v14 }
 0x1b1   : > { %3366 = vst.msk [vmem:[%s4991_s29 + $0xc8] sm:$0xf] %vm3315_vm2, %v3948_v15  ;;  %v2740_v19 = vmax.f32 %v2391_v16, 0.0  ;;  %v1860_v20 = vadd.f32 %v5350_v39, %v1859_v18  ;;  %2057 = vmatprep.mubr.bf16.mxu0 %v4570_v11  ;;  %4296 = vmatprep.mubr.msk.bf16.mxu1 %vm4626_vm0, %v4625_v0 }
 0x1b2   : > { %v1861_v23 = vpop.f32.mrf.mxu0  ;;  %v4198_v26 = vpop.f32.mrf.mxu1 }
 0x1b3   : > { %v3949_v24 = vpack.c.bf16 %v2740_v19, %v2740_v19  ;;  %v2396_v25 = vadd.f32 %v2395_v22, %v1860_v20  ;;  %v4580_v23 = vld [vmem:[%s5817_s0 + $0x510] ss:$12 sps:$4 sm:$0xff]   ;;  %v4586_v26 = vld [vmem:[%s5817_s0 + $0x52c] ss:$12 sps:$4 sm:$0xff]  }
 0x1b4   : > { %v1862_v27 = vpop.f32.mrf.mxu0  ;;  %v2398_v32 = vpop.f32.mrf.mxu1 }
 0x1b5   : > { %3367 = vst.msk [vmem:[%s4991_s29 + $0xcc] sm:$0xf] %vm3315_vm2, %v3949_v24  ;;  %v2741_v29 = vmax.f32 %v2396_v25, 0.0  ;;  %v1863_v30 = vadd.f32 %v5350_v39, %v1862_v27 }
 0x1b6   : > { %v1864_v33 = vpop.f32.mrf.mxu0  ;;  %v4199_v37 = vpop.f32.mrf.mxu1 }
 0x1b7   : > { %v3950_v35 = vpack.c.bf16 %v2741_v29, %v2741_v29  ;;  %v2399_v36 = vadd.f32 %v2398_v32, %v1863_v30  ;;  %v4583_v29 = vld [vmem:[%s5817_s0 + $0x518] ss:$12 sps:$4 sm:$0xff]  }
 0x1b8   : > { %v1867_v38 = vpop.f32.mrf.mxu0  ;;  %2058 = vmatmul.mubr.bf16.gmra.mxu0 %v4568_v28  ;;  %v2403_v41 = vpop.f32.mrf.mxu1  ;;  %4297 = vmatmul.mubr.msk.bf16.gmra.mxu1 %vm1421_vm1, %v4571_v34 }
 0x1b9   : > { %3368 = vst.msk [vmem:[%s4991_s29 + $0xd0] sm:$0xf] %vm3315_vm2, %v3950_v35  ;;  %v2742_v21 = vmax.f32 %v2399_v36, 0.0  ;;  %v1868_v40 = vadd.f32 %v5350_v39, %v1867_v38  ;;  %2065 = vmatprep.mubr.bf16.mxu0 %v4574_v31  ;;  %4300 = vmatprep.mubr.msk.bf16.mxu1 %vm4626_vm0, %v4625_v0 }
 0x1ba   : > { %v1869_v42 = vpop.f32.mrf.mxu0  ;;  %v4202_v45 = vpop.f32.mrf.mxu1 }
 0x1bb   : > { %v3951_v43 = vpack.c.bf16 %v2742_v21, %v2742_v21  ;;  %v2404_v44 = vadd.f32 %v2403_v41, %v1868_v40  ;;  %v4584_v42 = vld [vmem:[%s5817_s0 + $0x528] ss:$12 sps:$4 sm:$0xff]   ;;  %v4590_v45 = vld [vmem:[%s5817_s0 + $0x544] ss:$12 sps:$4 sm:$0xff]  }
 0x1bc   : > { %v1870_v46 = vpop.f32.mrf.mxu0  ;;  %v2406_v51 = vpop.f32.mrf.mxu1 }
 0x1bd   : > { %3369 = vst.msk [vmem:[%s4991_s29 + $0xd4] sm:$0xf] %vm3315_vm2, %v3951_v43  ;;  %v2743_v48 = vmax.f32 %v2404_v44, 0.0  ;;  %v1871_v49 = vadd.f32 %v5350_v39, %v1870_v46 }
 0x1be   : > { %v1872_v52 = vpop.f32.mrf.mxu0  ;;  %v4203_v56 = vpop.f32.mrf.mxu1 }
 0x1bf   : > { %v3952_v54 = vpack.c.bf16 %v2743_v48, %v2743_v48  ;;  %v2407_v55 = vadd.f32 %v2406_v51, %v1871_v49  ;;  %v4587_v48 = vld [vmem:[%s5817_s0 + $0x530] ss:$12 sps:$4 sm:$0xff]  }
 0x1c0   : > { %v1875_v57 = vpop.f32.mrf.mxu0  ;;  %2066 = vmatmul.mubr.bf16.gmra.mxu0 %v4572_v47  ;;  %v2411_v60 = vpop.f32.mrf.mxu1  ;;  %4301 = vmatmul.mubr.msk.bf16.gmra.mxu1 %vm1421_vm1, %v4575_v53 }
 0x1c1   : > { %3370 = vst.msk [vmem:[%s4991_s29 + $0xd8] sm:$0xf] %vm3315_vm2, %v3952_v54  ;;  %v2744_v58 = vmax.f32 %v2407_v55, 0.0  ;;  %v1876_v59 = vadd.f32 %v5350_v39, %v1875_v57  ;;  %2073 = vmatprep.mubr.bf16.mxu0 %v4578_v50  ;;  %4304 = vmatprep.mubr.msk.bf16.mxu1 %vm4626_vm0, %v4625_v0 }
 0x1c2   : > { %v1877_v61 = vpop.f32.mrf.mxu0  ;;  %v4206_v1 = vpop.f32.mrf.mxu1 }
 0x1c3   : > { %v3953_v62 = vpack.c.bf16 %v2744_v58, %v2744_v58  ;;  %v2412_v63 = vadd.f32 %v2411_v60, %v1876_v59  ;;  %v4588_v61 = vld [vmem:[%s5817_s0 + $0x540] ss:$12 sps:$4 sm:$0xff]   ;;  %v4594_v1 = vld [vmem:[%s5817_s0 + $0x55c] ss:$12 sps:$4 sm:$0xff]  }
 0x1c4   : > { %v1878_v2 = vpop.f32.mrf.mxu0  ;;  %v2414_v7 = vpop.f32.mrf.mxu1 }
 0x1c5   : > { %3371 = vst.msk [vmem:[%s4991_s29 + $0xdc] sm:$0xf] %vm3315_vm2, %v3953_v62  ;;  %v2745_v4 = vmax.f32 %v2412_v63, 0.0  ;;  %v1879_v5 = vadd.f32 %v5350_v39, %v1878_v2 }
 0x1c6   : > { %v1880_v8 = vpop.f32.mrf.mxu0  ;;  %v4207_v12 = vpop.f32.mrf.mxu1 }
 0x1c7   : > { %v3954_v10 = vpack.c.bf16 %v2745_v4, %v2745_v4  ;;  %v2415_v11 = vadd.f32 %v2414_v7, %v1879_v5  ;;  %v4591_v4 = vld [vmem:[%s5817_s0 + $0x548] ss:$12 sps:$4 sm:$0xff]  }
 0x1c8   : > { %v1883_v13 = vpop.f32.mrf.mxu0  ;;  %2074 = vmatmul.mubr.bf16.gmra.mxu0 %v4576_v3  ;;  %v2419_v16 = vpop.f32.mrf.mxu1  ;;  %4305 = vmatmul.mubr.msk.bf16.gmra.mxu1 %vm1421_vm1, %v4579_v9 }
 0x1c9   : > { %3372 = vst.msk [vmem:[%s4991_s29 + $0xe0] sm:$0xf] %vm3315_vm2, %v3954_v10  ;;  %v2746_v14 = vmax.f32 %v2415_v11, 0.0  ;;  %v1884_v15 = vadd.f32 %v5350_v39, %v1883_v13  ;;  %2081 = vmatprep.mubr.bf16.mxu0 %v4582_v6  ;;  %4308 = vmatprep.mubr.msk.bf16.mxu1 %vm4626_vm0, %v4625_v0 }
 0x1ca   : > { %v1885_v17 = vpop.f32.mrf.mxu0  ;;  %v4210_v20 = vpop.f32.mrf.mxu1 }
 0x1cb   : > { %v3955_v18 = vpack.c.bf16 %v2746_v14, %v2746_v14  ;;  %v2420_v19 = vadd.f32 %v2419_v16, %v1884_v15  ;;  %v4592_v17 = vld [vmem:[%s5817_s0 + $0x558] ss:$12 sps:$4 sm:$0xff]   ;;  %v4598_v20 = vld [vmem:[%s5817_s0 + $0x574] ss:$12 sps:$4 sm:$0xff]  }
 0x1cc   : > { %v1886_v22 = vpop.f32.mrf.mxu0  ;;  %v2422_v27 = vpop.f32.mrf.mxu1 }
 0x1cd   : > { %3373 = vst.msk [vmem:[%s4991_s29 + $0xe4] sm:$0xf] %vm3315_vm2, %v3955_v18  ;;  %v2747_v24 = vmax.f32 %v2420_v19, 0.0  ;;  %v1887_v25 = vadd.f32 %v5350_v39, %v1886_v22 }
 0x1ce   : > { %v1888_v28 = vpop.f32.mrf.mxu0  ;;  %v4211_v32 = vpop.f32.mrf.mxu1 }
 0x1cf   : > { %v3956_v30 = vpack.c.bf16 %v2747_v24, %v2747_v24  ;;  %v2423_v31 = vadd.f32 %v2422_v27, %v1887_v25  ;;  %v4595_v24 = vld [vmem:[%s5817_s0 + $0x560] ss:$12 sps:$4 sm:$0xff]  }
 0x1d0   : > { %v1891_v33 = vpop.f32.mrf.mxu0  ;;  %2082 = vmatmul.mubr.bf16.gmra.mxu0 %v4580_v23  ;;  %v2427_v36 = vpop.f32.mrf.mxu1  ;;  %4309 = vmatmul.mubr.msk.bf16.gmra.mxu1 %vm1421_vm1, %v4583_v29 }
 0x1d1   : > { %3374 = vst.msk [vmem:[%s4991_s29 + $0xe8] sm:$0xf] %vm3315_vm2, %v3956_v30  ;;  %v2748_v34 = vmax.f32 %v2423_v31, 0.0  ;;  %v1892_v35 = vadd.f32 %v5350_v39, %v1891_v33  ;;  %2089 = vmatprep.mubr.bf16.mxu0 %v4586_v26  ;;  %4312 = vmatprep.mubr.msk.bf16.mxu1 %vm4626_vm0, %v4625_v0 }
 0x1d2   : > { %v1893_v37 = vpop.f32.mrf.mxu0  ;;  %v4214_v40 = vpop.f32.mrf.mxu1 }
 0x1d3   : > { %v3957_v38 = vpack.c.bf16 %v2748_v34, %v2748_v34  ;;  %v2428_v21 = vadd.f32 %v2427_v36, %v1892_v35  ;;  %v4596_v37 = vld [vmem:[%s5817_s0 + $0x570] ss:$12 sps:$4 sm:$0xff]   ;;  %v4602_v40 = vld [vmem:[%s5817_s0 + $0x58c] ss:$12 sps:$4 sm:$0xff]  }
 0x1d4   : > { %v1894_v41 = vpop.f32.mrf.mxu0  ;;  %v2430_v46 = vpop.f32.mrf.mxu1 }
 0x1d5   : > { %3375 = vst.msk [vmem:[%s4991_s29 + $0xec] sm:$0xf] %vm3315_vm2, %v3957_v38  ;;  %v2749_v43 = vmax.f32 %v2428_v21, 0.0  ;;  %v1895_v44 = vadd.f32 %v5350_v39, %v1894_v41 }
 0x1d6   : > { %v1896_v47 = vpop.f32.mrf.mxu0  ;;  %v4215_v51 = vpop.f32.mrf.mxu1 }
 0x1d7   : > { %v3958_v49 = vpack.c.bf16 %v2749_v43, %v2749_v43  ;;  %v2431_v50 = vadd.f32 %v2430_v46, %v1895_v44  ;;  %v4599_v43 = vld [vmem:[%s5817_s0 + $0x578] ss:$12 sps:$4 sm:$0xff]  }
 0x1d8   : > { %v1899_v52 = vpop.f32.mrf.mxu0  ;;  %2090 = vmatmul.mubr.bf16.gmra.mxu0 %v4584_v42  ;;  %v2435_v55 = vpop.f32.mrf.mxu1  ;;  %4313 = vmatmul.mubr.msk.bf16.gmra.mxu1 %vm1421_vm1, %v4587_v48 }
 0x1d9   : > { %3376 = vst.msk [vmem:[%s4991_s29 + $0xf0] sm:$0xf] %vm3315_vm2, %v3958_v49  ;;  %v2750_v53 = vmax.f32 %v2431_v50, 0.0  ;;  %v1900_v54 = vadd.f32 %v5350_v39, %v1899_v52  ;;  %2097 = vmatprep.mubr.bf16.mxu0 %v4590_v45  ;;  %4316 = vmatprep.mubr.msk.bf16.mxu1 %vm4626_vm0, %v4625_v0 }
 0x1da   : > { %v1901_v56 = vpop.f32.mrf.mxu0  ;;  %v4218_v59 = vpop.f32.mrf.mxu1 }
 0x1db   : > { %v3959_v57 = vpack.c.bf16 %v2750_v53, %v2750_v53  ;;  %v2436_v58 = vadd.f32 %v2435_v55, %v1900_v54  ;;  %v4600_v56 = vld [vmem:[%s5817_s0 + $0x588] ss:$12 sps:$4 sm:$0xff]   ;;  %v4606_v59 = vld [vmem:[%s5817_s0 + $0x5a4] ss:$12 sps:$4 sm:$0xff]  }
 0x1dc   : > { %v1902_v60 = vpop.f32.mrf.mxu0  ;;  %v2438_v2 = vpop.f32.mrf.mxu1 }
 0x1dd   : > { %3377 = vst.msk [vmem:[%s4991_s29 + $0xf4] sm:$0xf] %vm3315_vm2, %v3959_v57  ;;  %v2751_v62 = vmax.f32 %v2436_v58, 0.0  ;;  %v1903_v63 = vadd.f32 %v5350_v39, %v1902_v60 }
 0x1de   : > { %v1904_v3 = vpop.f32.mrf.mxu0  ;;  %v4219_v7 = vpop.f32.mrf.mxu1 }
 0x1df   : > { %v3960_v5 = vpack.c.bf16 %v2751_v62, %v2751_v62  ;;  %v2439_v6 = vadd.f32 %v2438_v2, %v1903_v63  ;;  %v4603_v62 = vld [vmem:[%s5817_s0 + $0x590] ss:$12 sps:$4 sm:$0xff]  }
 0x1e0   : > { %v1907_v8 = vpop.f32.mrf.mxu0  ;;  %2098 = vmatmul.mubr.bf16.gmra.mxu0 %v4588_v61  ;;  %v2443_v11 = vpop.f32.mrf.mxu1  ;;  %4317 = vmatmul.mubr.msk.bf16.gmra.mxu1 %vm1421_vm1, %v4591_v4 }
 0x1e1   : > { %3378 = vst.msk [vmem:[%s4991_s29 + $0xf8] sm:$0xf] %vm3315_vm2, %v3960_v5  ;;  %v2752_v9 = vmax.f32 %v2439_v6, 0.0  ;;  %v1908_v10 = vadd.f32 %v5350_v39, %v1907_v8  ;;  %2105 = vmatprep.mubr.bf16.mxu0 %v4594_v1  ;;  %4320 = vmatprep.mubr.msk.bf16.mxu1 %vm4626_vm0, %v4625_v0 }
 0x1e2   : > { %v1909_v12 = vpop.f32.mrf.mxu0  ;;  %v4222_v15 = vpop.f32.mrf.mxu1 }
 0x1e3   : > { %v3961_v13 = vpack.c.bf16 %v2752_v9, %v2752_v9  ;;  %v2444_v14 = vadd.f32 %v2443_v11, %v1908_v10  ;;  %v4604_v12 = vld [vmem:[%s5817_s0 + $0x5a0] ss:$12 sps:$4 sm:$0xff]   ;;  %v4610_v15 = vld [vmem:[%s5817_s0 + $0x5bc] ss:$12 sps:$4 sm:$0xff]  }
 0x1e4   : > { %v1910_v16 = vpop.f32.mrf.mxu0  ;;  %v2446_v22 = vpop.f32.mrf.mxu1 }
 0x1e5   : > { %3379 = vst.msk [vmem:[%s4991_s29 + $0xfc] sm:$0xf] %vm3315_vm2, %v3961_v13  ;;  %v2753_v18 = vmax.f32 %v2444_v14, 0.0  ;;  %v1911_v19 = vadd.f32 %v5350_v39, %v1910_v16 }
 0x1e6   : > { %v1912_v23 = vpop.f32.mrf.mxu0  ;;  %v4223_v27 = vpop.f32.mrf.mxu1 }
 0x1e7   : > { %v3962_v25 = vpack.c.bf16 %v2753_v18, %v2753_v18  ;;  %v2447_v26 = vadd.f32 %v2446_v22, %v1911_v19  ;;  %v4607_v18 = vld [vmem:[%s5817_s0 + $0x5a8] ss:$12 sps:$4 sm:$0xff]  }
 0x1e8   : > { %v1915_v28 = vpop.f32.mrf.mxu0  ;;  %2106 = vmatmul.mubr.bf16.gmra.mxu0 %v4592_v17  ;;  %v2451_v31 = vpop.f32.mrf.mxu1  ;;  %4321 = vmatmul.mubr.msk.bf16.gmra.mxu1 %vm1421_vm1, %v4595_v24 }
 0x1e9   : > { %3380 = vst.msk [vmem:[%s4991_s29 + $0x100] sm:$0xf] %vm3315_vm2, %v3962_v25  ;;  %v2754_v29 = vmax.f32 %v2447_v26, 0.0  ;;  %v1916_v30 = vadd.f32 %v5350_v39, %v1915_v28  ;;  %2113 = vmatprep.mubr.bf16.mxu0 %v4598_v20  ;;  %4324 = vmatprep.mubr.msk.bf16.mxu1 %vm4626_vm0, %v4625_v0  ;;  %v434_v28 = vld [vmem:[%s5817_s0 + $0x5d0] sm:$0xff] }
 0x1ea   : > { %v1917_v32 = vpop.f32.mrf.mxu0  ;;  %v4226_v35 = vpop.f32.mrf.mxu1 }
 0x1eb   : > { %v3963_v33 = vpack.c.bf16 %v2754_v29, %v2754_v29  ;;  %v2452_v34 = vadd.f32 %v2451_v31, %v1916_v30 }
 0x1ec   : > { %v1918_v36 = vpop.f32.mrf.mxu0  ;;  %v2454_v41 = vpop.f32.mrf.mxu1 }
 0x1ed   : > { %3381 = vst.msk [vmem:[%s4991_s29 + $0x104] sm:$0xf] %vm3315_vm2, %v3963_v33  ;;  %v2755_v38 = vmax.f32 %v2452_v34, 0.0  ;;  %v1919_v21 = vadd.f32 %v5350_v39, %v1918_v36  ;;  %v4608_v33 = vld [vmem:[%s5817_s0 + $0x5b8] ss:$12 sps:$4 sm:$0xff]   ;;  %v3700_v36 = vcombine.high %v434_v28, %v434_v28 }
 0x1ee   : > { %v1920_v42 = vpop.f32.mrf.mxu0  ;;  %v4227_v46 = vpop.f32.mrf.mxu1 }
 0x1ef   : > { %v3964_v44 = vpack.c.bf16 %v2755_v38, %v2755_v38  ;;  %v2455_v45 = vadd.f32 %v2454_v41, %v1919_v21  ;;  %v4611_v21 = vld [vmem:[%s5817_s0 + $0x5c0] ss:$12 sps:$4 sm:$0xff]  }
 0x1f0   : > { %v1923_v47 = vpop.f32.mrf.mxu0  ;;  %2114 = vmatmul.mubr.bf16.gmra.mxu0 %v4596_v37  ;;  %v2459_v50 = vpop.f32.mrf.mxu1  ;;  %4325 = vmatmul.mubr.msk.bf16.gmra.mxu1 %vm1421_vm1, %v4599_v43 }
 0x1f1   : > { %3382 = vst.msk [vmem:[%s4991_s29 + $0x108] sm:$0xf] %vm3315_vm2, %v3964_v44  ;;  %v2756_v48 = vmax.f32 %v2455_v45, 0.0  ;;  %v1924_v49 = vadd.f32 %v5350_v39, %v1923_v47  ;;  %2121 = vmatprep.mubr.bf16.mxu0 %v4602_v40  ;;  %4328 = vmatprep.mubr.msk.bf16.mxu1 %vm4626_vm0, %v4625_v0 }
 0x1f2   : > { %v1925_v51 = vpop.f32.mrf.mxu0  ;;  %v4230_v54 = vpop.f32.mrf.mxu1 }
 0x1f3   : > { %v3965_v52 = vpack.c.bf16 %v2756_v48, %v2756_v48  ;;  %v2460_v53 = vadd.f32 %v2459_v50, %v1924_v49 }
 0x1f4   : > { %v1926_v55 = vpop.f32.mrf.mxu0  ;;  %v2462_v60 = vpop.f32.mrf.mxu1 }
 0x1f5   : > { %3383 = vst.msk [vmem:[%s4991_s29 + $0x10c] sm:$0xf] %vm3315_vm2, %v3965_v52  ;;  %v2757_v57 = vmax.f32 %v2460_v53, 0.0  ;;  %v1927_v58 = vadd.f32 %v5350_v39, %v1926_v55  ;;  %v3699_v52 = vcombine.low %v434_v28, %v434_v28 }
 0x1f6   : > { %v1928_v61 = vpop.f32.mrf.mxu0  ;;  %v4231_v2 = vpop.f32.mrf.mxu1 }
 0x1f7   : > { %v3966_v63 = vpack.c.bf16 %v2757_v57, %v2757_v57  ;;  %v2463_v1 = vadd.f32 %v2462_v60, %v1927_v58  ;;  %v4614_v57 = vld [vmem:[%s5817_s0 + $0x5d8] ss:$0 sps:$4 sm:$0xff]  }
 0x1f8   : > { %v1931_v3 = vpop.f32.mrf.mxu0  ;;  %2122 = vmatmul.mubr.bf16.gmra.mxu0 %v4600_v56  ;;  %v2467_v6 = vpop.f32.mrf.mxu1  ;;  %4329 = vmatmul.mubr.msk.bf16.gmra.mxu1 %vm1421_vm1, %v4603_v62 }
 0x1f9   : > { %3384 = vst.msk [vmem:[%s4991_s29 + $0x110] sm:$0xf] %vm3315_vm2, %v3966_v63  ;;  %v2758_v4 = vmax.f32 %v2463_v1, 0.0  ;;  %v1932_v5 = vadd.f32 %v5350_v39, %v1931_v3  ;;  %2129 = vmatprep.mubr.bf16.mxu0 %v4606_v59  ;;  %4332 = vmatprep.mubr.msk.bf16.mxu1 %vm4626_vm0, %v4625_v0 }
 0x1fa   : > { %v1933_v7 = vpop.f32.mrf.mxu0  ;;  %v4234_v10 = vpop.f32.mrf.mxu1 }
 0x1fb   : > { %v3967_v8 = vpack.c.bf16 %v2758_v4, %v2758_v4  ;;  %v2468_v9 = vadd.f32 %v2467_v6, %v1932_v5 }
 0x1fc   : > { %v1934_v11 = vpop.f32.mrf.mxu0  ;;  %v2470_v16 = vpop.f32.mrf.mxu1 }
 0x1fd   : > { %3385 = vst.msk [vmem:[%s4991_s29 + $0x114] sm:$0xf] %vm3315_vm2, %v3967_v8  ;;  %v2759_v13 = vmax.f32 %v2468_v9, 0.0  ;;  %v1935_v14 = vadd.f32 %v5350_v39, %v1934_v11 }
 0x1fe   : > { %v1936_v17 = vpop.f32.mrf.mxu0  ;;  %v4235_v22 = vpop.f32.mrf.mxu1 }
 0x1ff   : > { %v3968_v19 = vpack.c.bf16 %v2759_v13, %v2759_v13  ;;  %v2471_v20 = vadd.f32 %v2470_v16, %v1935_v14 }
 0x200   : > { %v1939_v23 = vpop.f32.mrf.mxu0  ;;  %2130 = vmatmul.mubr.bf16.gmra.mxu0 %v4604_v12  ;;  %v2475_v26 = vpop.f32.mrf.mxu1  ;;  %4333 = vmatmul.mubr.msk.bf16.gmra.mxu1 %vm1421_vm1, %v4607_v18 }
 0x201   : > { %3386 = vst.msk [vmem:[%s4991_s29 + $0x118] sm:$0xf] %vm3315_vm2, %v3968_v19  ;;  %v2760_v24 = vmax.f32 %v2471_v20, 0.0  ;;  %v1940_v25 = vadd.f32 %v5350_v39, %v1939_v23  ;;  %2137 = vmatprep.mubr.bf16.mxu0 %v4610_v15  ;;  %4336 = vmatprep.mubr.msk.bf16.mxu1 %vm4626_vm0, %v4625_v0 }
 0x202   : > { %v1941_v27 = vpop.f32.mrf.mxu0  ;;  %v4238_v31 = vpop.f32.mrf.mxu1 }
 0x203   : > { %v3969_v29 = vpack.c.bf16 %v2760_v24, %v2760_v24  ;;  %v2476_v30 = vadd.f32 %v2475_v26, %v1940_v25 }
 0x204   : > { %v1942_v32 = vpop.f32.mrf.mxu0  ;;  %v2478_v37 = vpop.f32.mrf.mxu1 }
 0x205   : > { %3387 = vst.msk [vmem:[%s4991_s29 + $0x11c] sm:$0xf] %vm3315_vm2, %v3969_v29  ;;  %v2761_v34 = vmax.f32 %v2476_v30, 0.0  ;;  %v1943_v35 = vadd.f32 %v5350_v39, %v1942_v32 }
 0x206   : > { %v1944_v38 = vpop.f32.mrf.mxu0  ;;  %v4239_v42 = vpop.f32.mrf.mxu1 }
 0x207   : > { %v3970_v40 = vpack.c.bf16 %v2761_v34, %v2761_v34  ;;  %v2479_v41 = vadd.f32 %v2478_v37, %v1943_v35 }
 0x208   : > { %v1947_v43 = vpop.f32.mrf.mxu0  ;;  %2138 = vmatmul.mubr.bf16.gmra.mxu0 %v4608_v33  ;;  %v2483_v46 = vpop.f32.mrf.mxu1  ;;  %4337 = vmatmul.mubr.msk.bf16.gmra.mxu1 %vm1421_vm1, %v4611_v21 }
 0x209   : > { %3388 = vst.msk [vmem:[%s4991_s29 + $0x120] sm:$0xf] %vm3315_vm2, %v3970_v40  ;;  %v2762_v44 = vmax.f32 %v2479_v41, 0.0  ;;  %v1948_v45 = vadd.f32 %v5350_v39, %v1947_v43  ;;  %2145 = vmatprep.mubr.bf16.mxu0 %v3700_v36  ;;  %4340 = vmatprep.mubr.msk.bf16.mxu1 %vm4626_vm0, %v4625_v0 }
 0x20a   : > { %v1949_v47 = vpop.f32.mrf.mxu0  ;;  %v4242_v50 = vpop.f32.mrf.mxu1 }
 0x20b   : > { %v3971_v48 = vpack.c.bf16 %v2762_v44, %v2762_v44  ;;  %v2484_v49 = vadd.f32 %v2483_v46, %v1948_v45 }
 0x20c   : > { %v1950_v51 = vpop.f32.mrf.mxu0  ;;  %v2486_v55 = vpop.f32.mrf.mxu1 }
 0x20d   : > { %3389 = vst.msk [vmem:[%s4991_s29 + $0x124] sm:$0xf] %vm3315_vm2, %v3971_v48  ;;  %v2763_v53 = vmax.f32 %v2484_v49, 0.0  ;;  %v1951_v54 = vadd.f32 %v5350_v39, %v1950_v51 }
 0x20e   : > { %v1952_v56 = vpop.f32.mrf.mxu0  ;;  %v4243_v60 = vpop.f32.mrf.mxu1 }
 0x20f   : > { %v3972_v58 = vpack.c.bf16 %v2763_v53, %v2763_v53  ;;  %v2487_v59 = vadd.f32 %v2486_v55, %v1951_v54 }
 0x210   : > { %v1955_v61 = vpop.f32.mrf.mxu0  ;;  %2146 = vmatmul.mubr.bf16.gmra.mxu0 %v3699_v52  ;;  %v2491_v63 = vpop.f32.mrf.mxu1  ;;  %4341 = vmatmul.mubr.msk.bf16.gmra.mxu1 %vm1421_vm1, %v4614_v57 }
 0x211   : > { %3390 = vst.msk [vmem:[%s4991_s29 + $0x128] sm:$0xf] %vm3315_vm2, %v3972_v58  ;;  %v2764_v0 = vmax.f32 %v2487_v59, 0.0  ;;  %v1956_v62 = vadd.f32 %v5350_v39, %v1955_v61 }
 0x212   : > { %v1957_v1 = vpop.f32.mrf.mxu0  ;;  %v4246_v4 = vpop.f32.mrf.mxu1 }
 0x213   : > { %v3973_v2 = vpack.c.bf16 %v2764_v0, %v2764_v0  ;;  %v2492_v3 = vadd.f32 %v2491_v63, %v1956_v62 }
 0x214   : > { %v1958_v5 = vpop.f32.mrf.mxu0  ;;  %v2494_v8 = vpop.f32.mrf.mxu1 }
 0x215   : > { %3391 = vst.msk [vmem:[%s4991_s29 + $0x12c] sm:$0xf] %vm3315_vm2, %v3973_v2  ;;  %v2765_v6 = vmax.f32 %v2492_v3, 0.0  ;;  %v1959_v7 = vadd.f32 %v5350_v39, %v1958_v5 }
 0x216   : > { %v1960_v9 = vpop.f32.mrf.mxu0  ;;  %v4247_v12 = vpop.f32.mrf.mxu1 }
 0x217   : > { %v3974_v10 = vpack.c.bf16 %v2765_v6, %v2765_v6  ;;  %v2495_v11 = vadd.f32 %v2494_v8, %v1959_v7  ;;  %v5690_v8 = vld [vmem:[%s4962_s16] ss:$0 sm:$0xff] }
 0x218   : > { %v1963_v13 = vpop.f32.mrf.mxu0  ;;  %v2499_v16 = vpop.f32.mrf.mxu1 }
 0x219   : > { %3392 = vst.msk [vmem:[%s4991_s29 + $0x130] sm:$0xf] %vm3315_vm2, %v3974_v10  ;;  %v2766_v14 = vmax.f32 %v2495_v11, 0.0  ;;  %v1964_v15 = vadd.f32 %v5350_v39, %v1963_v13 }
 0x21a   : > { %v1965_v17 = vpop.f32.mrf.mxu0  ;;  %v4250_v20 = vpop.f32.mrf.mxu1 }
 0x21b   : > { %v3975_v18 = vpack.c.bf16 %v2766_v14, %v2766_v14  ;;  %v2500_v19 = vadd.f32 %v2499_v16, %v1964_v15 }
 0x21c   : > { %v1966_v22 = vpop.f32.mrf.mxu0  ;;  %v2502_v25 = vpop.f32.mrf.mxu1 }
 0x21d   : > { %3393 = vst.msk [vmem:[%s4991_s29 + $0x134] sm:$0xf] %vm3315_vm2, %v3975_v18  ;;  %v2767_v23 = vmax.f32 %v2500_v19, 0.0  ;;  %v1967_v24 = vadd.f32 %v5350_v39, %v1966_v22 }
 0x21e   : > { %v1968_v26 = vpop.f32.mrf.mxu0  ;;  %v4251_v29 = vpop.f32.mrf.mxu1 }
 0x21f   : > { %v3976_v27 = vpack.c.bf16 %v2767_v23, %v2767_v23  ;;  %v2503_v28 = vadd.f32 %v2502_v25, %v1967_v24 }
 0x220   : > { %v1971_v30 = vpop.f32.mrf.mxu0  ;;  %v2507_v33 = vpop.f32.mrf.mxu1 }
 0x221   : > { %3394 = vst.msk [vmem:[%s4991_s29 + $0x138] sm:$0xf] %vm3315_vm2, %v3976_v27  ;;  %v2768_v31 = vmax.f32 %v2503_v28, 0.0  ;;  %v1972_v32 = vadd.f32 %v5350_v39, %v1971_v30 }
 0x222   : > { %v1973_v34 = vpop.f32.mrf.mxu0  ;;  %v4254_v37 = vpop.f32.mrf.mxu1 }
 0x223   : > { %v3977_v35 = vpack.c.bf16 %v2768_v31, %v2768_v31  ;;  %v2508_v36 = vadd.f32 %v2507_v33, %v1972_v32 }
 0x224   : > { %v1974_v38 = vpop.f32.mrf.mxu0  ;;  %v2510_v41 = vpop.f32.mrf.mxu1 }
 0x225   : > { %3395 = vst.msk [vmem:[%s4991_s29 + $0x13c] sm:$0xf] %vm3315_vm2, %v3977_v35  ;;  %v2769_v21 = vmax.f32 %v2508_v36, 0.0  ;;  %v1975_v40 = vadd.f32 %v5350_v39, %v1974_v38 }
 0x226   : > { %v1976_v42 = vpop.f32.mrf.mxu0  ;;  %v4255_v45 = vpop.f32.mrf.mxu1 }
 0x227   : > { %v3978_v43 = vpack.c.bf16 %v2769_v21, %v2769_v21  ;;  %v2511_v44 = vadd.f32 %v2510_v41, %v1975_v40 }
 0x228   : > { %v1979_v46 = vpop.f32.mrf.mxu0  ;;  %v2515_v49 = vpop.f32.mrf.mxu1 }
 0x229   : > { %3396 = vst.msk [vmem:[%s4991_s29 + $0x140] sm:$0xf] %vm3315_vm2, %v3978_v43  ;;  %v2770_v47 = vmax.f32 %v2511_v44, 0.0  ;;  %v1980_v48 = vadd.f32 %v5350_v39, %v1979_v46 }
 0x22a   : > { %v1981_v50 = vpop.f32.mrf.mxu0  ;;  %v4258_v53 = vpop.f32.mrf.mxu1 }
 0x22b   : > { %v3979_v51 = vpack.c.bf16 %v2770_v47, %v2770_v47  ;;  %v2516_v52 = vadd.f32 %v2515_v49, %v1980_v48 }
 0x22c   : > { %v1982_v54 = vpop.f32.mrf.mxu0  ;;  %v2518_v57 = vpop.f32.mrf.mxu1 }
 0x22d   : > { %3397 = vst.msk [vmem:[%s4991_s29 + $0x144] sm:$0xf] %vm3315_vm2, %v3979_v51  ;;  %v2771_v55 = vmax.f32 %v2516_v52, 0.0  ;;  %v1983_v56 = vadd.f32 %v5350_v39, %v1982_v54 }
 0x22e   : > { %v1984_v58 = vpop.f32.mrf.mxu0  ;;  %v4259_v61 = vpop.f32.mrf.mxu1 }
 0x22f   : > { %v3980_v59 = vpack.c.bf16 %v2771_v55, %v2771_v55  ;;  %v2519_v60 = vadd.f32 %v2518_v57, %v1983_v56 }
 0x230   : > { %v1987_v0 = vpop.f32.mrf.mxu0  ;;  %v2523_v1 = vpop.f32.mrf.mxu1 }
 0x231   : > { %3398 = vst.msk [vmem:[%s4991_s29 + $0x148] sm:$0xf] %vm3315_vm2, %v3980_v59  ;;  %v2772_v62 = vmax.f32 %v2519_v60, 0.0  ;;  %v1988_v63 = vadd.f32 %v5350_v39, %v1987_v0 }
 0x232   : > { %v1989_v2 = vpop.f32.mrf.mxu0  ;;  %v4262_v5 = vpop.f32.mrf.mxu1 }
 0x233   : > { %v3981_v3 = vpack.c.bf16 %v2772_v62, %v2772_v62  ;;  %v2524_v4 = vadd.f32 %v2523_v1, %v1988_v63 }
 0x234   : > { %v1990_v6 = vpop.f32.mrf.mxu0  ;;  %v2526_v10 = vpop.f32.mrf.mxu1 }
 0x235   : > { %3399 = vst.msk [vmem:[%s4991_s29 + $0x14c] sm:$0xf] %vm3315_vm2, %v3981_v3  ;;  %v2773_v7 = vmax.f32 %v2524_v4, 0.0  ;;  %v1991_v9 = vadd.f32 %v5690_v8, %v1990_v6 }
 0x236   : > { %v1992_v11 = vpop.f32.mrf.mxu0  ;;  %v4263_v39 = vpop.f32.mrf.mxu1 }
 0x237   : > { %v3982_v12 = vpack.c.bf16 %v2773_v7, %v2773_v7  ;;  %v2527_v13 = vadd.f32 %v2526_v10, %v1991_v9 }
 0x238   : > { %v1995_v14 = vpop.f32.mrf.mxu0  ;;  %v2531_v17 = vpop.f32.mrf.mxu1 }
 0x239   : > { %3400 = vst.msk [vmem:[%s4991_s29 + $0x150] sm:$0xf] %vm3315_vm2, %v3982_v12  ;;  %v2774_v15 = vmax.f32 %v2527_v13, 0.0  ;;  %v1996_v16 = vadd.f32 %v5690_v8, %v1995_v14 }
 0x23a   : > { %v1997_v18 = vpop.f32.mrf.mxu0  ;;  %v4266_v22 = vpop.f32.mrf.mxu1 }
 0x23b   : > { %v3983_v19 = vpack.c.bf16 %v2774_v15, %v2774_v15  ;;  %v2532_v20 = vadd.f32 %v2531_v17, %v1996_v16 }
 0x23c   : > { %v1998_v23 = vpop.f32.mrf.mxu0  ;;  %v2534_v26 = vpop.f32.mrf.mxu1 }
 0x23d   : > { %3401 = vst.msk [vmem:[%s4991_s29 + $0x154] sm:$0xf] %vm3315_vm2, %v3983_v19  ;;  %v2775_v24 = vmax.f32 %v2532_v20, 0.0  ;;  %v1999_v25 = vadd.f32 %v5690_v8, %v1998_v23 }
 0x23e   : > { %v2000_v27 = vpop.f32.mrf.mxu0  ;;  %v4267_v30 = vpop.f32.mrf.mxu1 }
 0x23f   : > { %v3984_v28 = vpack.c.bf16 %v2775_v24, %v2775_v24  ;;  %v2535_v29 = vadd.f32 %v2534_v26, %v1999_v25 }
 0x240   : > { %v2003_v31 = vpop.f32.mrf.mxu0  ;;  %v2539_v34 = vpop.f32.mrf.mxu1 }
 0x241   : > { %3402 = vst.msk [vmem:[%s4991_s29 + $0x158] sm:$0xf] %vm3315_vm2, %v3984_v28  ;;  %v2776_v32 = vmax.f32 %v2535_v29, 0.0  ;;  %v2004_v33 = vadd.f32 %v5690_v8, %v2003_v31 }
 0x242   : > { %v2005_v35 = vpop.f32.mrf.mxu0  ;;  %v4270_v38 = vpop.f32.mrf.mxu1 }
 0x243   : > { %v3985_v36 = vpack.c.bf16 %v2776_v32, %v2776_v32  ;;  %v2540_v37 = vadd.f32 %v2539_v34, %v2004_v33 }
 0x244   : > { %v2006_v21 = vpop.f32.mrf.mxu0  ;;  %v2542_v42 = vpop.f32.mrf.mxu1 }
 0x245   : > { %3403 = vst.msk [vmem:[%s4991_s29 + $0x15c] sm:$0xf] %vm3315_vm2, %v3985_v36  ;;  %v2777_v40 = vmax.f32 %v2540_v37, 0.0  ;;  %v2007_v41 = vadd.f32 %v5690_v8, %v2006_v21 }
 0x246   : > { %v2008_v43 = vpop.f32.mrf.mxu0  ;;  %v4271_v46 = vpop.f32.mrf.mxu1 }
 0x247   : > { %v3986_v44 = vpack.c.bf16 %v2777_v40, %v2777_v40  ;;  %v2543_v45 = vadd.f32 %v2542_v42, %v2007_v41 }
 0x248   : > { %v2011_v47 = vpop.f32.mrf.mxu0  ;;  %v2547_v50 = vpop.f32.mrf.mxu1 }
 0x249   : > { %3404 = vst.msk [vmem:[%s4991_s29 + $0x160] sm:$0xf] %vm3315_vm2, %v3986_v44  ;;  %v2778_v48 = vmax.f32 %v2543_v45, 0.0  ;;  %v2012_v49 = vadd.f32 %v5690_v8, %v2011_v47 }
 0x24a   : > { %v2013_v51 = vpop.f32.mrf.mxu0  ;;  %v4274_v54 = vpop.f32.mrf.mxu1 }
 0x24b   : > { %v3987_v52 = vpack.c.bf16 %v2778_v48, %v2778_v48  ;;  %v2548_v53 = vadd.f32 %v2547_v50, %v2012_v49 }
 0x24c   : > { %v2014_v55 = vpop.f32.mrf.mxu0  ;;  %v2550_v58 = vpop.f32.mrf.mxu1 }
 0x24d   : > { %3405 = vst.msk [vmem:[%s4991_s29 + $0x164] sm:$0xf] %vm3315_vm2, %v3987_v52  ;;  %v2779_v56 = vmax.f32 %v2548_v53, 0.0  ;;  %v2015_v57 = vadd.f32 %v5690_v8, %v2014_v55 }
 0x24e   : > { %v2016_v59 = vpop.f32.mrf.mxu0  ;;  %v4275_v0 = vpop.f32.mrf.mxu1 }
 0x24f   : > { %v3988_v60 = vpack.c.bf16 %v2779_v56, %v2779_v56  ;;  %v2551_v61 = vadd.f32 %v2550_v58, %v2015_v57 }
 0x250   : > { %v2019_v62 = vpop.f32.mrf.mxu0  ;;  %v2555_v2 = vpop.f32.mrf.mxu1 }
 0x251   : > { %3406 = vst.msk [vmem:[%s4991_s29 + $0x168] sm:$0xf] %vm3315_vm2, %v3988_v60  ;;  %v2780_v63 = vmax.f32 %v2551_v61, 0.0  ;;  %v2020_v1 = vadd.f32 %v5690_v8, %v2019_v62 }
 0x252   : > { %v2021_v3 = vpop.f32.mrf.mxu0  ;;  %v4278_v6 = vpop.f32.mrf.mxu1 }
 0x253   : > { %v3989_v4 = vpack.c.bf16 %v2780_v63, %v2780_v63  ;;  %v2556_v5 = vadd.f32 %v2555_v2, %v2020_v1 }
 0x254   : > { %v2022_v7 = vpop.f32.mrf.mxu0  ;;  %v2558_v11 = vpop.f32.mrf.mxu1 }
 0x255   : > { %3407 = vst.msk [vmem:[%s4991_s29 + $0x16c] sm:$0xf] %vm3315_vm2, %v3989_v4  ;;  %v2781_v9 = vmax.f32 %v2556_v5, 0.0  ;;  %v2023_v10 = vadd.f32 %v5690_v8, %v2022_v7 }
 0x256   : > { %v2024_v12 = vpop.f32.mrf.mxu0  ;;  %v4279_v14 = vpop.f32.mrf.mxu1 }
 0x257   : > { %v3990_v13 = vpack.c.bf16 %v2781_v9, %v2781_v9  ;;  %v2559_v39 = vadd.f32 %v2558_v11, %v2023_v10 }
 0x258   : > { %v2027_v15 = vpop.f32.mrf.mxu0  ;;  %v2563_v18 = vpop.f32.mrf.mxu1 }
 0x259   : > { %3408 = vst.msk [vmem:[%s4991_s29 + $0x170] sm:$0xf] %vm3315_vm2, %v3990_v13  ;;  %v2782_v16 = vmax.f32 %v2559_v39, 0.0  ;;  %v2028_v17 = vadd.f32 %v5690_v8, %v2027_v15 }
 0x25a   : > { %v2029_v19 = vpop.f32.mrf.mxu0  ;;  %v4282_v23 = vpop.f32.mrf.mxu1 }
 0x25b   : > { %v3991_v20 = vpack.c.bf16 %v2782_v16, %v2782_v16  ;;  %v2564_v22 = vadd.f32 %v2563_v18, %v2028_v17 }
 0x25c   : > { %v2030_v24 = vpop.f32.mrf.mxu0  ;;  %v2566_v27 = vpop.f32.mrf.mxu1 }
 0x25d   : > { %3409 = vst.msk [vmem:[%s4991_s29 + $0x174] sm:$0xf] %vm3315_vm2, %v3991_v20  ;;  %v2783_v25 = vmax.f32 %v2564_v22, 0.0  ;;  %v2031_v26 = vadd.f32 %v5690_v8, %v2030_v24 }
 0x25e   : > { %v2032_v28 = vpop.f32.mrf.mxu0  ;;  %v4283_v31 = vpop.f32.mrf.mxu1 }
 0x25f   : > { %v3992_v29 = vpack.c.bf16 %v2783_v25, %v2783_v25  ;;  %v2567_v30 = vadd.f32 %v2566_v27, %v2031_v26 }
 0x260   : > { %v2035_v32 = vpop.f32.mrf.mxu0  ;;  %v2571_v35 = vpop.f32.mrf.mxu1 }
 0x261   : > { %3410 = vst.msk [vmem:[%s4991_s29 + $0x178] sm:$0xf] %vm3315_vm2, %v3992_v29  ;;  %v2784_v33 = vmax.f32 %v2567_v30, 0.0  ;;  %v2036_v34 = vadd.f32 %v5690_v8, %v2035_v32 }
 0x262   : > { %v2037_v36 = vpop.f32.mrf.mxu0  ;;  %v4286_v21 = vpop.f32.mrf.mxu1 }
 0x263   : > { %v3993_v37 = vpack.c.bf16 %v2784_v33, %v2784_v33  ;;  %v2572_v38 = vadd.f32 %v2571_v35, %v2036_v34 }
 0x264   : > { %v2038_v40 = vpop.f32.mrf.mxu0  ;;  %v2574_v43 = vpop.f32.mrf.mxu1 }
 0x265   : > { %3411 = vst.msk [vmem:[%s4991_s29 + $0x17c] sm:$0xf] %vm3315_vm2, %v3993_v37  ;;  %v2785_v41 = vmax.f32 %v2572_v38, 0.0  ;;  %v2039_v42 = vadd.f32 %v5690_v8, %v2038_v40 }
 0x266   : > { %v2040_v44 = vpop.f32.mrf.mxu0  ;;  %v4287_v47 = vpop.f32.mrf.mxu1 }
 0x267   : > { %v3994_v45 = vpack.c.bf16 %v2785_v41, %v2785_v41  ;;  %v2575_v46 = vadd.f32 %v2574_v43, %v2039_v42 }
 0x268   : > { %v2043_v48 = vpop.f32.mrf.mxu0  ;;  %v2579_v51 = vpop.f32.mrf.mxu1 }
 0x269   : > { %3412 = vst.msk [vmem:[%s4991_s29 + $0x180] sm:$0xf] %vm3315_vm2, %v3994_v45  ;;  %v2786_v49 = vmax.f32 %v2575_v46, 0.0  ;;  %v2044_v50 = vadd.f32 %v5690_v8, %v2043_v48 }
 0x26a   : > { %v2045_v52 = vpop.f32.mrf.mxu0  ;;  %v4290_v55 = vpop.f32.mrf.mxu1 }
 0x26b   : > { %v3995_v53 = vpack.c.bf16 %v2786_v49, %v2786_v49  ;;  %v2580_v54 = vadd.f32 %v2579_v51, %v2044_v50 }
 0x26c   : > { %v2046_v56 = vpop.f32.mrf.mxu0  ;;  %v2582_v59 = vpop.f32.mrf.mxu1 }
 0x26d   : > { %3413 = vst.msk [vmem:[%s4991_s29 + $0x184] sm:$0xf] %vm3315_vm2, %v3995_v53  ;;  %v2787_v57 = vmax.f32 %v2580_v54, 0.0  ;;  %v2047_v58 = vadd.f32 %v5690_v8, %v2046_v56 }
 0x26e   : > { %v2048_v60 = vpop.f32.mrf.mxu0  ;;  %v4291_v62 = vpop.f32.mrf.mxu1 }
 0x26f   : > { %v3996_v61 = vpack.c.bf16 %v2787_v57, %v2787_v57  ;;  %v2583_v0 = vadd.f32 %v2582_v59, %v2047_v58 }
 0x270   : > { %v2051_v63 = vpop.f32.mrf.mxu0  ;;  %v2587_v3 = vpop.f32.mrf.mxu1 }
 0x271   : > { %3414 = vst.msk [vmem:[%s4991_s29 + $0x188] sm:$0xf] %vm3315_vm2, %v3996_v61  ;;  %v2788_v1 = vmax.f32 %v2583_v0, 0.0  ;;  %v2052_v2 = vadd.f32 %v5690_v8, %v2051_v63 }
 0x272   : > { %v2053_v4 = vpop.f32.mrf.mxu0  ;;  %v4294_v7 = vpop.f32.mrf.mxu1 }
 0x273   : > { %v3997_v5 = vpack.c.bf16 %v2788_v1, %v2788_v1  ;;  %v2588_v6 = vadd.f32 %v2587_v3, %v2052_v2 }
 0x274   : > { %v2054_v9 = vpop.f32.mrf.mxu0  ;;  %v2590_v12 = vpop.f32.mrf.mxu1 }
 0x275   : > { %3415 = vst.msk [vmem:[%s4991_s29 + $0x18c] sm:$0xf] %vm3315_vm2, %v3997_v5  ;;  %v2789_v10 = vmax.f32 %v2588_v6, 0.0  ;;  %v2055_v11 = vadd.f32 %v5690_v8, %v2054_v9 }
 0x276   : > { %v2056_v13 = vpop.f32.mrf.mxu0  ;;  %v4295_v15 = vpop.f32.mrf.mxu1 }
 0x277   : > { %v3998_v39 = vpack.c.bf16 %v2789_v10, %v2789_v10  ;;  %v2591_v14 = vadd.f32 %v2590_v12, %v2055_v11 }
 0x278   : > { %v2059_v16 = vpop.f32.mrf.mxu0  ;;  %v2595_v19 = vpop.f32.mrf.mxu1 }
 0x279   : > { %3416 = vst.msk [vmem:[%s4991_s29 + $0x190] sm:$0xf] %vm3315_vm2, %v3998_v39  ;;  %v2790_v17 = vmax.f32 %v2591_v14, 0.0  ;;  %v2060_v18 = vadd.f32 %v5690_v8, %v2059_v16 }
 0x27a   : > { %v2061_v20 = vpop.f32.mrf.mxu0  ;;  %v4298_v24 = vpop.f32.mrf.mxu1 }
 0x27b   : > { %v3999_v22 = vpack.c.bf16 %v2790_v17, %v2790_v17  ;;  %v2596_v23 = vadd.f32 %v2595_v19, %v2060_v18 }
 0x27c   : > { %v2062_v25 = vpop.f32.mrf.mxu0  ;;  %v2598_v28 = vpop.f32.mrf.mxu1 }
 0x27d   : > { %3417 = vst.msk [vmem:[%s4991_s29 + $0x194] sm:$0xf] %vm3315_vm2, %v3999_v22  ;;  %v2791_v26 = vmax.f32 %v2596_v23, 0.0  ;;  %v2063_v27 = vadd.f32 %v5690_v8, %v2062_v25 }
 0x27e   : > { %v2064_v29 = vpop.f32.mrf.mxu0  ;;  %v4299_v32 = vpop.f32.mrf.mxu1 }
 0x27f   : > { %v4000_v30 = vpack.c.bf16 %v2791_v26, %v2791_v26  ;;  %v2599_v31 = vadd.f32 %v2598_v28, %v2063_v27 }
 0x280   : > { %v2067_v33 = vpop.f32.mrf.mxu0  ;;  %v2603_v36 = vpop.f32.mrf.mxu1 }
 0x281   : > { %3418 = vst.msk [vmem:[%s4991_s29 + $0x198] sm:$0xf] %vm3315_vm2, %v4000_v30  ;;  %v2792_v34 = vmax.f32 %v2599_v31, 0.0  ;;  %v2068_v35 = vadd.f32 %v5690_v8, %v2067_v33 }
 0x282   : > { %v2069_v37 = vpop.f32.mrf.mxu0  ;;  %v4302_v40 = vpop.f32.mrf.mxu1 }
 0x283   : > { %v4001_v38 = vpack.c.bf16 %v2792_v34, %v2792_v34  ;;  %v2604_v21 = vadd.f32 %v2603_v36, %v2068_v35 }
 0x284   : > { %v2070_v41 = vpop.f32.mrf.mxu0  ;;  %v2606_v44 = vpop.f32.mrf.mxu1 }
 0x285   : > { %3419 = vst.msk [vmem:[%s4991_s29 + $0x19c] sm:$0xf] %vm3315_vm2, %v4001_v38  ;;  %v2793_v42 = vmax.f32 %v2604_v21, 0.0  ;;  %v2071_v43 = vadd.f32 %v5690_v8, %v2070_v41 }
 0x286   : > { %v2072_v45 = vpop.f32.mrf.mxu0  ;;  %v4303_v48 = vpop.f32.mrf.mxu1 }
 0x287   : > { %v4002_v46 = vpack.c.bf16 %v2793_v42, %v2793_v42  ;;  %v2607_v47 = vadd.f32 %v2606_v44, %v2071_v43 }
 0x288   : > { %v2075_v49 = vpop.f32.mrf.mxu0  ;;  %v2611_v52 = vpop.f32.mrf.mxu1 }
 0x289   : > { %3420 = vst.msk [vmem:[%s4991_s29 + $0x1a0] sm:$0xf] %vm3315_vm2, %v4002_v46  ;;  %v2794_v50 = vmax.f32 %v2607_v47, 0.0  ;;  %v2076_v51 = vadd.f32 %v5690_v8, %v2075_v49 }
 0x28a   : > { %v2077_v53 = vpop.f32.mrf.mxu0  ;;  %v4306_v56 = vpop.f32.mrf.mxu1 }
 0x28b   : > { %v4003_v54 = vpack.c.bf16 %v2794_v50, %v2794_v50  ;;  %v2612_v55 = vadd.f32 %v2611_v52, %v2076_v51 }
 0x28c   : > { %v2078_v57 = vpop.f32.mrf.mxu0  ;;  %v2614_v60 = vpop.f32.mrf.mxu1 }
 0x28d   : > { %3421 = vst.msk [vmem:[%s4991_s29 + $0x1a4] sm:$0xf] %vm3315_vm2, %v4003_v54  ;;  %v2795_v58 = vmax.f32 %v2612_v55, 0.0  ;;  %v2079_v59 = vadd.f32 %v5690_v8, %v2078_v57 }
 0x28e   : > { %v2080_v61 = vpop.f32.mrf.mxu0  ;;  %v4307_v63 = vpop.f32.mrf.mxu1 }
 0x28f   : > { %v4004_v0 = vpack.c.bf16 %v2795_v58, %v2795_v58  ;;  %v2615_v62 = vadd.f32 %v2614_v60, %v2079_v59 }
 0x290   : > { %v2083_v1 = vpop.f32.mrf.mxu0  ;;  %v2619_v4 = vpop.f32.mrf.mxu1 }
 0x291   : > { %3422 = vst.msk [vmem:[%s4991_s29 + $0x1a8] sm:$0xf] %vm3315_vm2, %v4004_v0  ;;  %v2796_v2 = vmax.f32 %v2615_v62, 0.0  ;;  %v2084_v3 = vadd.f32 %v5690_v8, %v2083_v1 }
 0x292   : > { %v2085_v5 = vpop.f32.mrf.mxu0  ;;  %v4310_v9 = vpop.f32.mrf.mxu1 }
 0x293   : > { %v4005_v6 = vpack.c.bf16 %v2796_v2, %v2796_v2  ;;  %v2620_v7 = vadd.f32 %v2619_v4, %v2084_v3 }
 0x294   : > { %v2086_v10 = vpop.f32.mrf.mxu0  ;;  %v2622_v13 = vpop.f32.mrf.mxu1 }
 0x295   : > { %3423 = vst.msk [vmem:[%s4991_s29 + $0x1ac] sm:$0xf] %vm3315_vm2, %v4005_v6  ;;  %v2797_v11 = vmax.f32 %v2620_v7, 0.0  ;;  %v2087_v12 = vadd.f32 %v5690_v8, %v2086_v10 }
 0x296   : > { %v2088_v39 = vpop.f32.mrf.mxu0  ;;  %v4311_v16 = vpop.f32.mrf.mxu1 }
 0x297   : > { %v4006_v14 = vpack.c.bf16 %v2797_v11, %v2797_v11  ;;  %v2623_v15 = vadd.f32 %v2622_v13, %v2087_v12 }
 0x298   : > { %v2091_v17 = vpop.f32.mrf.mxu0  ;;  %v2627_v20 = vpop.f32.mrf.mxu1 }
 0x299   : > { %3424 = vst.msk [vmem:[%s4991_s29 + $0x1b0] sm:$0xf] %vm3315_vm2, %v4006_v14  ;;  %v2798_v18 = vmax.f32 %v2623_v15, 0.0  ;;  %v2092_v19 = vadd.f32 %v5690_v8, %v2091_v17 }
 0x29a   : > { %v2093_v22 = vpop.f32.mrf.mxu0  ;;  %v4314_v25 = vpop.f32.mrf.mxu1 }
 0x29b   : > { %v4007_v23 = vpack.c.bf16 %v2798_v18, %v2798_v18  ;;  %v2628_v24 = vadd.f32 %v2627_v20, %v2092_v19 }
 0x29c   : > { %v2094_v26 = vpop.f32.mrf.mxu0  ;;  %v2630_v29 = vpop.f32.mrf.mxu1 }
 0x29d   : > { %3425 = vst.msk [vmem:[%s4991_s29 + $0x1b4] sm:$0xf] %vm3315_vm2, %v4007_v23  ;;  %v2799_v27 = vmax.f32 %v2628_v24, 0.0  ;;  %v2095_v28 = vadd.f32 %v5690_v8, %v2094_v26 }
 0x29e   : > { %v2096_v30 = vpop.f32.mrf.mxu0  ;;  %v4315_v33 = vpop.f32.mrf.mxu1 }
 0x29f   : > { %v4008_v31 = vpack.c.bf16 %v2799_v27, %v2799_v27  ;;  %v2631_v32 = vadd.f32 %v2630_v29, %v2095_v28 }
 0x2a0   : > { %v2099_v34 = vpop.f32.mrf.mxu0  ;;  %v2635_v37 = vpop.f32.mrf.mxu1 }
 0x2a1   : > { %3426 = vst.msk [vmem:[%s4991_s29 + $0x1b8] sm:$0xf] %vm3315_vm2, %v4008_v31  ;;  %v2800_v35 = vmax.f32 %v2631_v32, 0.0  ;;  %v2100_v36 = vadd.f32 %v5690_v8, %v2099_v34 }
 0x2a2   : > { %v2101_v38 = vpop.f32.mrf.mxu0  ;;  %v4318_v41 = vpop.f32.mrf.mxu1 }
 0x2a3   : > { %v4009_v21 = vpack.c.bf16 %v2800_v35, %v2800_v35  ;;  %v2636_v40 = vadd.f32 %v2635_v37, %v2100_v36 }
 0x2a4   : > { %v2102_v42 = vpop.f32.mrf.mxu0  ;;  %v2638_v45 = vpop.f32.mrf.mxu1 }
 0x2a5   : > { %3427 = vst.msk [vmem:[%s4991_s29 + $0x1bc] sm:$0xf] %vm3315_vm2, %v4009_v21  ;;  %v2801_v43 = vmax.f32 %v2636_v40, 0.0  ;;  %v2103_v44 = vadd.f32 %v5690_v8, %v2102_v42 }
 0x2a6   : > { %v2104_v46 = vpop.f32.mrf.mxu0  ;;  %v4319_v49 = vpop.f32.mrf.mxu1 }
 0x2a7   : > { %v4010_v47 = vpack.c.bf16 %v2801_v43, %v2801_v43  ;;  %v2639_v48 = vadd.f32 %v2638_v45, %v2103_v44 }
 0x2a8   : > { %v2107_v50 = vpop.f32.mrf.mxu0  ;;  %v2643_v53 = vpop.f32.mrf.mxu1 }
 0x2a9   : > { %3428 = vst.msk [vmem:[%s4991_s29 + $0x1c0] sm:$0xf] %vm3315_vm2, %v4010_v47  ;;  %v2802_v51 = vmax.f32 %v2639_v48, 0.0  ;;  %v2108_v52 = vadd.f32 %v5690_v8, %v2107_v50 }
 0x2aa   : > { %v2109_v54 = vpop.f32.mrf.mxu0  ;;  %v4322_v57 = vpop.f32.mrf.mxu1 }
 0x2ab   : > { %v4011_v55 = vpack.c.bf16 %v2802_v51, %v2802_v51  ;;  %v2644_v56 = vadd.f32 %v2643_v53, %v2108_v52 }
 0x2ac   : > { %v2110_v58 = vpop.f32.mrf.mxu0  ;;  %v2646_v61 = vpop.f32.mrf.mxu1 }
 0x2ad   : > { %3429 = vst.msk [vmem:[%s4991_s29 + $0x1c4] sm:$0xf] %vm3315_vm2, %v4011_v55  ;;  %v2803_v59 = vmax.f32 %v2644_v56, 0.0  ;;  %v2111_v60 = vadd.f32 %v5690_v8, %v2110_v58 }
 0x2ae   : > { %v2112_v0 = vpop.f32.mrf.mxu0  ;;  %v4323_v1 = vpop.f32.mrf.mxu1 }
 0x2af   : > { %v4012_v62 = vpack.c.bf16 %v2803_v59, %v2803_v59  ;;  %v2647_v63 = vadd.f32 %v2646_v61, %v2111_v60 }
 0x2b0   : > { %v2115_v2 = vpop.f32.mrf.mxu0  ;;  %v2651_v5 = vpop.f32.mrf.mxu1 }
 0x2b1   : > { %3430 = vst.msk [vmem:[%s4991_s29 + $0x1c8] sm:$0xf] %vm3315_vm2, %v4012_v62  ;;  %v2804_v3 = vmax.f32 %v2647_v63, 0.0  ;;  %v2116_v4 = vadd.f32 %v5690_v8, %v2115_v2 }
 0x2b2   : > { %v2117_v6 = vpop.f32.mrf.mxu0  ;;  %v4326_v10 = vpop.f32.mrf.mxu1 }
 0x2b3   : > { %v4013_v7 = vpack.c.bf16 %v2804_v3, %v2804_v3  ;;  %v2652_v9 = vadd.f32 %v2651_v5, %v2116_v4 }
 0x2b4   : > { %v2118_v11 = vpop.f32.mrf.mxu0  ;;  %v2654_v39 = vpop.f32.mrf.mxu1 }
 0x2b5   : > { %3431 = vst.msk [vmem:[%s4991_s29 + $0x1cc] sm:$0xf] %vm3315_vm2, %v4013_v7  ;;  %v2805_v12 = vmax.f32 %v2652_v9, 0.0  ;;  %v2119_v13 = vadd.f32 %v5690_v8, %v2118_v11 }
 0x2b6   : > { %v2120_v14 = vpop.f32.mrf.mxu0  ;;  %v4327_v17 = vpop.f32.mrf.mxu1 }
 0x2b7   : > { %v4014_v15 = vpack.c.bf16 %v2805_v12, %v2805_v12  ;;  %v2655_v16 = vadd.f32 %v2654_v39, %v2119_v13 }
 0x2b8   : > { %v2123_v18 = vpop.f32.mrf.mxu0  ;;  %v2659_v22 = vpop.f32.mrf.mxu1 }
 0x2b9   : > { %3432 = vst.msk [vmem:[%s4991_s29 + $0x1d0] sm:$0xf] %vm3315_vm2, %v4014_v15  ;;  %v2806_v19 = vmax.f32 %v2655_v16, 0.0  ;;  %v2124_v20 = vadd.f32 %v5690_v8, %v2123_v18 }
 0x2ba   : > { %v2125_v23 = vpop.f32.mrf.mxu0  ;;  %v4330_v26 = vpop.f32.mrf.mxu1 }
 0x2bb   : > { %v4015_v24 = vpack.c.bf16 %v2806_v19, %v2806_v19  ;;  %v2660_v25 = vadd.f32 %v2659_v22, %v2124_v20 }
 0x2bc   : > { %v2126_v27 = vpop.f32.mrf.mxu0  ;;  %v2662_v30 = vpop.f32.mrf.mxu1 }
 0x2bd   : > { %3433 = vst.msk [vmem:[%s4991_s29 + $0x1d4] sm:$0xf] %vm3315_vm2, %v4015_v24  ;;  %v2807_v28 = vmax.f32 %v2660_v25, 0.0  ;;  %v2127_v29 = vadd.f32 %v5690_v8, %v2126_v27 }
 0x2be   : > { %v2128_v31 = vpop.f32.mrf.mxu0  ;;  %v4331_v34 = vpop.f32.mrf.mxu1 }
 0x2bf   : > { %v4016_v32 = vpack.c.bf16 %v2807_v28, %v2807_v28  ;;  %v2663_v33 = vadd.f32 %v2662_v30, %v2127_v29 }
 0x2c0   : > { %v2131_v35 = vpop.f32.mrf.mxu0  ;;  %v2667_v38 = vpop.f32.mrf.mxu1 }
 0x2c1   : > { %3434 = vst.msk [vmem:[%s4991_s29 + $0x1d8] sm:$0xf] %vm3315_vm2, %v4016_v32  ;;  %v2808_v36 = vmax.f32 %v2663_v33, 0.0  ;;  %v2132_v37 = vadd.f32 %v5690_v8, %v2131_v35 }
 0x2c2   : > { %v2133_v21 = vpop.f32.mrf.mxu0  ;;  %v4334_v42 = vpop.f32.mrf.mxu1 }
 0x2c3   : > { %v4017_v40 = vpack.c.bf16 %v2808_v36, %v2808_v36  ;;  %v2668_v41 = vadd.f32 %v2667_v38, %v2132_v37 }
 0x2c4   : > { %v2134_v43 = vpop.f32.mrf.mxu0  ;;  %v2670_v46 = vpop.f32.mrf.mxu1 }
 0x2c5   : > { %3435 = vst.msk [vmem:[%s4991_s29 + $0x1dc] sm:$0xf] %vm3315_vm2, %v4017_v40  ;;  %v2809_v44 = vmax.f32 %v2668_v41, 0.0  ;;  %v2135_v45 = vadd.f32 %v5690_v8, %v2134_v43 }
 0x2c6   : > { %v2136_v47 = vpop.f32.mrf.mxu0  ;;  %v4335_v50 = vpop.f32.mrf.mxu1 }
 0x2c7   : > { %v4018_v48 = vpack.c.bf16 %v2809_v44, %v2809_v44  ;;  %v2671_v49 = vadd.f32 %v2670_v46, %v2135_v45 }
 0x2c8   : > { %v2139_v51 = vpop.f32.mrf.mxu0  ;;  %v2675_v54 = vpop.f32.mrf.mxu1 }
 0x2c9   : > { %3436 = vst.msk [vmem:[%s4991_s29 + $0x1e0] sm:$0xf] %vm3315_vm2, %v4018_v48  ;;  %v2810_v52 = vmax.f32 %v2671_v49, 0.0  ;;  %v2140_v53 = vadd.f32 %v5690_v8, %v2139_v51 }
 0x2ca   : > { %v2141_v55 = vpop.f32.mrf.mxu0  ;;  %v4338_v58 = vpop.f32.mrf.mxu1 }
 0x2cb   : > { %v4019_v56 = vpack.c.bf16 %v2810_v52, %v2810_v52  ;;  %v2676_v57 = vadd.f32 %v2675_v54, %v2140_v53 }
 0x2cc   : > { %v2142_v59 = vpop.f32.mrf.mxu0  ;;  %v2678_v0 = vpop.f32.mrf.mxu1 }
 0x2cd   : > { %3437 = vst.msk [vmem:[%s4991_s29 + $0x1e4] sm:$0xf] %vm3315_vm2, %v4019_v56  ;;  %v2811_v60 = vmax.f32 %v2676_v57, 0.0  ;;  %v2143_v61 = vadd.f32 %v5690_v8, %v2142_v59 }
 0x2ce   : > { %v2144_v62 = vpop.f32.mrf.mxu0  ;;  %v4339_v2 = vpop.f32.mrf.mxu1 }
 0x2cf   : > { %v4020_v63 = vpack.c.bf16 %v2811_v60, %v2811_v60  ;;  %v2679_v1 = vadd.f32 %v2678_v0, %v2143_v61 }
 0x2d0   : > { %v2147_v3 = vpop.f32.mrf.mxu0  ;;  %v2683_v6 = vpop.f32.mrf.mxu1 }
 0x2d1   : > { %3438 = vst.msk [vmem:[%s4991_s29 + $0x1e8] sm:$0xf] %vm3315_vm2, %v4020_v63  ;;  %v2812_v4 = vmax.f32 %v2679_v1, 0.0  ;;  %v2148_v5 = vadd.f32 %v5690_v8, %v2147_v3 }
 0x2d2   : > { %v2149_v7 = vpop.f32.mrf.mxu0  ;;  %v4342_v11 = vpop.f32.mrf.mxu1 }
 0x2d3   : > { %v4021_v9 = vpack.c.bf16 %v2812_v4, %v2812_v4  ;;  %v2684_v10 = vadd.f32 %v2683_v6, %v2148_v5 }
 0x2d4   : > { %v2150_v12 = vpop.f32.mrf.mxu0  ;;  %v2686_v39 = vpop.f32.mrf.mxu1 }
 0x2d5   : > { %3439 = vst.msk [vmem:[%s4991_s29 + $0x1ec] sm:$0xf] %vm3315_vm2, %v4021_v9  ;;  %v2813_v13 = vmax.f32 %v2684_v10, 0.0 }
 0x2d6   : > { %v2151_v14 = vpop.f32.mrf.mxu0  ;;  %v4343_v16 = vpop.f32.mrf.mxu1 }
 0x2d7   : > { %v4022_v15 = vpack.c.bf16 %v2813_v13, %v2813_v13 }
 0x2d9   : > { %3440 = vst.msk [vmem:[%s4991_s29 + $0x1f0] sm:$0xf] %vm3315_vm2, %v4022_v15 }
 0x2da PF: > { %s13_s12 = sadd.s32 1, %s4623_s12  }
 0x2db   : > { %p10_p4 = scmp.ge.s32.totalorder %s13_s12, 4  }
 0x2dd   :  { %12 = sbr.rel (!%p10_p4) target bundleno = 1 (0x1), region = 65 }

// kernel: mixture_forward.3
= control target key start
LH: loop header
LB: loop body
LE: loop exit
PB: predicated region body
PF: predicated region fallthrough
CT: control target
= control target key end

     0   :  { %s7839_s13 = smov 0   ;;  %s8746_s0 = inlined_call_operand.vmem [shape: bf16[2,8,4000], index: 0, kind: input, shape index: {}]   ;;  %s8747_s1 = inlined_call_operand.vmem [shape: bf16[2,64,4000], index: 1, kind: input, shape index: {}]   ;;  %s8748_s2 = inlined_call_operand.vmem [shape: f32[2,1,64], index: 2, kind: input, shape index: {}]   ;;  %s8749_s3 = inlined_call_operand.vmem [shape: bf16[8,9987], index: 3, kind: input, shape index: {}]   ;;  %s8750_s4 = inlined_call_operand.vmem [shape: bf16[2,64,9987], index: 4, kind: input, shape index: {}]   ;;  %s8751_s5 = inlined_call_operand.vmem [shape: f32[2,64,64], index: 5, kind: input, shape index: {}]   ;;  %s8752_s6 = inlined_call_operand.vmem [shape: f32[8,8], index: 6, kind: input, shape index: {}]   ;;  %s8753_s7 = inlined_call_operand.vmem [shape: f32[2,64,64], index: 7, kind: input, shape index: {}]   ;;  %s8754_s8 = inlined_call_operand.vmem [shape: f32[2,10,64], index: 8, kind: input, shape index: {}]   ;;  %s8755_s9 = inlined_call_operand.vmem [shape: f32[2,1,10], index: 9, kind: input, shape index: {}]   ;;  %s8756_s10 = inlined_call_operand.vmem [shape: f32[2,8,10], index: 10, kind: output, shape index: {}]  }
   0x1 LB: > { %s6467_s14 = sadd.s32 4294967295, %s7780_s13   ;;  %p6471_p0 = scmp.ge.s32.totalorder %s7780_s13, 1  ;;  %s7780_s13 = sphi %s7839_s13, %s20_s13  }
   0x2   : > { %p378_p1 = scmp.lt.s32.totalorder %s7780_s13, 3 }
   0x4   : > { %p379_p2 = pnand %p6471_p0, %p378_p1 }
   0x5   : > { %p446_p3 = scmp.lt.s32.totalorder (!%p379_p2), %s6467_s14, 1 }
   0x6   : > { %382 = sbr.rel (%p379_p2) target bundleno = 1977 (0x7b9), region = 60 }
   0xb   : > { %s8758_s14 = smov (!%p446_p3, %s6467_s14), 1  ;;  %vm1385_vm0 = vcmask 261120   ;;  %vm4266_vm1 = vcmask 23552   ;;  %vm7783_vm2 = vmmov 0   ;;  %vm5882_vm3 = vcmask 523264  }
   0xc   : > { %s7073_s15 = sshll.u32 %s8758_s14, 10  ;;  %s7072_s19 = sshll.u32 %s8758_s14, 7  ;;  %vm5981_vm4 = vcmask 64512   ;;  %vm6334_vm6 = vcmask 80896  }
   0xd   : > { %s7853_s18 = scalar_lea.vmem %s8747_s1, %s7073_s15  ;;  %s7867_s22 = scalar_lea.vmem %s8746_s0, %s7072_s19 }
   0xe   : > { %v599_v0 = vld [vmem:[%s7853_s18 + $0x300] sm:$0xff]  ;;  %v600_v2 = vld [vmem:[%s7853_s18 + $0x308] sm:$0xff]  ;;  %v601_v34 = vld [vmem:[%s7853_s18 + $0x310] sm:$0xff]  ;;  %s7174_s23 = smul.u32 2528, %s8758_s14  ;;  %s458_s29 = scalar_lea.vmem %s8748_s2, %s8758_s14 }
   0xf   : > { %v615_v1 = vld [vmem:[%s7853_s18 + $0x380] sm:$0xff]  ;;  %v616_v5 = vld [vmem:[%s7853_s18 + $0x388] sm:$0xff]  ;;  %v617_v35 = vld [vmem:[%s7853_s18 + $0x390] sm:$0xff]  ;;  %s7076_s15 = sshll.u32 %s8758_s14, 4  ;;  %s481_s21 = scalar_lea.vmem %s8755_s9, %s8758_s14 }
  0x10   : > { %v6614_v3 = vcombine.high %v599_v0, %v615_v1  ;;  %v6613_v4 = vcombine.low %v599_v0, %v615_v1  ;;  %v567_v6 = vld [vmem:[%s7853_s18 + $0x200] sm:$0xff]  ;;  %v6616_v8 = vcombine.high %v600_v2, %v616_v5  ;;  %v6615_v9 = vcombine.low %v600_v2, %v616_v5  ;;  %v568_v11 = vld [vmem:[%s7853_s18 + $0x208] sm:$0xff]  ;;  %v602_v36 = vld [vmem:[%s7853_s18 + $0x318] sm:$0xff]  ;;  %s7887_s26 = scalar_lea.vmem %s8750_s4, %s7174_s23 }
  0x11   : > { %v583_v7 = vld [vmem:[%s7853_s18 + $0x280] sm:$0xff]  ;;  %v584_v12 = vld [vmem:[%s7853_s18 + $0x288] sm:$0xff]  ;;  %v618_v37 = vld [vmem:[%s7853_s18 + $0x398] sm:$0xff]  ;;  %v6618_v40 = vcombine.high %v601_v34, %v617_v35  ;;  %v6617_v48 = vcombine.low %v601_v34, %v617_v35 }
  0x12   : > { %v6582_v10 = vcombine.high %v567_v6, %v583_v7  ;;  %1409 = vmatprep.subr.bf16.mxu0 %v6614_v3  ;;  %v6584_v13 = vcombine.high %v568_v11, %v584_v12  ;;  %1449 = vmatprep.subr.bf16.mxu1 %v6616_v8  ;;  %v487_v14 = vld [vmem:[%s7867_s22] sm:$0xff]  ;;  %v488_v18 = vld [vmem:[%s7867_s22 + $0x8] sm:$0xff]  ;;  %v6581_v22 = vcombine.low %v567_v6, %v583_v7  ;;  %v569_v42 = vld [vmem:[%s7853_s18 + $0x210] sm:$0xff] }
  0x13   : > { %1410 = vmatpush1.bf16.xpose.msra.mxu0 %v6613_v4  ;;  %1450 = vmatpush1.bf16.xpose.msra.mxu1 %v6615_v9  ;;  %v535_v15 = vld [vmem:[%s7853_s18 + $0x100] sm:$0xff]  ;;  %v6486_v17 = vcombine.high %v487_v14, %v487_v14  ;;  %v536_v19 = vld [vmem:[%s7853_s18 + $0x108] sm:$0xff]  ;;  %v6488_v21 = vcombine.high %v488_v18, %v488_v18  ;;  %v6583_v23 = vcombine.low %v568_v11, %v584_v12  ;;  %v585_v43 = vld [vmem:[%s7853_s18 + $0x290] sm:$0xff] }
  0x14   : > { %1411 = vmatprep.subr.bf16.mxu0 %v6582_v10  ;;  %1451 = vmatprep.subr.bf16.mxu1 %v6584_v13  ;;  %v551_v16 = vld [vmem:[%s7853_s18 + $0x180] sm:$0xff]  ;;  %v552_v20 = vld [vmem:[%s7853_s18 + $0x188] sm:$0xff]  ;;  %v6620_v41 = vcombine.high %v602_v36, %v618_v37  ;;  %v570_v44 = vld [vmem:[%s7853_s18 + $0x218] sm:$0xff]  ;;  %v6485_v47 = vcombine.low %v487_v14, %v487_v14  ;;  %v6487_v49 = vcombine.low %v488_v18, %v488_v18 }
  0x15   : > { %1433 = vmatprep.mubr.bf16.mxu0 %v6486_v17  ;;  %v6550_v24 = vcombine.high %v535_v15, %v551_v16  ;;  %1473 = vmatprep.mubr.bf16.mxu1 %v6488_v21  ;;  %v6552_v25 = vcombine.high %v536_v19, %v552_v20  ;;  %v503_v26 = vld [vmem:[%s7853_s18] sm:$0xff]  ;;  %v504_v28 = vld [vmem:[%s7853_s18 + $0x8] sm:$0xff]  ;;  %v6549_v30 = vcombine.low %v535_v15, %v551_v16  ;;  %v586_v45 = vld [vmem:[%s7853_s18 + $0x298] sm:$0xff] }
  0x16   : > { %v519_v27 = vld [vmem:[%s7853_s18 + $0x80] sm:$0xff]  ;;  %v520_v29 = vld [vmem:[%s7853_s18 + $0x88] sm:$0xff]  ;;  %v6551_v31 = vcombine.low %v536_v19, %v552_v20  ;;  %v7894_v46 = vld [vmem:[%s7867_s22 + $0x10] sm:$0xff]  ;;  %v6619_v51 = vcombine.low %v602_v36, %v618_v37  ;;  %v6586_v52 = vcombine.high %v569_v42, %v585_v43  ;;  %v6588_v53 = vcombine.high %v570_v44, %v586_v45 }
  0x17   : > { %v6518_v32 = vcombine.high %v503_v26, %v519_v27  ;;  %v6520_v33 = vcombine.high %v504_v28, %v520_v29  ;;  %v6517_v38 = vcombine.low %v503_v26, %v519_v27  ;;  %v6519_v39 = vcombine.low %v504_v28, %v520_v29  ;;  %v7897_v50 = vld [vmem:[%s7867_s22 + $0x18] sm:$0xff]  ;;  %v537_v56 = vld [vmem:[%s7853_s18 + $0x110] sm:$0xff]  ;;  %v603_v8 = vld [vmem:[%s7853_s18 + $0x320] sm:$0xff] }
  0x18   : > { %v6490_v54 = vcombine.high %v7894_v46, %v7894_v46  ;;  %v6492_v55 = vcombine.high %v7897_v50, %v7897_v50  ;;  %v553_v57 = vld [vmem:[%s7853_s18 + $0x190] sm:$0xff]  ;;  %v538_v58 = vld [vmem:[%s7853_s18 + $0x118] sm:$0xff]  ;;  %v6585_v60 = vcombine.low %v569_v42, %v585_v43  ;;  %v6587_v61 = vcombine.low %v570_v44, %v586_v45  ;;  %v619_v9 = vld [vmem:[%s7853_s18 + $0x3a0] sm:$0xff] }
  0x19   : > { %v554_v59 = vld [vmem:[%s7853_s18 + $0x198] sm:$0xff]  ;;  %v6554_v62 = vcombine.high %v537_v56, %v553_v57  ;;  %v505_v0 = vld [vmem:[%s7853_s18 + $0x10] sm:$0xff]  ;;  %v6553_v4 = vcombine.low %v537_v56, %v553_v57  ;;  %v604_v10 = vld [vmem:[%s7853_s18 + $0x328] sm:$0xff]  ;;  %v6622_v14 = vcombine.high %v603_v8, %v619_v9  ;;  %v6489_v21 = vcombine.low %v7894_v46, %v7894_v46 }
  0x1a   : > { %v6556_v63 = vcombine.high %v538_v58, %v554_v59  ;;  %v521_v1 = vld [vmem:[%s7853_s18 + $0x90] sm:$0xff]  ;;  %v506_v2 = vld [vmem:[%s7853_s18 + $0x18] sm:$0xff]  ;;  %v6555_v5 = vcombine.low %v538_v58, %v554_v59  ;;  %v620_v11 = vld [vmem:[%s7853_s18 + $0x3a8] sm:$0xff] }
  0x1b   : > { %1412 = vmatpush1.bf16.xpose.msra.mxu0 %v6581_v22  ;;  %1452 = vmatpush1.bf16.xpose.msra.mxu1 %v6583_v23  ;;  %v522_v3 = vld [vmem:[%s7853_s18 + $0x98] sm:$0xff]  ;;  %v6522_v6 = vcombine.high %v505_v0, %v521_v1  ;;  %v6521_v12 = vcombine.low %v505_v0, %v521_v1  ;;  %v6624_v15 = vcombine.high %v604_v10, %v620_v11  ;;  %v571_v16 = vld [vmem:[%s7853_s18 + $0x220] sm:$0xff]  ;;  %v572_v18 = vld [vmem:[%s7853_s18 + $0x228] sm:$0xff] }
  0x1c   : > { %1413 = vmatprep.subr.bf16.mxu0 %v6550_v24  ;;  %1453 = vmatprep.subr.bf16.mxu1 %v6552_v25  ;;  %v6524_v7 = vcombine.high %v506_v2, %v522_v3  ;;  %v6523_v13 = vcombine.low %v506_v2, %v522_v3  ;;  %v587_v17 = vld [vmem:[%s7853_s18 + $0x2a0] sm:$0xff]  ;;  %v588_v19 = vld [vmem:[%s7853_s18 + $0x2a8] sm:$0xff]  ;;  %v6621_v22 = vcombine.low %v603_v8, %v619_v9  ;;  %v605_v46 = vld [vmem:[%s7853_s18 + $0x330] sm:$0xff] }
  0x1d   : > { %v7920_v20 = vld [vmem:[%s7867_s22 + $0x20] sm:$0xff]  ;;  %v6491_v23 = vcombine.low %v7897_v50, %v7897_v50  ;;  %v7927_v24 = vld [vmem:[%s7867_s22 + $0x28] sm:$0xff]  ;;  %v6623_v25 = vcombine.low %v604_v10, %v620_v11  ;;  %v6590_v26 = vcombine.high %v571_v16, %v587_v17  ;;  %v6592_v27 = vcombine.high %v572_v18, %v588_v19  ;;  %v574_v56 = vld [vmem:[%s7853_s18 + $0x238] sm:$0xff] }
  0x1e   : > { %v6494_v28 = vcombine.high %v7920_v20, %v7920_v20  ;;  %v6496_v29 = vcombine.high %v7927_v24, %v7927_v24  ;;  %v6589_v34 = vcombine.low %v571_v16, %v587_v17  ;;  %v6591_v35 = vcombine.low %v572_v18, %v588_v19  ;;  %v590_v57 = vld [vmem:[%s7853_s18 + $0x2b8] sm:$0xff]  ;;  %v7950_v58 = vld [vmem:[%s7867_s22 + $0x30] sm:$0xff] }
  0x1f   : > { %v6493_v59 = vcombine.low %v7920_v20, %v7920_v20  ;;  %v6596_v1 = vcombine.high %v574_v56, %v590_v57  ;;  %v6498_v2 = vcombine.high %v7950_v58, %v7950_v58  ;;  %v6595_v9 = vcombine.low %v574_v56, %v590_v57  ;;  %v607_v20 = vld [vmem:[%s7853_s18 + $0x340] sm:$0xff] }
  0x23   : > { %1414 = vmatpush1.bf16.xpose.msra.mxu0 %v6549_v30  ;;  %1454 = vmatpush1.bf16.xpose.msra.mxu1 %v6551_v31  ;;  %v539_v30 = vld [vmem:[%s7853_s18 + $0x120] sm:$0xff] }
  0x24   : > { %1415 = vmatprep.subr.bf16.mxu0 %v6518_v32  ;;  %1455 = vmatprep.subr.bf16.mxu1 %v6520_v33  ;;  %v555_v31 = vld [vmem:[%s7853_s18 + $0x1a0] sm:$0xff]  ;;  %v540_v32 = vld [vmem:[%s7853_s18 + $0x128] sm:$0xff] }
  0x25   : > { %v556_v33 = vld [vmem:[%s7853_s18 + $0x1a8] sm:$0xff]  ;;  %v6558_v36 = vcombine.high %v539_v30, %v555_v31  ;;  %v6557_v42 = vcombine.low %v539_v30, %v555_v31 }
  0x26   : > { %v6560_v37 = vcombine.high %v540_v32, %v556_v33  ;;  %v6559_v43 = vcombine.low %v540_v32, %v556_v33  ;;  %v576_v30 = vld [vmem:[%s7853_s18 + $0x248] sm:$0xff]  ;;  %v7980_v32 = vld [vmem:[%s7867_s22 + $0x40] sm:$0xff] }
  0x27   : > { %v592_v31 = vld [vmem:[%s7853_s18 + $0x2c8] sm:$0xff] }
  0x28   : > { %v7983_v33 = vld [vmem:[%s7867_s22 + $0x48] sm:$0xff] }
  0x2b   : > { %1416 = vmatpush1.bf16.xpose.msra.mxu0 %v6517_v38  ;;  %1456 = vmatpush1.bf16.xpose.msra.mxu1 %v6519_v39  ;;  %v507_v38 = vld [vmem:[%s7853_s18 + $0x20] sm:$0xff] }
  0x2c   : > { %1489 = vmatprep.subr.bf16.mxu0 %v6618_v40  ;;  %1529 = vmatprep.subr.bf16.mxu1 %v6620_v41  ;;  %v523_v39 = vld [vmem:[%s7853_s18 + $0xa0] sm:$0xff]  ;;  %v508_v40 = vld [vmem:[%s7853_s18 + $0x28] sm:$0xff] }
  0x2d   : > { %v524_v41 = vld [vmem:[%s7853_s18 + $0xa8] sm:$0xff]  ;;  %v6526_v44 = vcombine.high %v507_v38, %v523_v39  ;;  %v6525_v50 = vcombine.low %v507_v38, %v523_v39  ;;  %v6600_v39 = vcombine.high %v576_v30, %v592_v31 }
  0x2e   : > { %v6528_v45 = vcombine.high %v508_v40, %v524_v41 }
  0x32   : > { %1434 = vmatmul.mubr.bf16.vlgmr.msra.gmra.mxu0 %v6485_v47  ;;  %1474 = vmatmul.mubr.bf16.vlgmr.msra.gmra.mxu1 %v6487_v49  ;;  %v621_v47 = vld [vmem:[%s7853_s18 + $0x3b0] sm:$0xff]  ;;  %v622_v49 = vld [vmem:[%s7853_s18 + $0x3b8] sm:$0xff] }
  0x33   : > { %1490 = vmatpush1.bf16.xpose.msra.mxu0 %v6617_v48  ;;  %1530 = vmatpush1.bf16.xpose.msra.mxu1 %v6619_v51  ;;  %v606_v48 = vld [vmem:[%s7853_s18 + $0x338] sm:$0xff]  ;;  %v6527_v51 = vcombine.low %v508_v40, %v524_v41  ;;  %v6502_v40 = vcombine.high %v7980_v32, %v7980_v32  ;;  %v6504_v41 = vcombine.high %v7983_v33, %v7983_v33 }
  0x34   : > { %1491 = vmatprep.subr.bf16.mxu0 %v6586_v52  ;;  %1531 = vmatprep.subr.bf16.mxu1 %v6588_v53  ;;  %v6626_v52 = vcombine.high %v605_v46, %v621_v47  ;;  %v6628_v53 = vcombine.high %v606_v48, %v622_v49 }
  0x35   : > { %1513 = vmatprep.mubr.bf16.mxu0 %v6490_v54  ;;  %1553 = vmatprep.mubr.bf16.mxu1 %v6492_v55  ;;  %v573_v54 = vld [vmem:[%s7853_s18 + $0x230] sm:$0xff] }
  0x36   : > { %v589_v55 = vld [vmem:[%s7853_s18 + $0x2b0] sm:$0xff] }
  0x37   : > { %v6594_v0 = vcombine.high %v573_v54, %v589_v55  ;;  %v6593_v8 = vcombine.low %v573_v54, %v589_v55 }
  0x3b   : > { %1492 = vmatpush1.bf16.xpose.msra.mxu0 %v6585_v60  ;;  %1532 = vmatpush1.bf16.xpose.msra.mxu1 %v6587_v61  ;;  %v6625_v60 = vcombine.low %v605_v46, %v621_v47  ;;  %v6495_v61 = vcombine.low %v7927_v24, %v7927_v24  ;;  %v6599_v47 = vcombine.low %v576_v30, %v592_v31 }
  0x3c   : > { %1493 = vmatprep.subr.bf16.mxu0 %v6554_v62  ;;  %1533 = vmatprep.subr.bf16.mxu1 %v6556_v63  ;;  %v7957_v62 = vld [vmem:[%s7867_s22 + $0x38] sm:$0xff]  ;;  %v6627_v63 = vcombine.low %v606_v48, %v622_v49 }
  0x3d   : > { %v6500_v3 = vcombine.high %v7957_v62, %v7957_v62 }
  0x43   : > { %1494 = vmatpush1.bf16.xpose.msra.mxu0 %v6553_v4  ;;  %1534 = vmatpush1.bf16.xpose.msra.mxu1 %v6555_v5  ;;  %v541_v4 = vld [vmem:[%s7853_s18 + $0x130] sm:$0xff] }
  0x44   : > { %1495 = vmatprep.subr.bf16.mxu0 %v6522_v6  ;;  %1535 = vmatprep.subr.bf16.mxu1 %v6524_v7  ;;  %v557_v5 = vld [vmem:[%s7853_s18 + $0x1b0] sm:$0xff]  ;;  %v542_v6 = vld [vmem:[%s7853_s18 + $0x138] sm:$0xff] }
  0x45   : > { %v558_v7 = vld [vmem:[%s7853_s18 + $0x1b8] sm:$0xff]  ;;  %v6562_v10 = vcombine.high %v541_v4, %v557_v5  ;;  %v6561_v16 = vcombine.low %v541_v4, %v557_v5 }
  0x46   : > { %v6564_v11 = vcombine.high %v542_v6, %v558_v7  ;;  %v6563_v17 = vcombine.low %v542_v6, %v558_v7  ;;  %v578_v4 = vld [vmem:[%s7853_s18 + $0x258] sm:$0xff]  ;;  %v8010_v6 = vld [vmem:[%s7867_s22 + $0x50] sm:$0xff]  ;;  %v6501_v7 = vcombine.low %v7980_v32, %v7980_v32  ;;  %v611_v32 = vld [vmem:[%s7853_s18 + $0x360] sm:$0xff] }
  0x47   : > { %v594_v5 = vld [vmem:[%s7853_s18 + $0x2d8] sm:$0xff] }
  0x4b   : > { %1496 = vmatpush1.bf16.xpose.msra.mxu0 %v6521_v12  ;;  %1536 = vmatpush1.bf16.xpose.msra.mxu1 %v6523_v13  ;;  %v509_v12 = vld [vmem:[%s7853_s18 + $0x30] sm:$0xff] }
  0x4c   : > { %1569 = vmatprep.subr.bf16.mxu0 %v6622_v14  ;;  %1609 = vmatprep.subr.bf16.mxu1 %v6624_v15  ;;  %v525_v13 = vld [vmem:[%s7853_s18 + $0xb0] sm:$0xff]  ;;  %v510_v14 = vld [vmem:[%s7853_s18 + $0x38] sm:$0xff] }
  0x4d   : > { %v526_v15 = vld [vmem:[%s7853_s18 + $0xb8] sm:$0xff]  ;;  %v6530_v18 = vcombine.high %v509_v12, %v525_v13  ;;  %v6529_v24 = vcombine.low %v509_v12, %v525_v13  ;;  %v6604_v13 = vcombine.high %v578_v4, %v594_v5 }
  0x4e   : > { %v6532_v19 = vcombine.high %v510_v14, %v526_v15 }
  0x52   : > { %1514 = vmatmul.mubr.bf16.vlgmr.msra.gmra.mxu0 %v6489_v21  ;;  %1554 = vmatmul.mubr.bf16.vlgmr.msra.gmra.mxu1 %v6491_v23  ;;  %v623_v21 = vld [vmem:[%s7853_s18 + $0x3c0] sm:$0xff]  ;;  %v624_v23 = vld [vmem:[%s7853_s18 + $0x3c8] sm:$0xff] }
  0x53   : > { %1570 = vmatpush1.bf16.xpose.msra.mxu0 %v6621_v22  ;;  %1610 = vmatpush1.bf16.xpose.msra.mxu1 %v6623_v25  ;;  %v608_v22 = vld [vmem:[%s7853_s18 + $0x348] sm:$0xff]  ;;  %v6531_v25 = vcombine.low %v510_v14, %v526_v15  ;;  %v6506_v14 = vcombine.high %v8010_v6, %v8010_v6 }
  0x54   : > { %1571 = vmatprep.subr.bf16.mxu0 %v6590_v26  ;;  %1611 = vmatprep.subr.bf16.mxu1 %v6592_v27  ;;  %v6630_v26 = vcombine.high %v607_v20, %v623_v21  ;;  %v6632_v27 = vcombine.high %v608_v22, %v624_v23 }
  0x55   : > { %1593 = vmatprep.mubr.bf16.mxu0 %v6494_v28  ;;  %1633 = vmatprep.mubr.bf16.mxu1 %v6496_v29  ;;  %v575_v28 = vld [vmem:[%s7853_s18 + $0x240] sm:$0xff] }
  0x56   : > { %v591_v29 = vld [vmem:[%s7853_s18 + $0x2c0] sm:$0xff] }
  0x57   : > { %v6598_v38 = vcombine.high %v575_v28, %v591_v29  ;;  %v6597_v46 = vcombine.low %v575_v28, %v591_v29 }
  0x5b   : > { %1572 = vmatpush1.bf16.xpose.msra.mxu0 %v6589_v34  ;;  %1612 = vmatpush1.bf16.xpose.msra.mxu1 %v6591_v35  ;;  %v6497_v34 = vcombine.low %v7950_v58, %v7950_v58  ;;  %v6629_v35 = vcombine.low %v607_v20, %v623_v21  ;;  %v609_v58 = vld [vmem:[%s7853_s18 + $0x350] sm:$0xff]  ;;  %v6603_v21 = vcombine.low %v578_v4, %v594_v5 }
  0x5c   : > { %1573 = vmatprep.subr.bf16.mxu0 %v6558_v36  ;;  %1613 = vmatprep.subr.bf16.mxu1 %v6560_v37  ;;  %v6499_v36 = vcombine.low %v7957_v62, %v7957_v62  ;;  %v6631_v37 = vcombine.low %v608_v22, %v624_v23 }
  0x63   : > { %1574 = vmatpush1.bf16.xpose.msra.mxu0 %v6557_v42  ;;  %1614 = vmatpush1.bf16.xpose.msra.mxu1 %v6559_v43  ;;  %v543_v42 = vld [vmem:[%s7853_s18 + $0x140] sm:$0xff] }
  0x64   : > { %1575 = vmatprep.subr.bf16.mxu0 %v6526_v44  ;;  %1615 = vmatprep.subr.bf16.mxu1 %v6528_v45  ;;  %v559_v43 = vld [vmem:[%s7853_s18 + $0x1c0] sm:$0xff]  ;;  %v544_v44 = vld [vmem:[%s7853_s18 + $0x148] sm:$0xff] }
  0x65   : > { %v560_v45 = vld [vmem:[%s7853_s18 + $0x1c8] sm:$0xff]  ;;  %v6566_v48 = vcombine.high %v543_v42, %v559_v43  ;;  %v6565_v54 = vcombine.low %v543_v42, %v559_v43  ;;  %v6505_v42 = vcombine.low %v8010_v6, %v8010_v6  ;;  %v613_v6 = vld [vmem:[%s7853_s18 + $0x370] sm:$0xff] }
  0x66   : > { %v6568_v49 = vcombine.high %v544_v44, %v560_v45  ;;  %v6567_v55 = vcombine.low %v544_v44, %v560_v45  ;;  %v580_v43 = vld [vmem:[%s7853_s18 + $0x268] sm:$0xff]  ;;  %v8042_v45 = vld [vmem:[%s7867_s22 + $0x60] sm:$0xff] }
  0x67   : > { %v596_v44 = vld [vmem:[%s7853_s18 + $0x2e8] sm:$0xff] }
  0x6b   : > { %1576 = vmatpush1.bf16.xpose.msra.mxu0 %v6525_v50  ;;  %1616 = vmatpush1.bf16.xpose.msra.mxu1 %v6527_v51  ;;  %v511_v50 = vld [vmem:[%s7853_s18 + $0x40] sm:$0xff] }
  0x6c   : > { %1649 = vmatprep.subr.bf16.mxu0 %v6626_v52  ;;  %1689 = vmatprep.subr.bf16.mxu1 %v6628_v53  ;;  %v527_v51 = vld [vmem:[%s7853_s18 + $0xc0] sm:$0xff]  ;;  %v512_v52 = vld [vmem:[%s7853_s18 + $0x48] sm:$0xff] }
  0x6d   : > { %v528_v53 = vld [vmem:[%s7853_s18 + $0xc8] sm:$0xff]  ;;  %v6534_v56 = vcombine.high %v511_v50, %v527_v51  ;;  %v6533_v62 = vcombine.low %v511_v50, %v527_v51  ;;  %v6608_v51 = vcombine.high %v580_v43, %v596_v44 }
  0x6e   : > { %v6536_v57 = vcombine.high %v512_v52, %v528_v53 }
  0x72   : > { %1594 = vmatmul.mubr.bf16.vlgmr.msra.gmra.mxu0 %v6493_v59  ;;  %1634 = vmatmul.mubr.bf16.vlgmr.msra.gmra.mxu1 %v6495_v61  ;;  %v625_v59 = vld [vmem:[%s7853_s18 + $0x3d0] sm:$0xff]  ;;  %v626_v61 = vld [vmem:[%s7853_s18 + $0x3d8] sm:$0xff] }
  0x73   : > { %1650 = vmatpush1.bf16.xpose.msra.mxu0 %v6625_v60  ;;  %1690 = vmatpush1.bf16.xpose.msra.mxu1 %v6627_v63  ;;  %v610_v60 = vld [vmem:[%s7853_s18 + $0x358] sm:$0xff]  ;;  %v6535_v63 = vcombine.low %v512_v52, %v528_v53  ;;  %v6510_v52 = vcombine.high %v8042_v45, %v8042_v45 }
  0x74   : > { %1651 = vmatprep.subr.bf16.mxu0 %v6594_v0  ;;  %1691 = vmatprep.subr.bf16.mxu1 %v6596_v1  ;;  %v6634_v0 = vcombine.high %v609_v58, %v625_v59  ;;  %v6636_v1 = vcombine.high %v610_v60, %v626_v61 }
  0x75   : > { %1673 = vmatprep.mubr.bf16.mxu0 %v6498_v2  ;;  %1713 = vmatprep.mubr.bf16.mxu1 %v6500_v3  ;;  %v577_v2 = vld [vmem:[%s7853_s18 + $0x250] sm:$0xff] }
  0x76   : > { %v593_v3 = vld [vmem:[%s7853_s18 + $0x2d0] sm:$0xff] }
  0x77   : > { %v6602_v12 = vcombine.high %v577_v2, %v593_v3  ;;  %v6601_v20 = vcombine.low %v577_v2, %v593_v3 }
  0x7b   : > { %1652 = vmatpush1.bf16.xpose.msra.mxu0 %v6593_v8  ;;  %1692 = vmatpush1.bf16.xpose.msra.mxu1 %v6595_v9  ;;  %v6633_v8 = vcombine.low %v609_v58, %v625_v59  ;;  %v6503_v9 = vcombine.low %v7983_v33, %v7983_v33  ;;  %v627_v33 = vld [vmem:[%s7853_s18 + $0x3e0] sm:$0xff]  ;;  %v6607_v59 = vcombine.low %v580_v43, %v596_v44 }
  0x7c   : > { %1653 = vmatprep.subr.bf16.mxu0 %v6562_v10  ;;  %1693 = vmatprep.subr.bf16.mxu1 %v6564_v11  ;;  %v8017_v10 = vld [vmem:[%s7867_s22 + $0x58] sm:$0xff]  ;;  %v6635_v11 = vcombine.low %v610_v60, %v626_v61 }
  0x7d   : > { %v6508_v15 = vcombine.high %v8017_v10, %v8017_v10 }
  0x83   : > { %1654 = vmatpush1.bf16.xpose.msra.mxu0 %v6561_v16  ;;  %1694 = vmatpush1.bf16.xpose.msra.mxu1 %v6563_v17  ;;  %v545_v16 = vld [vmem:[%s7853_s18 + $0x150] sm:$0xff] }
  0x84   : > { %1655 = vmatprep.subr.bf16.mxu0 %v6530_v18  ;;  %1695 = vmatprep.subr.bf16.mxu1 %v6532_v19  ;;  %v561_v17 = vld [vmem:[%s7853_s18 + $0x1d0] sm:$0xff]  ;;  %v546_v18 = vld [vmem:[%s7853_s18 + $0x158] sm:$0xff] }
  0x85   : > { %v562_v19 = vld [vmem:[%s7853_s18 + $0x1d8] sm:$0xff]  ;;  %v6570_v22 = vcombine.high %v545_v16, %v561_v17  ;;  %v6569_v28 = vcombine.low %v545_v16, %v561_v17  ;;  %v6509_v16 = vcombine.low %v8042_v45, %v8042_v45 }
  0x86   : > { %v6572_v23 = vcombine.high %v546_v18, %v562_v19  ;;  %v6571_v29 = vcombine.low %v546_v18, %v562_v19  ;;  %v582_v17 = vld [vmem:[%s7853_s18 + $0x278] sm:$0xff]  ;;  %v8077_v19 = vld [vmem:[%s7867_s22 + $0x70] sm:$0xff] }
  0x87   : > { %v598_v18 = vld [vmem:[%s7853_s18 + $0x2f8] sm:$0xff] }
  0x88   : > { %v6611_v43 = vcombine.low %v582_v17, %v598_v18 }
  0x8b   : > { %1656 = vmatpush1.bf16.xpose.msra.mxu0 %v6529_v24  ;;  %1696 = vmatpush1.bf16.xpose.msra.mxu1 %v6531_v25  ;;  %v513_v24 = vld [vmem:[%s7853_s18 + $0x50] sm:$0xff] }
  0x8c   : > { %1729 = vmatprep.subr.bf16.mxu0 %v6630_v26  ;;  %1769 = vmatprep.subr.bf16.mxu1 %v6632_v27  ;;  %v529_v25 = vld [vmem:[%s7853_s18 + $0xd0] sm:$0xff]  ;;  %v514_v26 = vld [vmem:[%s7853_s18 + $0x58] sm:$0xff] }
  0x8d   : > { %v530_v27 = vld [vmem:[%s7853_s18 + $0xd8] sm:$0xff]  ;;  %v6538_v30 = vcombine.high %v513_v24, %v529_v25 }
  0x8e   : > { %v6540_v31 = vcombine.high %v514_v26, %v530_v27 }
  0x92   : > { %1674 = vmatmul.mubr.bf16.vlgmr.msra.gmra.mxu0 %v6497_v34  ;;  %1714 = vmatmul.mubr.bf16.vlgmr.msra.gmra.mxu1 %v6499_v36  ;;  %v612_v34 = vld [vmem:[%s7853_s18 + $0x368] sm:$0xff]  ;;  %v6537_v36 = vcombine.low %v513_v24, %v529_v25 }
  0x93   : > { %1730 = vmatpush1.bf16.xpose.msra.mxu0 %v6629_v35  ;;  %1770 = vmatpush1.bf16.xpose.msra.mxu1 %v6631_v37  ;;  %v628_v35 = vld [vmem:[%s7853_s18 + $0x3e8] sm:$0xff]  ;;  %v6539_v37 = vcombine.low %v514_v26, %v530_v27  ;;  %v6612_v26 = vcombine.high %v582_v17, %v598_v18  ;;  %v6514_v27 = vcombine.high %v8077_v19, %v8077_v19  ;;  %v7234_v17 = vld [vmem:[%s7887_s26 + $0x284] ss:$316 sps:$4 sm:$0xff]  }
  0x94   : > { %1731 = vmatprep.subr.bf16.mxu0 %v6598_v38  ;;  %1771 = vmatprep.subr.bf16.mxu1 %v6600_v39  ;;  %v6638_v38 = vcombine.high %v611_v32, %v627_v33  ;;  %v6640_v39 = vcombine.high %v612_v34, %v628_v35 }
  0x95   : > { %1753 = vmatprep.mubr.bf16.mxu0 %v6502_v40  ;;  %1793 = vmatprep.mubr.bf16.mxu1 %v6504_v41  ;;  %v579_v40 = vld [vmem:[%s7853_s18 + $0x260] sm:$0xff] }
  0x96   : > { %v595_v41 = vld [vmem:[%s7853_s18 + $0x2e0] sm:$0xff] }
  0x97   : > { %v6606_v50 = vcombine.high %v579_v40, %v595_v41  ;;  %v6605_v58 = vcombine.low %v579_v40, %v595_v41 }
  0x9b   : > { %1732 = vmatpush1.bf16.xpose.msra.mxu0 %v6597_v46  ;;  %1772 = vmatpush1.bf16.xpose.msra.mxu1 %v6599_v47  ;;  %v6637_v46 = vcombine.low %v611_v32, %v627_v33  ;;  %v6507_v47 = vcombine.low %v8017_v10, %v8017_v10 }
  0x9c   : > { %1733 = vmatprep.subr.bf16.mxu0 %v6566_v48  ;;  %1773 = vmatprep.subr.bf16.mxu1 %v6568_v49  ;;  %v8047_v48 = vld [vmem:[%s7867_s22 + $0x68] sm:$0xff]  ;;  %v6639_v49 = vcombine.low %v612_v34, %v628_v35  ;;  %v549_v34 = vld [vmem:[%s7853_s18 + $0x170] sm:$0xff] }
  0x9d   : > { %v6512_v53 = vcombine.high %v8047_v48, %v8047_v48  ;;  %v565_v35 = vld [vmem:[%s7853_s18 + $0x1f0] sm:$0xff] }
  0x9e   : > { %v6578_v44 = vcombine.high %v549_v34, %v565_v35 }
  0xa3   : > { %1734 = vmatpush1.bf16.xpose.msra.mxu0 %v6565_v54  ;;  %1774 = vmatpush1.bf16.xpose.msra.mxu1 %v6567_v55  ;;  %v547_v54 = vld [vmem:[%s7853_s18 + $0x160] sm:$0xff] }
  0xa4   : > { %1735 = vmatprep.subr.bf16.mxu0 %v6534_v56  ;;  %1775 = vmatprep.subr.bf16.mxu1 %v6536_v57  ;;  %v563_v55 = vld [vmem:[%s7853_s18 + $0x1e0] sm:$0xff]  ;;  %v548_v56 = vld [vmem:[%s7853_s18 + $0x168] sm:$0xff] }
  0xa5   : > { %v564_v57 = vld [vmem:[%s7853_s18 + $0x1e8] sm:$0xff]  ;;  %v6574_v60 = vcombine.high %v547_v54, %v563_v55  ;;  %v6573_v2 = vcombine.low %v547_v54, %v563_v55 }
  0xa6   : > { %v6576_v61 = vcombine.high %v548_v56, %v564_v57  ;;  %v6575_v3 = vcombine.low %v548_v56, %v564_v57  ;;  %v7217_v57 = vld [vmem:[%s7887_s26 + $0x76c] ss:$316 sps:$4 sm:$0xff]  }
  0xab   : > { %1736 = vmatpush1.bf16.xpose.msra.mxu0 %v6533_v62  ;;  %1776 = vmatpush1.bf16.xpose.msra.mxu1 %v6535_v63  ;;  %v515_v62 = vld [vmem:[%s7853_s18 + $0x60] sm:$0xff] }
  0xac   : > { %1809 = vmatprep.subr.bf16.mxu0 %v6634_v0  ;;  %1849 = vmatprep.subr.bf16.mxu1 %v6636_v1  ;;  %v531_v63 = vld [vmem:[%s7853_s18 + $0xe0] sm:$0xff]  ;;  %v516_v0 = vld [vmem:[%s7853_s18 + $0x68] sm:$0xff] }
  0xad   : > { %v532_v1 = vld [vmem:[%s7853_s18 + $0xe8] sm:$0xff]  ;;  %v6542_v4 = vcombine.high %v515_v62, %v531_v63  ;;  %v6541_v10 = vcombine.low %v515_v62, %v531_v63 }
  0xae   : > { %v6544_v5 = vcombine.high %v516_v0, %v532_v1  ;;  %v2051_v63 = vld [vmem:[%s8749_s3 + $0x8] sm:$0xff] }
  0xb2   : > { %1754 = vmatmul.mubr.bf16.vlgmr.msra.gmra.mxu0 %v6501_v7  ;;  %1794 = vmatmul.mubr.bf16.vlgmr.msra.gmra.mxu1 %v6503_v9  ;;  %v629_v7 = vld [vmem:[%s7853_s18 + $0x3f0] sm:$0xff]  ;;  %v630_v9 = vld [vmem:[%s7853_s18 + $0x3f8] sm:$0xff] }
  0xb3   : > { %1810 = vmatpush1.bf16.xpose.msra.mxu0 %v6633_v8  ;;  %1850 = vmatpush1.bf16.xpose.msra.mxu1 %v6635_v11  ;;  %v614_v8 = vld [vmem:[%s7853_s18 + $0x378] sm:$0xff]  ;;  %v6543_v11 = vcombine.low %v516_v0, %v532_v1  ;;  %v7219_v0 = vld [vmem:[%s7887_s26 + $0x770] ss:$316 sps:$4 sm:$0xff]  }
  0xb4   : > { %1811 = vmatprep.subr.bf16.mxu0 %v6602_v12  ;;  %1851 = vmatprep.subr.bf16.mxu1 %v6604_v13  ;;  %v6642_v12 = vcombine.high %v613_v6, %v629_v7  ;;  %v6644_v13 = vcombine.high %v614_v8, %v630_v9  ;;  %v6643_v24 = vcombine.low %v614_v8, %v630_v9  ;;  %v7225_v1 = vld [vmem:[%s7887_s26 + $0x4f4] ss:$316 sps:$4 sm:$0xff]  }
  0xb5   : > { %1833 = vmatprep.mubr.bf16.mxu0 %v6506_v14  ;;  %1873 = vmatprep.mubr.bf16.mxu1 %v6508_v15  ;;  %v581_v14 = vld [vmem:[%s7853_s18 + $0x270] sm:$0xff] }
  0xb6   : > { %v597_v15 = vld [vmem:[%s7853_s18 + $0x2f0] sm:$0xff] }
  0xb7   : > { %v6610_v25 = vcombine.high %v581_v14, %v597_v15  ;;  %v6609_v40 = vcombine.low %v581_v14, %v597_v15  ;;  %v7226_v15 = vld [vmem:[%s7887_s26 + $0x4f8] ss:$316 sps:$4 sm:$0xff]  }
  0xbb   : > { %1812 = vmatpush1.bf16.xpose.msra.mxu0 %v6601_v20  ;;  %1852 = vmatpush1.bf16.xpose.msra.mxu1 %v6603_v21  ;;  %v6641_v20 = vcombine.low %v613_v6, %v629_v7  ;;  %v6511_v21 = vcombine.low %v8047_v48, %v8047_v48  ;;  %v533_v48 = vld [vmem:[%s7853_s18 + $0xf0] sm:$0xff] }
  0xbc   : > { %1813 = vmatprep.subr.bf16.mxu0 %v6570_v22  ;;  %1853 = vmatprep.subr.bf16.mxu1 %v6572_v23  ;;  %v8082_v22 = vld [vmem:[%s7867_s22 + $0x78] sm:$0xff]  ;;  %v6484_v23 = vld [vmem:[%s458_s29] ss:$0 sm:$0xff]  ;;  %s7074_s22 = sshll.u32 %s8758_s14, 6 }
  0xbd   : > { %v6515_v62 = vcombine.low %v8082_v22, %v8082_v22  ;;  %s8646_s25 = scalar_lea.vmem %s8751_s5, %s7074_s22  ;;  %s8690_s30 = scalar_lea.vmem %s8753_s7, %s7074_s22 }
  0xbe   : > { %s6483_s22 = sshll.u32 %s8758_s14, 3 }
  0xc3   : > { %1814 = vmatpush1.bf16.xpose.msra.mxu0 %v6569_v28  ;;  %1854 = vmatpush1.bf16.xpose.msra.mxu1 %v6571_v29  ;;  %v6516_v29 = vcombine.high %v8082_v22, %v8082_v22  ;;  %v7240_v22 = vld [vmem:[%s7887_s26 + $0xc] ss:$316 sps:$4 sm:$0xff]  }
  0xc4   : > { %1815 = vmatprep.subr.bf16.mxu0 %v6538_v30  ;;  %1855 = vmatprep.subr.bf16.mxu1 %v6540_v31 }
  0xcb   : > { %1816 = vmatpush1.bf16.xpose.msra.mxu0 %v6537_v36  ;;  %1856 = vmatpush1.bf16.xpose.msra.mxu1 %v6539_v37 }
  0xcc   : > { %1889 = vmatprep.subr.bf16.mxu0 %v6638_v38  ;;  %1929 = vmatprep.subr.bf16.mxu1 %v6640_v39  ;;  %v550_v38 = vld [vmem:[%s7853_s18 + $0x178] sm:$0xff] }
  0xcd   : > { %v566_v39 = vld [vmem:[%s7853_s18 + $0x1f8] sm:$0xff] }
  0xce   : > { %v6580_v45 = vcombine.high %v550_v38, %v566_v39 }
  0xd2   : > { %1834 = vmatmul.mubr.bf16.vlgmr.msra.gmra.mxu0 %v6505_v42  ;;  %1874 = vmatmul.mubr.bf16.vlgmr.msra.gmra.mxu1 %v6507_v47  ;;  %v517_v47 = vld [vmem:[%s7853_s18 + $0x70] sm:$0xff] }
  0xd3   : > { %1890 = vmatpush1.bf16.xpose.msra.mxu0 %v6637_v46  ;;  %1930 = vmatpush1.bf16.xpose.msra.mxu1 %v6639_v49  ;;  %v518_v49 = vld [vmem:[%s7853_s18 + $0x78] sm:$0xff]  ;;  %v6545_v55 = vcombine.low %v517_v47, %v533_v48 }
  0xd4   : > { %1891 = vmatprep.subr.bf16.mxu0 %v6606_v50  ;;  %1931 = vmatprep.subr.bf16.mxu1 %v6608_v51  ;;  %v534_v50 = vld [vmem:[%s7853_s18 + $0xf8] sm:$0xff]  ;;  %v6577_v51 = vcombine.low %v549_v34, %v565_v35  ;;  %v7256_v34 = vld [vmem:[%s7887_s26 + $0x50c] ss:$316 sps:$4 sm:$0xff]   ;;  %s478_s18 = scalar_lea.vmem %s8754_s8, %s7076_s15 }
  0xd5   : > { %1913 = vmatprep.mubr.bf16.mxu0 %v6510_v52  ;;  %1953 = vmatprep.mubr.bf16.mxu1 %v6512_v53  ;;  %v6579_v52 = vcombine.low %v550_v38, %v566_v39  ;;  %v6546_v53 = vcombine.high %v517_v47, %v533_v48  ;;  %v6548_v54 = vcombine.high %v518_v49, %v534_v50  ;;  %v7254_v47 = vld [vmem:[%s7887_s26 + $0x508] ss:$316 sps:$4 sm:$0xff]  }
  0xd6   : > { %v6547_v56 = vcombine.low %v518_v49, %v534_v50  ;;  %v7259_v48 = vld [vmem:[%s7887_s26 + $0x28c] ss:$316 sps:$4 sm:$0xff]   ;;  %v7262_v49 = vld [vmem:[%s7887_s26 + $0x294] ss:$316 sps:$4 sm:$0xff]  }
  0xdb   : > { %1892 = vmatpush1.bf16.xpose.msra.mxu0 %v6605_v58  ;;  %1932 = vmatpush1.bf16.xpose.msra.mxu1 %v6607_v59  ;;  %v7221_v58 = vld [vmem:[%s7887_s26 + $0x774] ss:$316 sps:$4 sm:$0xff]   ;;  %v6513_v59 = vcombine.low %v8077_v19, %v8077_v19 }
  0xdc   : > { %1893 = vmatprep.subr.bf16.mxu0 %v6574_v60  ;;  %1933 = vmatprep.subr.bf16.mxu1 %v6576_v61  ;;  %v2050_v60 = vld [vmem:[%s8749_s3] sm:$0xff]  ;;  %v7229_v19 = vld [vmem:[%s7887_s26 + $0x278] ss:$316 sps:$4 sm:$0xff]  }
  0xdd   : > { %v7215_v61 = vld [vmem:[%s7887_s26 + $0x768] ss:$316 sps:$4 sm:$0xff]  }
  0xe3   : > { %1894 = vmatpush1.bf16.xpose.msra.mxu0 %v6573_v2  ;;  %1934 = vmatpush1.bf16.xpose.msra.mxu1 %v6575_v3  ;;  %v7228_v2 = vld [vmem:[%s7887_s26 + $0x4fc] ss:$316 sps:$4 sm:$0xff]   ;;  %v6651_v3 = vcombine.high %v2050_v60, %v2050_v60 }
  0xe4   : > { %1895 = vmatprep.subr.bf16.mxu0 %v6542_v4  ;;  %1935 = vmatprep.subr.bf16.mxu1 %v6544_v5  ;;  %v6653_v5 = vcombine.high %v2051_v63, %v2051_v63 }
  0xeb   : > { %1896 = vmatpush1.bf16.xpose.msra.mxu0 %v6541_v10  ;;  %1936 = vmatpush1.bf16.xpose.msra.mxu1 %v6543_v11 }
  0xec   : > { %1969 = vmatprep.subr.bf16.mxu0 %v6642_v12  ;;  %6645 = vmatprep.subr.msk.bf16.mxu1 %vm1385_vm0, %v6644_v13  ;;  %v7223_v12 = vld [vmem:[%s7887_s26 + $0x4f0] ss:$316 sps:$4 sm:$0xff]  }
  0xf2   : > { %v1435_v28 = vpop.f32.mrf.mxu0  ;;  %1914 = vmatmul.mubr.bf16.vlgmr.msra.gmra.mxu0 %v6509_v16  ;;  %1954 = vmatmul.mubr.bf16.vlgmr.msra.gmra.mxu1 %v6511_v21  ;;  %v1475_v31 = vpop.f32.mrf.mxu1  ;;  %v7231_v16 = vld [vmem:[%s7887_s26 + $0x27c] ss:$316 sps:$4 sm:$0xff]   ;;  %v7237_v21 = vld [vmem:[%s7887_s26 + $0x4] ss:$316 sps:$4 sm:$0xff]  }
  0xf3   : > { %v1436_v30 = vadd.f32 %v6484_v23, %v1435_v28  ;;  %1970 = vmatpush1.bf16.xpose.msra.mxu0 %v6641_v20  ;;  %2010 = vmatpush1.bf16.xpose.msra.mxu1 %v6643_v24  ;;  %v7232_v20 = vld [vmem:[%s7887_s26 + $0x280] ss:$316 sps:$4 sm:$0xff]   ;;  %v7238_v24 = vld [vmem:[%s7887_s26 + $0x8] ss:$316 sps:$4 sm:$0xff]   ;;  %v2052_v28 = vld [vmem:[%s8749_s3 + $0x10] sm:$0xff] }
  0xf4   : > { %v1437_v32 = vpop.f32.mrf.mxu0  ;;  %1971 = vmatprep.subr.bf16.mxu0 %v6610_v25  ;;  %6646 = vmatprep.subr.msk.bf16.mxu1 %vm1385_vm0, %v6612_v26  ;;  %v1477_v36 = vpop.f32.mrf.mxu1  ;;  %v7235_v23 = vld [vmem:[%s7887_s26] ss:$316 sps:$4 sm:$0xff]   ;;  %v6655_v35 = vcombine.high %v2052_v28, %v2052_v28 }
  0xf5   : > { %v1476_v33 = vadd.f32 %v1475_v31, %v1436_v30  ;;  %1993 = vmatprep.mubr.bf16.mxu0 %v6514_v27  ;;  %6649 = vmatprep.mubr.msk.bf16.mxu1 %vm1385_vm0, %v6516_v29  ;;  %v7247_v25 = vld [vmem:[%s7887_s26 + $0x77c] ss:$316 sps:$4 sm:$0xff]   ;;  %v7250_v26 = vld [vmem:[%s7887_s26 + $0x784] ss:$316 sps:$4 sm:$0xff]   ;;  %v6650_v27 = vcombine.low %v2050_v60, %v2050_v60  ;;  %v6652_v29 = vcombine.low %v2051_v63, %v2051_v63  ;;  %v8163_v63 = vld [vmem:[%s8749_s3 + $0x28] sm:$0xff] }
  0xf6   : > { %v1438_v37 = vpop.f32.mrf.mxu0  ;;  %v1478_v41 = vpop.f32.mrf.mxu1  ;;  %v7245_v30 = vld [vmem:[%s7887_s26 + $0x778] ss:$316 sps:$4 sm:$0xff]   ;;  %v7248_v32 = vld [vmem:[%s7887_s26 + $0x780] ss:$316 sps:$4 sm:$0xff]  }
  0xf7   : > { %v8135_v31 = vld [vmem:[%s8749_s3 + $0x18] sm:$0xff]  ;;  %v2054_v60 = vld [vmem:[%s8749_s3 + $0x20] sm:$0xff] }
  0xf8   : > { %v1439_v42 = vpop.f32.mrf.mxu0  ;;  %v1479_v46 = vpop.f32.mrf.mxu1  ;;  %v6657_v37 = vcombine.high %v8135_v31, %v8135_v31 }
  0xfb   : > { %1972 = vmatpush1.bf16.xpose.msra.mxu0 %v6609_v40  ;;  %2012 = vmatpush1.bf16.xpose.msra.mxu1 %v6611_v43 }
  0xfc   : > { %1973 = vmatprep.subr.bf16.mxu0 %v6578_v44  ;;  %6647 = vmatprep.subr.msk.bf16.mxu1 %vm1385_vm0, %v6580_v45  ;;  %v7251_v44 = vld [vmem:[%s7887_s26 + $0x500] ss:$316 sps:$4 sm:$0xff]  }
 0x103   : > { %1974 = vmatpush1.bf16.xpose.msra.mxu0 %v6577_v51  ;;  %2014 = vmatpush1.bf16.xpose.msra.mxu1 %v6579_v52  ;;  %v7257_v51 = vld [vmem:[%s7887_s26 + $0x288] ss:$316 sps:$4 sm:$0xff]   ;;  %v7260_v52 = vld [vmem:[%s7887_s26 + $0x290] ss:$316 sps:$4 sm:$0xff]  }
 0x104   : > { %1975 = vmatprep.subr.bf16.mxu0 %v6546_v53  ;;  %6648 = vmatprep.subr.msk.bf16.mxu1 %vm1385_vm0, %v6548_v54  ;;  %v7265_v53 = vld [vmem:[%s7887_s26 + $0x14] ss:$316 sps:$4 sm:$0xff]   ;;  %v7268_v54 = vld [vmem:[%s7887_s26 + $0x1c] ss:$316 sps:$4 sm:$0xff]  }
 0x10b   : > { %1976 = vmatpush1.bf16.xpose.msra.mxu0 %v6545_v55  ;;  %2016 = vmatpush1.bf16.xpose.msra.mxu1 %v6547_v56  ;;  %v7263_v55 = vld [vmem:[%s7887_s26 + $0x10] ss:$316 sps:$4 sm:$0xff]   ;;  %v7266_v56 = vld [vmem:[%s7887_s26 + $0x18] ss:$316 sps:$4 sm:$0xff]  }
 0x10c   : > { %4290 = vmatprep.subr.bf16.mxu0 %v7217_v57  ;;  %4330 = vmatprep.subr.bf16.mxu1 %v7221_v58  ;;  %v7273_v57 = vld [vmem:[%s7887_s26 + $0x78c] ss:$316 sps:$4 sm:$0xff]   ;;  %v7278_v58 = vld [vmem:[%s7887_s26 + $0x794] ss:$316 sps:$4 sm:$0xff]  }
 0x112   : > { %v1515_v4 = vpop.f32.mrf.mxu0  ;;  %1994 = vmatmul.mubr.bf16.vlgmr.msra.gmra.mxu0 %v6513_v59  ;;  %v1555_v7 = vpop.f32.mrf.mxu1  ;;  %2034 = vmatmul.mubr.bf16.vlgmr.msra.gmra.mxu1 %v6515_v62  ;;  %v6654_v59 = vcombine.low %v2052_v28, %v2052_v28  ;;  %v6656_v62 = vcombine.low %v8135_v31, %v8135_v31  ;;  %v2056_v28 = vld [vmem:[%s8749_s3 + $0x30] sm:$0xff]  ;;  %v8191_v31 = vld [vmem:[%s8749_s3 + $0x38] sm:$0xff] }
 0x113   : > { %v1516_v6 = vadd.f32 %v1515_v4, %v1476_v33  ;;  %4291 = vmatpush1.bf16.xpose.msra.mxu0 %v7215_v61  ;;  %4331 = vmatpush1.bf16.xpose.msra.mxu1 %v7219_v0  ;;  %v7253_v33 = vld [vmem:[%s7887_s26 + $0x504] ss:$316 sps:$4 sm:$0xff]   ;;  %v7276_v0 = vld [vmem:[%s7887_s26 + $0x790] ss:$316 sps:$4 sm:$0xff]  }
 0x114   : > { %v1517_v8 = vpop.f32.mrf.mxu0  ;;  %4292 = vmatprep.subr.bf16.mxu0 %v7225_v1  ;;  %4332 = vmatprep.subr.bf16.mxu1 %v7228_v2  ;;  %v1557_v10 = vpop.f32.mrf.mxu1  ;;  %v7271_v61 = vld [vmem:[%s7887_s26 + $0x788] ss:$316 sps:$4 sm:$0xff]   ;;  %v7281_v1 = vld [vmem:[%s7887_s26 + $0x514] ss:$316 sps:$4 sm:$0xff]   ;;  %v7284_v2 = vld [vmem:[%s7887_s26 + $0x51c] ss:$316 sps:$4 sm:$0xff]  }
 0x115   : > { %v1556_v9 = vadd.f32 %v1555_v7, %v1516_v6  ;;  %4314 = vmatprep.mubr.bf16.mxu0 %v6651_v3  ;;  %4354 = vmatprep.mubr.bf16.mxu1 %v6653_v5  ;;  %v6659_v3 = vcombine.high %v2054_v60, %v2054_v60  ;;  %v6661_v5 = vcombine.high %v8163_v63, %v8163_v63 }
 0x116   : > { %v1518_v11 = vpop.f32.mrf.mxu0  ;;  %v1558_v13 = vpop.f32.mrf.mxu1 }
 0x118   : > { %v1519_v14 = vpop.f32.mrf.mxu0  ;;  %v1559_v18 = vpop.f32.mrf.mxu1 }
 0x11b   : > { %4293 = vmatpush1.bf16.xpose.msra.mxu0 %v7223_v12  ;;  %4333 = vmatpush1.bf16.xpose.msra.mxu1 %v7226_v15  ;;  %v7279_v12 = vld [vmem:[%s7887_s26 + $0x510] ss:$316 sps:$4 sm:$0xff]   ;;  %v7282_v15 = vld [vmem:[%s7887_s26 + $0x518] ss:$316 sps:$4 sm:$0xff]  }
 0x11c   : > { %4294 = vmatprep.subr.bf16.mxu0 %v7231_v16  ;;  %4334 = vmatprep.subr.bf16.mxu1 %v7234_v17  ;;  %v7287_v16 = vld [vmem:[%s7887_s26 + $0x29c] ss:$316 sps:$4 sm:$0xff]   ;;  %v7290_v17 = vld [vmem:[%s7887_s26 + $0x2a4] ss:$316 sps:$4 sm:$0xff]  }
 0x123   : > { %4295 = vmatpush1.bf16.xpose.msra.mxu0 %v7229_v19  ;;  %4335 = vmatpush1.bf16.xpose.msra.mxu1 %v7232_v20  ;;  %v7285_v19 = vld [vmem:[%s7887_s26 + $0x298] ss:$316 sps:$4 sm:$0xff]   ;;  %v7288_v20 = vld [vmem:[%s7887_s26 + $0x2a0] ss:$316 sps:$4 sm:$0xff]  }
 0x124   : > { %4296 = vmatprep.subr.bf16.mxu0 %v7237_v21  ;;  %4336 = vmatprep.subr.bf16.mxu1 %v7240_v22  ;;  %v7293_v21 = vld [vmem:[%s7887_s26 + $0x24] ss:$316 sps:$4 sm:$0xff]   ;;  %v7296_v22 = vld [vmem:[%s7887_s26 + $0x2c] ss:$316 sps:$4 sm:$0xff]  }
 0x12b   : > { %4297 = vmatpush1.bf16.xpose.msra.mxu0 %v7235_v23  ;;  %4337 = vmatpush1.bf16.xpose.msra.mxu1 %v7238_v24  ;;  %v7291_v23 = vld [vmem:[%s7887_s26 + $0x20] ss:$316 sps:$4 sm:$0xff]   ;;  %v7294_v24 = vld [vmem:[%s7887_s26 + $0x28] ss:$316 sps:$4 sm:$0xff]  }
 0x12c   : > { %4370 = vmatprep.subr.bf16.mxu0 %v7247_v25  ;;  %4410 = vmatprep.subr.bf16.mxu1 %v7250_v26  ;;  %v7301_v25 = vld [vmem:[%s7887_s26 + $0x79c] ss:$316 sps:$4 sm:$0xff]   ;;  %v7306_v26 = vld [vmem:[%s7887_s26 + $0x7a4] ss:$316 sps:$4 sm:$0xff]  }
 0x132   : > { %v1595_v36 = vpop.f32.mrf.mxu0  ;;  %4315 = vmatmul.mubr.bf16.vlgmr.msra.gmra.mxu0 %v6650_v27  ;;  %4355 = vmatmul.mubr.bf16.vlgmr.msra.gmra.mxu1 %v6652_v29  ;;  %v1635_v39 = vpop.f32.mrf.mxu1  ;;  %v6658_v27 = vcombine.low %v2054_v60, %v2054_v60  ;;  %v7299_v29 = vld [vmem:[%s7887_s26 + $0x798] ss:$316 sps:$4 sm:$0xff]   ;;  %v2058_v60 = vld [vmem:[%s8749_s3 + $0x40] sm:$0xff] }
 0x133   : > { %v1596_v38 = vadd.f32 %v1595_v36, %v1556_v9  ;;  %4371 = vmatpush1.bf16.xpose.msra.mxu0 %v7245_v30  ;;  %4411 = vmatpush1.bf16.xpose.msra.mxu1 %v7248_v32  ;;  %v6660_v30 = vcombine.low %v8163_v63, %v8163_v63  ;;  %v7304_v32 = vld [vmem:[%s7887_s26 + $0x7a0] ss:$316 sps:$4 sm:$0xff]   ;;  %v8219_v63 = vld [vmem:[%s8749_s3 + $0x48] sm:$0xff] }
 0x134   : > { %v1597_v40 = vpop.f32.mrf.mxu0  ;;  %4372 = vmatprep.subr.bf16.mxu0 %v7253_v33  ;;  %4412 = vmatprep.subr.bf16.mxu1 %v7256_v34  ;;  %v1637_v42 = vpop.f32.mrf.mxu1  ;;  %v7309_v33 = vld [vmem:[%s7887_s26 + $0x524] ss:$316 sps:$4 sm:$0xff]   ;;  %v7312_v34 = vld [vmem:[%s7887_s26 + $0x52c] ss:$316 sps:$4 sm:$0xff]  }
 0x135   : > { %v1636_v41 = vadd.f32 %v1635_v39, %v1596_v38  ;;  %4394 = vmatprep.mubr.bf16.mxu0 %v6655_v35  ;;  %4434 = vmatprep.mubr.bf16.mxu1 %v6657_v37  ;;  %v6663_v35 = vcombine.high %v2056_v28, %v2056_v28  ;;  %v6665_v37 = vcombine.high %v8191_v31, %v8191_v31 }
 0x136   : > { %v1598_v43 = vpop.f32.mrf.mxu0  ;;  %v1638_v45 = vpop.f32.mrf.mxu1 }
 0x138   : > { %v1599_v46 = vpop.f32.mrf.mxu0  ;;  %v1639_v50 = vpop.f32.mrf.mxu1 }
 0x13b   : > { %4373 = vmatpush1.bf16.xpose.msra.mxu0 %v7251_v44  ;;  %4413 = vmatpush1.bf16.xpose.msra.mxu1 %v7254_v47  ;;  %v7307_v44 = vld [vmem:[%s7887_s26 + $0x520] ss:$316 sps:$4 sm:$0xff]   ;;  %v7310_v47 = vld [vmem:[%s7887_s26 + $0x528] ss:$316 sps:$4 sm:$0xff]  }
 0x13c   : > { %4374 = vmatprep.subr.bf16.mxu0 %v7259_v48  ;;  %4414 = vmatprep.subr.bf16.mxu1 %v7262_v49  ;;  %v7315_v48 = vld [vmem:[%s7887_s26 + $0x2ac] ss:$316 sps:$4 sm:$0xff]   ;;  %v7318_v49 = vld [vmem:[%s7887_s26 + $0x2b4] ss:$316 sps:$4 sm:$0xff]  }
 0x143   : > { %4375 = vmatpush1.bf16.xpose.msra.mxu0 %v7257_v51  ;;  %4415 = vmatpush1.bf16.xpose.msra.mxu1 %v7260_v52  ;;  %v7313_v51 = vld [vmem:[%s7887_s26 + $0x2a8] ss:$316 sps:$4 sm:$0xff]   ;;  %v7316_v52 = vld [vmem:[%s7887_s26 + $0x2b0] ss:$316 sps:$4 sm:$0xff]  }
 0x144   : > { %4376 = vmatprep.subr.bf16.mxu0 %v7265_v53  ;;  %4416 = vmatprep.subr.bf16.mxu1 %v7268_v54  ;;  %v7321_v53 = vld [vmem:[%s7887_s26 + $0x34] ss:$316 sps:$4 sm:$0xff]   ;;  %v7324_v54 = vld [vmem:[%s7887_s26 + $0x3c] ss:$316 sps:$4 sm:$0xff]  }
 0x14b   : > { %4377 = vmatpush1.bf16.xpose.msra.mxu0 %v7263_v55  ;;  %4417 = vmatpush1.bf16.xpose.msra.mxu1 %v7266_v56  ;;  %v7319_v55 = vld [vmem:[%s7887_s26 + $0x30] ss:$316 sps:$4 sm:$0xff]   ;;  %v7322_v56 = vld [vmem:[%s7887_s26 + $0x38] ss:$316 sps:$4 sm:$0xff]  }
 0x14c   : > { %4450 = vmatprep.subr.bf16.mxu0 %v7273_v57  ;;  %4490 = vmatprep.subr.bf16.mxu1 %v7278_v58  ;;  %v7329_v57 = vld [vmem:[%s7887_s26 + $0x7ac] ss:$316 sps:$4 sm:$0xff]   ;;  %v7334_v58 = vld [vmem:[%s7887_s26 + $0x7b4] ss:$316 sps:$4 sm:$0xff]  }
 0x152   : > { %v1675_v4 = vpop.f32.mrf.mxu0  ;;  %4395 = vmatmul.mubr.bf16.vlgmr.msra.gmra.mxu0 %v6654_v59  ;;  %v1715_v7 = vpop.f32.mrf.mxu1  ;;  %4435 = vmatmul.mubr.bf16.vlgmr.msra.gmra.mxu1 %v6656_v62  ;;  %v6662_v59 = vcombine.low %v2056_v28, %v2056_v28  ;;  %v6664_v62 = vcombine.low %v8191_v31, %v8191_v31  ;;  %v2060_v28 = vld [vmem:[%s8749_s3 + $0x50] sm:$0xff]  ;;  %v8247_v31 = vld [vmem:[%s8749_s3 + $0x58] sm:$0xff] }
 0x153   : > { %v1676_v6 = vadd.f32 %v1675_v4, %v1636_v41  ;;  %4451 = vmatpush1.bf16.xpose.msra.mxu0 %v7271_v61  ;;  %4491 = vmatpush1.bf16.xpose.msra.mxu1 %v7276_v0  ;;  %v7327_v61 = vld [vmem:[%s7887_s26 + $0x7a8] ss:$316 sps:$4 sm:$0xff]   ;;  %v7332_v0 = vld [vmem:[%s7887_s26 + $0x7b0] ss:$316 sps:$4 sm:$0xff]  }
 0x154   : > { %v1677_v8 = vpop.f32.mrf.mxu0  ;;  %4452 = vmatprep.subr.bf16.mxu0 %v7281_v1  ;;  %4492 = vmatprep.subr.bf16.mxu1 %v7284_v2  ;;  %v1717_v10 = vpop.f32.mrf.mxu1  ;;  %v7337_v1 = vld [vmem:[%s7887_s26 + $0x534] ss:$316 sps:$4 sm:$0xff]   ;;  %v7340_v2 = vld [vmem:[%s7887_s26 + $0x53c] ss:$316 sps:$4 sm:$0xff]  }
 0x155   : > { %v1716_v9 = vadd.f32 %v1715_v7, %v1676_v6  ;;  %4474 = vmatprep.mubr.bf16.mxu0 %v6659_v3  ;;  %4514 = vmatprep.mubr.bf16.mxu1 %v6661_v5  ;;  %v6667_v3 = vcombine.high %v2058_v60, %v2058_v60  ;;  %v6669_v5 = vcombine.high %v8219_v63, %v8219_v63 }
 0x156   : > { %v1678_v11 = vpop.f32.mrf.mxu0  ;;  %v1718_v13 = vpop.f32.mrf.mxu1 }
 0x158   : > { %v1679_v14 = vpop.f32.mrf.mxu0  ;;  %v1719_v18 = vpop.f32.mrf.mxu1 }
 0x15b   : > { %4453 = vmatpush1.bf16.xpose.msra.mxu0 %v7279_v12  ;;  %4493 = vmatpush1.bf16.xpose.msra.mxu1 %v7282_v15  ;;  %v7335_v12 = vld [vmem:[%s7887_s26 + $0x530] ss:$316 sps:$4 sm:$0xff]   ;;  %v7338_v15 = vld [vmem:[%s7887_s26 + $0x538] ss:$316 sps:$4 sm:$0xff]  }
 0x15c   : > { %4454 = vmatprep.subr.bf16.mxu0 %v7287_v16  ;;  %4494 = vmatprep.subr.bf16.mxu1 %v7290_v17  ;;  %v7343_v16 = vld [vmem:[%s7887_s26 + $0x2bc] ss:$316 sps:$4 sm:$0xff]   ;;  %v7346_v17 = vld [vmem:[%s7887_s26 + $0x2c4] ss:$316 sps:$4 sm:$0xff]  }
 0x163   : > { %4455 = vmatpush1.bf16.xpose.msra.mxu0 %v7285_v19  ;;  %4495 = vmatpush1.bf16.xpose.msra.mxu1 %v7288_v20  ;;  %v7341_v19 = vld [vmem:[%s7887_s26 + $0x2b8] ss:$316 sps:$4 sm:$0xff]   ;;  %v7344_v20 = vld [vmem:[%s7887_s26 + $0x2c0] ss:$316 sps:$4 sm:$0xff]  }
 0x164   : > { %4456 = vmatprep.subr.bf16.mxu0 %v7293_v21  ;;  %4496 = vmatprep.subr.bf16.mxu1 %v7296_v22  ;;  %v7349_v21 = vld [vmem:[%s7887_s26 + $0x44] ss:$316 sps:$4 sm:$0xff]   ;;  %v7352_v22 = vld [vmem:[%s7887_s26 + $0x4c] ss:$316 sps:$4 sm:$0xff]  }
 0x16b   : > { %4457 = vmatpush1.bf16.xpose.msra.mxu0 %v7291_v23  ;;  %4497 = vmatpush1.bf16.xpose.msra.mxu1 %v7294_v24  ;;  %v7347_v23 = vld [vmem:[%s7887_s26 + $0x40] ss:$316 sps:$4 sm:$0xff]   ;;  %v7350_v24 = vld [vmem:[%s7887_s26 + $0x48] ss:$316 sps:$4 sm:$0xff]  }
 0x16c   : > { %4530 = vmatprep.subr.bf16.mxu0 %v7301_v25  ;;  %4570 = vmatprep.subr.bf16.mxu1 %v7306_v26  ;;  %v7357_v25 = vld [vmem:[%s7887_s26 + $0x7bc] ss:$316 sps:$4 sm:$0xff]   ;;  %v7362_v26 = vld [vmem:[%s7887_s26 + $0x7c4] ss:$316 sps:$4 sm:$0xff]  }
 0x172   : > { %v1755_v36 = vpop.f32.mrf.mxu0  ;;  %4475 = vmatmul.mubr.bf16.vlgmr.msra.gmra.mxu0 %v6658_v27  ;;  %v1795_v39 = vpop.f32.mrf.mxu1  ;;  %4515 = vmatmul.mubr.bf16.vlgmr.msra.gmra.mxu1 %v6660_v30  ;;  %v6666_v27 = vcombine.low %v2058_v60, %v2058_v60  ;;  %v6668_v30 = vcombine.low %v8219_v63, %v8219_v63  ;;  %v2062_v60 = vld [vmem:[%s8749_s3 + $0x60] sm:$0xff]  ;;  %v2063_v63 = vld [vmem:[%s8749_s3 + $0x68] sm:$0xff] }
 0x173   : > { %v1756_v38 = vadd.f32 %v1755_v36, %v1716_v9  ;;  %4531 = vmatpush1.bf16.xpose.msra.mxu0 %v7299_v29  ;;  %4571 = vmatpush1.bf16.xpose.msra.mxu1 %v7304_v32  ;;  %v7355_v29 = vld [vmem:[%s7887_s26 + $0x7b8] ss:$316 sps:$4 sm:$0xff]   ;;  %v7360_v32 = vld [vmem:[%s7887_s26 + $0x7c0] ss:$316 sps:$4 sm:$0xff]  }
 0x174   : > { %v1757_v40 = vpop.f32.mrf.mxu0  ;;  %4532 = vmatprep.subr.bf16.mxu0 %v7309_v33  ;;  %4572 = vmatprep.subr.bf16.mxu1 %v7312_v34  ;;  %v1797_v42 = vpop.f32.mrf.mxu1  ;;  %v7365_v33 = vld [vmem:[%s7887_s26 + $0x544] ss:$316 sps:$4 sm:$0xff]   ;;  %v7368_v34 = vld [vmem:[%s7887_s26 + $0x54c] ss:$316 sps:$4 sm:$0xff]  }
 0x175   : > { %v1796_v41 = vadd.f32 %v1795_v39, %v1756_v38  ;;  %4554 = vmatprep.mubr.bf16.mxu0 %v6663_v35  ;;  %4594 = vmatprep.mubr.bf16.mxu1 %v6665_v37  ;;  %v6671_v35 = vcombine.high %v2060_v28, %v2060_v28  ;;  %v6673_v37 = vcombine.high %v8247_v31, %v8247_v31 }
 0x176   : > { %v1758_v43 = vpop.f32.mrf.mxu0  ;;  %v1798_v45 = vpop.f32.mrf.mxu1 }
 0x178   : > { %v1759_v46 = vpop.f32.mrf.mxu0  ;;  %v1799_v50 = vpop.f32.mrf.mxu1 }
 0x17b   : > { %4533 = vmatpush1.bf16.xpose.msra.mxu0 %v7307_v44  ;;  %4573 = vmatpush1.bf16.xpose.msra.mxu1 %v7310_v47  ;;  %v7363_v44 = vld [vmem:[%s7887_s26 + $0x540] ss:$316 sps:$4 sm:$0xff]   ;;  %v7366_v47 = vld [vmem:[%s7887_s26 + $0x548] ss:$316 sps:$4 sm:$0xff]  }
 0x17c   : > { %4534 = vmatprep.subr.bf16.mxu0 %v7315_v48  ;;  %4574 = vmatprep.subr.bf16.mxu1 %v7318_v49  ;;  %v7371_v48 = vld [vmem:[%s7887_s26 + $0x2cc] ss:$316 sps:$4 sm:$0xff]   ;;  %v7374_v49 = vld [vmem:[%s7887_s26 + $0x2d4] ss:$316 sps:$4 sm:$0xff]  }
 0x183   : > { %4535 = vmatpush1.bf16.xpose.msra.mxu0 %v7313_v51  ;;  %4575 = vmatpush1.bf16.xpose.msra.mxu1 %v7316_v52  ;;  %v7369_v51 = vld [vmem:[%s7887_s26 + $0x2c8] ss:$316 sps:$4 sm:$0xff]   ;;  %v7372_v52 = vld [vmem:[%s7887_s26 + $0x2d0] ss:$316 sps:$4 sm:$0xff]  }
 0x184   : > { %4536 = vmatprep.subr.bf16.mxu0 %v7321_v53  ;;  %4576 = vmatprep.subr.bf16.mxu1 %v7324_v54  ;;  %v7377_v53 = vld [vmem:[%s7887_s26 + $0x54] ss:$316 sps:$4 sm:$0xff]   ;;  %v7380_v54 = vld [vmem:[%s7887_s26 + $0x5c] ss:$316 sps:$4 sm:$0xff]  }
 0x18b   : > { %4537 = vmatpush1.bf16.xpose.msra.mxu0 %v7319_v55  ;;  %4577 = vmatpush1.bf16.xpose.msra.mxu1 %v7322_v56  ;;  %v7375_v55 = vld [vmem:[%s7887_s26 + $0x50] ss:$316 sps:$4 sm:$0xff]   ;;  %v7378_v56 = vld [vmem:[%s7887_s26 + $0x58] ss:$316 sps:$4 sm:$0xff]  }
 0x18c   : > { %4610 = vmatprep.subr.bf16.mxu0 %v7329_v57  ;;  %4650 = vmatprep.subr.bf16.mxu1 %v7334_v58  ;;  %v7385_v57 = vld [vmem:[%s7887_s26 + $0x7cc] ss:$316 sps:$4 sm:$0xff]   ;;  %v7390_v58 = vld [vmem:[%s7887_s26 + $0x7d4] ss:$316 sps:$4 sm:$0xff]  }
 0x192   : > { %v1835_v4 = vpop.f32.mrf.mxu0  ;;  %4555 = vmatmul.mubr.bf16.vlgmr.msra.gmra.mxu0 %v6662_v59  ;;  %v1875_v7 = vpop.f32.mrf.mxu1  ;;  %4595 = vmatmul.mubr.bf16.vlgmr.msra.gmra.mxu1 %v6664_v62  ;;  %v6670_v59 = vcombine.low %v2060_v28, %v2060_v28  ;;  %v6672_v62 = vcombine.low %v8247_v31, %v8247_v31  ;;  %v2064_v28 = vld [vmem:[%s8749_s3 + $0x70] sm:$0xff]  ;;  %v2065_v31 = vld [vmem:[%s8749_s3 + $0x78] sm:$0xff] }
 0x193   : > { %v1836_v6 = vadd.f32 %v1835_v4, %v1796_v41  ;;  %4611 = vmatpush1.bf16.xpose.msra.mxu0 %v7327_v61  ;;  %4651 = vmatpush1.bf16.xpose.msra.mxu1 %v7332_v0  ;;  %v7383_v61 = vld [vmem:[%s7887_s26 + $0x7c8] ss:$316 sps:$4 sm:$0xff]   ;;  %v7388_v0 = vld [vmem:[%s7887_s26 + $0x7d0] ss:$316 sps:$4 sm:$0xff]  }
 0x194   : > { %v1837_v8 = vpop.f32.mrf.mxu0  ;;  %4612 = vmatprep.subr.bf16.mxu0 %v7337_v1  ;;  %4652 = vmatprep.subr.bf16.mxu1 %v7340_v2  ;;  %v1877_v10 = vpop.f32.mrf.mxu1  ;;  %v7393_v1 = vld [vmem:[%s7887_s26 + $0x554] ss:$316 sps:$4 sm:$0xff]   ;;  %v7396_v2 = vld [vmem:[%s7887_s26 + $0x55c] ss:$316 sps:$4 sm:$0xff]  }
 0x195   : > { %v1876_v9 = vadd.f32 %v1875_v7, %v1836_v6  ;;  %4634 = vmatprep.mubr.bf16.mxu0 %v6667_v3  ;;  %4674 = vmatprep.mubr.bf16.mxu1 %v6669_v5  ;;  %v6675_v3 = vcombine.high %v2062_v60, %v2062_v60  ;;  %v6677_v5 = vcombine.high %v2063_v63, %v2063_v63 }
 0x196   : > { %v1838_v11 = vpop.f32.mrf.mxu0  ;;  %v1878_v13 = vpop.f32.mrf.mxu1 }
 0x198   : > { %v1839_v14 = vpop.f32.mrf.mxu0  ;;  %v1879_v18 = vpop.f32.mrf.mxu1 }
 0x19b   : > { %4613 = vmatpush1.bf16.xpose.msra.mxu0 %v7335_v12  ;;  %4653 = vmatpush1.bf16.xpose.msra.mxu1 %v7338_v15  ;;  %v7391_v12 = vld [vmem:[%s7887_s26 + $0x550] ss:$316 sps:$4 sm:$0xff]   ;;  %v7394_v15 = vld [vmem:[%s7887_s26 + $0x558] ss:$316 sps:$4 sm:$0xff]  }
 0x19c   : > { %4614 = vmatprep.subr.bf16.mxu0 %v7343_v16  ;;  %4654 = vmatprep.subr.bf16.mxu1 %v7346_v17  ;;  %v7399_v16 = vld [vmem:[%s7887_s26 + $0x2dc] ss:$316 sps:$4 sm:$0xff]   ;;  %v7402_v17 = vld [vmem:[%s7887_s26 + $0x2e4] ss:$316 sps:$4 sm:$0xff]  }
 0x1a3   : > { %4615 = vmatpush1.bf16.xpose.msra.mxu0 %v7341_v19  ;;  %4655 = vmatpush1.bf16.xpose.msra.mxu1 %v7344_v20  ;;  %v7397_v19 = vld [vmem:[%s7887_s26 + $0x2d8] ss:$316 sps:$4 sm:$0xff]   ;;  %v7400_v20 = vld [vmem:[%s7887_s26 + $0x2e0] ss:$316 sps:$4 sm:$0xff]  }
 0x1a4   : > { %4616 = vmatprep.subr.bf16.mxu0 %v7349_v21  ;;  %4656 = vmatprep.subr.bf16.mxu1 %v7352_v22  ;;  %v7405_v21 = vld [vmem:[%s7887_s26 + $0x64] ss:$316 sps:$4 sm:$0xff]   ;;  %v7408_v22 = vld [vmem:[%s7887_s26 + $0x6c] ss:$316 sps:$4 sm:$0xff]  }
 0x1ab   : > { %4617 = vmatpush1.bf16.xpose.msra.mxu0 %v7347_v23  ;;  %4657 = vmatpush1.bf16.xpose.msra.mxu1 %v7350_v24  ;;  %v7403_v23 = vld [vmem:[%s7887_s26 + $0x60] ss:$316 sps:$4 sm:$0xff]   ;;  %v7406_v24 = vld [vmem:[%s7887_s26 + $0x68] ss:$316 sps:$4 sm:$0xff]  }
 0x1ac   : > { %4690 = vmatprep.subr.bf16.mxu0 %v7357_v25  ;;  %4730 = vmatprep.subr.bf16.mxu1 %v7362_v26  ;;  %v7413_v25 = vld [vmem:[%s7887_s26 + $0x7dc] ss:$316 sps:$4 sm:$0xff]   ;;  %v7418_v26 = vld [vmem:[%s7887_s26 + $0x7e4] ss:$316 sps:$4 sm:$0xff]  }
 0x1b2   : > { %v1915_v36 = vpop.f32.mrf.mxu0  ;;  %4635 = vmatmul.mubr.bf16.vlgmr.msra.gmra.mxu0 %v6666_v27  ;;  %v1955_v39 = vpop.f32.mrf.mxu1  ;;  %4675 = vmatmul.mubr.bf16.vlgmr.msra.gmra.mxu1 %v6668_v30  ;;  %v6674_v27 = vcombine.low %v2062_v60, %v2062_v60  ;;  %v6676_v30 = vcombine.low %v2063_v63, %v2063_v63  ;;  %v7439_v60 = vld [vmem:[%s7887_s26 + $0x7e8] ss:$316 sps:$4 sm:$0xff]   ;;  %v7444_v63 = vld [vmem:[%s7887_s26 + $0x7f0] ss:$316 sps:$4 sm:$0xff]  }
 0x1b3   : > { %v1916_v38 = vadd.f32 %v1915_v36, %v1876_v9  ;;  %4691 = vmatpush1.bf16.xpose.msra.mxu0 %v7355_v29  ;;  %4731 = vmatpush1.bf16.xpose.msra.mxu1 %v7360_v32  ;;  %v7411_v29 = vld [vmem:[%s7887_s26 + $0x7d8] ss:$316 sps:$4 sm:$0xff]   ;;  %v7416_v32 = vld [vmem:[%s7887_s26 + $0x7e0] ss:$316 sps:$4 sm:$0xff]  }
 0x1b4   : > { %v1917_v40 = vpop.f32.mrf.mxu0  ;;  %4692 = vmatprep.subr.bf16.mxu0 %v7365_v33  ;;  %4732 = vmatprep.subr.bf16.mxu1 %v7368_v34  ;;  %v1957_v42 = vpop.f32.mrf.mxu1  ;;  %v7421_v33 = vld [vmem:[%s7887_s26 + $0x564] ss:$316 sps:$4 sm:$0xff]   ;;  %v7424_v34 = vld [vmem:[%s7887_s26 + $0x56c] ss:$316 sps:$4 sm:$0xff]  }
 0x1b5   : > { %v1956_v41 = vadd.f32 %v1955_v39, %v1916_v38  ;;  %4714 = vmatprep.mubr.bf16.mxu0 %v6671_v35  ;;  %4754 = vmatprep.mubr.bf16.mxu1 %v6673_v37  ;;  %v6679_v35 = vcombine.high %v2064_v28, %v2064_v28  ;;  %v6681_v37 = vcombine.high %v2065_v31, %v2065_v31 }
 0x1b6   : > { %v1918_v43 = vpop.f32.mrf.mxu0  ;;  %v1958_v45 = vpop.f32.mrf.mxu1 }
 0x1b7   : > { %v7419_v43 = vld [vmem:[%s7887_s26 + $0x560] ss:$316 sps:$4 sm:$0xff]  }
 0x1b8   : > { %v1919_v46 = vpop.f32.mrf.mxu0  ;;  %v1959_v50 = vpop.f32.mrf.mxu1 }
 0x1b9   : > { %v7422_v46 = vld [vmem:[%s7887_s26 + $0x568] ss:$316 sps:$4 sm:$0xff]  }
 0x1ba   : > { %v7425_v50 = vld [vmem:[%s7887_s26 + $0x2e8] ss:$316 sps:$4 sm:$0xff]  }
 0x1bb   : > { %4693 = vmatpush1.bf16.xpose.msra.mxu0 %v7363_v44  ;;  %4733 = vmatpush1.bf16.xpose.msra.mxu1 %v7366_v47  ;;  %v7427_v47 = vld [vmem:[%s7887_s26 + $0x2ec] ss:$316 sps:$4 sm:$0xff]  }
 0x1bc   : > { %4694 = vmatprep.subr.bf16.mxu0 %v7371_v48  ;;  %4734 = vmatprep.subr.bf16.mxu1 %v7374_v49  ;;  %v7430_v48 = vld [vmem:[%s7887_s26 + $0x2f4] ss:$316 sps:$4 sm:$0xff]  }
 0x1c3   : > { %4695 = vmatpush1.bf16.xpose.msra.mxu0 %v7369_v51  ;;  %4735 = vmatpush1.bf16.xpose.msra.mxu1 %v7372_v52  ;;  %v7428_v51 = vld [vmem:[%s7887_s26 + $0x2f0] ss:$316 sps:$4 sm:$0xff]  }
 0x1c4   : > { %4696 = vmatprep.subr.bf16.mxu0 %v7377_v53  ;;  %4736 = vmatprep.subr.bf16.mxu1 %v7380_v54  ;;  %v7433_v52 = vld [vmem:[%s7887_s26 + $0x74] ss:$316 sps:$4 sm:$0xff]   ;;  %v7436_v53 = vld [vmem:[%s7887_s26 + $0x7c] ss:$316 sps:$4 sm:$0xff]  }
 0x1c5   : > { %v7431_v54 = vld [vmem:[%s7887_s26 + $0x70] ss:$316 sps:$4 sm:$0xff]  }
 0x1cb   : > { %4697 = vmatpush1.bf16.xpose.msra.mxu0 %v7375_v55  ;;  %4737 = vmatpush1.bf16.xpose.msra.mxu1 %v7378_v56  ;;  %v7434_v55 = vld [vmem:[%s7887_s26 + $0x78] ss:$316 sps:$4 sm:$0xff]   ;;  %v7441_v56 = vld [vmem:[%s7887_s26 + $0x7ec] ss:$316 sps:$4 sm:$0xff]  }
 0x1cc   : > { %4770 = vmatprep.subr.bf16.mxu0 %v7385_v57  ;;  %4810 = vmatprep.subr.bf16.mxu1 %v7390_v58  ;;  %v7446_v57 = vld [vmem:[%s7887_s26 + $0x7f4] ss:$316 sps:$4 sm:$0xff]   ;;  %v6678_v58 = vcombine.low %v2064_v28, %v2064_v28 }
 0x1cd   : > { %v2068_v28 = vld [vmem:[%s8749_s3 + $0x90] sm:$0xff] }
 0x1d2   : > { %v1995_v4 = vpop.f32.mrf.mxu0  ;;  %4715 = vmatmul.mubr.bf16.vlgmr.msra.gmra.mxu0 %v6670_v59  ;;  %v2035_v7 = vpop.f32.mrf.mxu1  ;;  %4755 = vmatmul.mubr.bf16.vlgmr.msra.gmra.mxu1 %v6672_v62  ;;  %v2066_v59 = vld [vmem:[%s8749_s3 + $0x80] sm:$0xff]  ;;  %v8321_v62 = vld [vmem:[%s8749_s3 + $0x88] sm:$0xff] }
 0x1d3   : > { %v1996_v6 = vadd.f32 %v1995_v4, %v1956_v41  ;;  %4771 = vmatpush1.bf16.xpose.msra.mxu0 %v7383_v61  ;;  %4811 = vmatpush1.bf16.xpose.msra.mxu1 %v7388_v0  ;;  %v6680_v61 = vcombine.low %v2065_v31, %v2065_v31  ;;  %v7449_v0 = vld [vmem:[%s7887_s26 + $0x574] ss:$316 sps:$4 sm:$0xff]   ;;  %v6685_v4 = vcombine.high %v8321_v62, %v8321_v62  ;;  %v8349_v31 = vld [vmem:[%s8749_s3 + $0x98] sm:$0xff] }
 0x1d4   : > { %v1997_v8 = vpop.f32.mrf.mxu0  ;;  %4772 = vmatprep.subr.bf16.mxu0 %v7393_v1  ;;  %4812 = vmatprep.subr.bf16.mxu1 %v7396_v2  ;;  %v2037_v10 = vpop.f32.mrf.mxu1  ;;  %v7452_v1 = vld [vmem:[%s7887_s26 + $0x57c] ss:$316 sps:$4 sm:$0xff]   ;;  %v6683_v2 = vcombine.high %v2066_v59, %v2066_v59 }
 0x1d5   : > { %v8278_v9 = vadd.f32 %v2035_v7, %v1996_v6  ;;  %4794 = vmatprep.mubr.bf16.mxu0 %v6675_v3  ;;  %4834 = vmatprep.mubr.bf16.mxu1 %v6677_v5 }
 0x1d6   : > { %v1998_v11 = vpop.f32.mrf.mxu0  ;;  %v2038_v13 = vpop.f32.mrf.mxu1 }
 0x1d8   : > { %v1999_v14 = vpop.f32.mrf.mxu0  ;;  %v2039_v18 = vpop.f32.mrf.mxu1 }
 0x1db   : > { %4773 = vmatpush1.bf16.xpose.msra.mxu0 %v7391_v12  ;;  %4813 = vmatpush1.bf16.xpose.msra.mxu1 %v7394_v15  ;;  %v7447_v12 = vld [vmem:[%s7887_s26 + $0x570] ss:$316 sps:$4 sm:$0xff]   ;;  %v7450_v15 = vld [vmem:[%s7887_s26 + $0x578] ss:$316 sps:$4 sm:$0xff]  }
 0x1dc   : > { %4774 = vmatprep.subr.bf16.mxu0 %v7399_v16  ;;  %4814 = vmatprep.subr.bf16.mxu1 %v7402_v17  ;;  %v7455_v16 = vld [vmem:[%s7887_s26 + $0x2fc] ss:$316 sps:$4 sm:$0xff]   ;;  %v7458_v17 = vld [vmem:[%s7887_s26 + $0x304] ss:$316 sps:$4 sm:$0xff]  }
 0x1e3   : > { %4775 = vmatpush1.bf16.xpose.msra.mxu0 %v7397_v19  ;;  %4815 = vmatpush1.bf16.xpose.msra.mxu1 %v7400_v20  ;;  %v7453_v19 = vld [vmem:[%s7887_s26 + $0x2f8] ss:$316 sps:$4 sm:$0xff]   ;;  %v7456_v20 = vld [vmem:[%s7887_s26 + $0x300] ss:$316 sps:$4 sm:$0xff]  }
 0x1e4   : > { %4776 = vmatprep.subr.bf16.mxu0 %v7405_v21  ;;  %4816 = vmatprep.subr.bf16.mxu1 %v7408_v22  ;;  %v7461_v21 = vld [vmem:[%s7887_s26 + $0x84] ss:$316 sps:$4 sm:$0xff]   ;;  %v7464_v22 = vld [vmem:[%s7887_s26 + $0x8c] ss:$316 sps:$4 sm:$0xff]  }
 0x1eb   : > { %4777 = vmatpush1.bf16.xpose.msra.mxu0 %v7403_v23  ;;  %4817 = vmatpush1.bf16.xpose.msra.mxu1 %v7406_v24  ;;  %v7459_v23 = vld [vmem:[%s7887_s26 + $0x80] ss:$316 sps:$4 sm:$0xff]   ;;  %v7462_v24 = vld [vmem:[%s7887_s26 + $0x88] ss:$316 sps:$4 sm:$0xff]  }
 0x1ec   : > { %4850 = vmatprep.subr.bf16.mxu0 %v7413_v25  ;;  %4890 = vmatprep.subr.bf16.mxu1 %v7418_v26  ;;  %v7469_v25 = vld [vmem:[%s7887_s26 + $0x7fc] ss:$316 sps:$4 sm:$0xff]   ;;  %v7474_v26 = vld [vmem:[%s7887_s26 + $0x804] ss:$316 sps:$4 sm:$0xff]  }
 0x1f2   : > { %v4316_v36 = vpop.f32.mrf.mxu0  ;;  %4795 = vmatmul.mubr.bf16.vlgmr.msra.gmra.mxu0 %v6674_v27  ;;  %v4356_v38 = vpop.f32.mrf.mxu1  ;;  %4835 = vmatmul.mubr.bf16.vlgmr.msra.gmra.mxu1 %v6676_v30  ;;  %v6682_v27 = vcombine.low %v2066_v59, %v2066_v59  ;;  %v6684_v30 = vcombine.low %v8321_v62, %v8321_v62  ;;  %v6686_v59 = vcombine.low %v2068_v28, %v2068_v28 }
 0x1f3   : > { %4851 = vmatpush1.bf16.xpose.msra.mxu0 %v7411_v29  ;;  %v4357_v39 = vadd.f32 %v4356_v38, %v4316_v36  ;;  %4891 = vmatpush1.bf16.xpose.msra.mxu1 %v7416_v32  ;;  %v7467_v29 = vld [vmem:[%s7887_s26 + $0x7f8] ss:$316 sps:$4 sm:$0xff]   ;;  %v7472_v32 = vld [vmem:[%s7887_s26 + $0x800] ss:$316 sps:$4 sm:$0xff]   ;;  %v6688_v62 = vcombine.low %v8349_v31, %v8349_v31 }
 0x1f4   : > { %v4318_v40 = vpop.f32.mrf.mxu0  ;;  %4852 = vmatprep.subr.bf16.mxu0 %v7421_v33  ;;  %4892 = vmatprep.subr.bf16.mxu1 %v7424_v34  ;;  %v4358_v41 = vpop.f32.mrf.mxu1  ;;  %v7477_v33 = vld [vmem:[%s7887_s26 + $0x584] ss:$316 sps:$4 sm:$0xff]   ;;  %v7480_v34 = vld [vmem:[%s7887_s26 + $0x58c] ss:$316 sps:$4 sm:$0xff]  }
 0x1f5   : > { %4874 = vmatprep.mubr.bf16.mxu0 %v6679_v35  ;;  %4914 = vmatprep.mubr.bf16.mxu1 %v6681_v37  ;;  %v6687_v35 = vcombine.high %v2068_v28, %v2068_v28  ;;  %v6689_v37 = vcombine.high %v8349_v31, %v8349_v31 }
 0x1f6   : > { %v4319_v42 = vpop.f32.mrf.mxu0  ;;  %v4359_v44 = vpop.f32.mrf.mxu1 }
 0x1f7   : > { %v7475_v44 = vld [vmem:[%s7887_s26 + $0x580] ss:$316 sps:$4 sm:$0xff]  }
 0x1f8   : > { %v4320_v45 = vpop.f32.mrf.mxu0  ;;  %v4360_v49 = vpop.f32.mrf.mxu1 }
 0x1f9   : > { %v7486_v49 = vld [vmem:[%s7887_s26 + $0x314] ss:$316 sps:$4 sm:$0xff]  }
 0x1fb   : > { %4853 = vmatpush1.bf16.xpose.msra.mxu0 %v7419_v43  ;;  %4893 = vmatpush1.bf16.xpose.msra.mxu1 %v7422_v46 }
 0x1fc   : > { %4854 = vmatprep.subr.bf16.mxu0 %v7427_v47  ;;  %4894 = vmatprep.subr.bf16.mxu1 %v7430_v48  ;;  %v7478_v47 = vld [vmem:[%s7887_s26 + $0x588] ss:$316 sps:$4 sm:$0xff]  }
 0x1fd   : > { %v7483_v48 = vld [vmem:[%s7887_s26 + $0x30c] ss:$316 sps:$4 sm:$0xff]  }
 0x203   : > { %4855 = vmatpush1.bf16.xpose.msra.mxu0 %v7425_v50  ;;  %4895 = vmatpush1.bf16.xpose.msra.mxu1 %v7428_v51  ;;  %v7481_v51 = vld [vmem:[%s7887_s26 + $0x308] ss:$316 sps:$4 sm:$0xff]  }
 0x204   : > { %4856 = vmatprep.subr.bf16.mxu0 %v7433_v52  ;;  %4896 = vmatprep.subr.bf16.mxu1 %v7436_v53  ;;  %v7484_v52 = vld [vmem:[%s7887_s26 + $0x310] ss:$316 sps:$4 sm:$0xff]  }
 0x205   : > { %v7489_v53 = vld [vmem:[%s7887_s26 + $0x94] ss:$316 sps:$4 sm:$0xff]  }
 0x20b   : > { %4857 = vmatpush1.bf16.xpose.msra.mxu0 %v7431_v54  ;;  %4897 = vmatpush1.bf16.xpose.msra.mxu1 %v7434_v55  ;;  %v7492_v54 = vld [vmem:[%s7887_s26 + $0x9c] ss:$316 sps:$4 sm:$0xff]   ;;  %v7487_v55 = vld [vmem:[%s7887_s26 + $0x90] ss:$316 sps:$4 sm:$0xff]  }
 0x20c   : > { %4930 = vmatprep.subr.bf16.mxu0 %v7441_v56  ;;  %4970 = vmatprep.subr.bf16.mxu1 %v7446_v57  ;;  %v7490_v56 = vld [vmem:[%s7887_s26 + $0x98] ss:$316 sps:$4 sm:$0xff]   ;;  %v7497_v57 = vld [vmem:[%s7887_s26 + $0x80c] ss:$316 sps:$4 sm:$0xff]  }
 0x212   : > { %v4396_v3 = vpop.f32.mrf.mxu0  ;;  %4875 = vmatmul.mubr.bf16.vlgmr.msra.gmra.mxu0 %v6678_v58  ;;  %v4436_v6 = vpop.f32.mrf.mxu1  ;;  %4915 = vmatmul.mubr.bf16.vlgmr.msra.gmra.mxu1 %v6680_v61  ;;  %v7502_v58 = vld [vmem:[%s7887_s26 + $0x814] ss:$316 sps:$4 sm:$0xff]   ;;  %v7495_v61 = vld [vmem:[%s7887_s26 + $0x808] ss:$316 sps:$4 sm:$0xff]  }
 0x213   : > { %v4397_v5 = vadd.f32 %v4396_v3, %v4357_v39  ;;  %4931 = vmatpush1.bf16.xpose.msra.mxu0 %v7439_v60  ;;  %4971 = vmatpush1.bf16.xpose.msra.mxu1 %v7444_v63  ;;  %v2070_v60 = vld [vmem:[%s8749_s3 + $0xa0] sm:$0xff]  ;;  %v8377_v63 = vld [vmem:[%s8749_s3 + $0xa8] sm:$0xff] }
 0x214   : > { %v4398_v7 = vpop.f32.mrf.mxu0  ;;  %4932 = vmatprep.subr.bf16.mxu0 %v7449_v0  ;;  %4972 = vmatprep.subr.bf16.mxu1 %v7452_v1  ;;  %v4438_v10 = vpop.f32.mrf.mxu1  ;;  %v7500_v0 = vld [vmem:[%s7887_s26 + $0x810] ss:$316 sps:$4 sm:$0xff]   ;;  %v6691_v3 = vcombine.high %v2070_v60, %v2070_v60  ;;  %v6690_v28 = vcombine.low %v2070_v60, %v2070_v60  ;;  %v6692_v31 = vcombine.low %v8377_v63, %v8377_v63 }
 0x215   : > { %v4437_v8 = vadd.f32 %v4436_v6, %v4397_v5  ;;  %4954 = vmatprep.mubr.bf16.mxu0 %v6683_v2  ;;  %4994 = vmatprep.mubr.bf16.mxu1 %v6685_v4  ;;  %v7505_v1 = vld [vmem:[%s7887_s26 + $0x594] ss:$316 sps:$4 sm:$0xff]   ;;  %v7508_v2 = vld [vmem:[%s7887_s26 + $0x59c] ss:$316 sps:$4 sm:$0xff]   ;;  %v6693_v5 = vcombine.high %v8377_v63, %v8377_v63 }
 0x216   : > { %v4399_v11 = vpop.f32.mrf.mxu0  ;;  %v4439_v13 = vpop.f32.mrf.mxu1 }
 0x217   : > { %v7503_v13 = vld [vmem:[%s7887_s26 + $0x590] ss:$316 sps:$4 sm:$0xff]  }
 0x218   : > { %v4400_v14 = vpop.f32.mrf.mxu0  ;;  %v4440_v18 = vpop.f32.mrf.mxu1 }
 0x219   : > { %v7514_v18 = vld [vmem:[%s7887_s26 + $0x324] ss:$316 sps:$4 sm:$0xff]  }
 0x21b   : > { %4933 = vmatpush1.bf16.xpose.msra.mxu0 %v7447_v12  ;;  %4973 = vmatpush1.bf16.xpose.msra.mxu1 %v7450_v15 }
 0x21c   : > { %4934 = vmatprep.subr.bf16.mxu0 %v7455_v16  ;;  %4974 = vmatprep.subr.bf16.mxu1 %v7458_v17  ;;  %v7506_v16 = vld [vmem:[%s7887_s26 + $0x598] ss:$316 sps:$4 sm:$0xff]  }
 0x21d   : > { %v7511_v17 = vld [vmem:[%s7887_s26 + $0x31c] ss:$316 sps:$4 sm:$0xff]  }
 0x223   : > { %4935 = vmatpush1.bf16.xpose.msra.mxu0 %v7453_v19  ;;  %4975 = vmatpush1.bf16.xpose.msra.mxu1 %v7456_v20  ;;  %v7509_v20 = vld [vmem:[%s7887_s26 + $0x318] ss:$316 sps:$4 sm:$0xff]  }
 0x224   : > { %4936 = vmatprep.subr.bf16.mxu0 %v7461_v21  ;;  %4976 = vmatprep.subr.bf16.mxu1 %v7464_v22  ;;  %v7512_v21 = vld [vmem:[%s7887_s26 + $0x320] ss:$316 sps:$4 sm:$0xff]  }
 0x225   : > { %v7517_v22 = vld [vmem:[%s7887_s26 + $0xa4] ss:$316 sps:$4 sm:$0xff]  }
 0x22b   : > { %4937 = vmatpush1.bf16.xpose.msra.mxu0 %v7459_v23  ;;  %4977 = vmatpush1.bf16.xpose.msra.mxu1 %v7462_v24  ;;  %v7520_v23 = vld [vmem:[%s7887_s26 + $0xac] ss:$316 sps:$4 sm:$0xff]   ;;  %v7515_v24 = vld [vmem:[%s7887_s26 + $0xa0] ss:$316 sps:$4 sm:$0xff]  }
 0x22c   : > { %5010 = vmatprep.subr.bf16.mxu0 %v7469_v25  ;;  %5050 = vmatprep.subr.bf16.mxu1 %v7474_v26  ;;  %v7518_v25 = vld [vmem:[%s7887_s26 + $0xa8] ss:$316 sps:$4 sm:$0xff]   ;;  %v7525_v26 = vld [vmem:[%s7887_s26 + $0x81c] ss:$316 sps:$4 sm:$0xff]  }
 0x232   : > { %v4476_v36 = vpop.f32.mrf.mxu0  ;;  %4955 = vmatmul.mubr.bf16.vlgmr.msra.gmra.mxu0 %v6682_v27  ;;  %v4516_v39 = vpop.f32.mrf.mxu1  ;;  %4995 = vmatmul.mubr.bf16.vlgmr.msra.gmra.mxu1 %v6684_v30  ;;  %v7530_v27 = vld [vmem:[%s7887_s26 + $0x824] ss:$316 sps:$4 sm:$0xff]   ;;  %v7523_v30 = vld [vmem:[%s7887_s26 + $0x818] ss:$316 sps:$4 sm:$0xff]  }
 0x233   : > { %v4477_v38 = vadd.f32 %v4476_v36, %v4437_v8  ;;  %5011 = vmatpush1.bf16.xpose.msra.mxu0 %v7467_v29  ;;  %5051 = vmatpush1.bf16.xpose.msra.mxu1 %v7472_v32  ;;  %v2072_v29 = vld [vmem:[%s8749_s3 + $0xb0] sm:$0xff]  ;;  %v8405_v32 = vld [vmem:[%s8749_s3 + $0xb8] sm:$0xff] }
 0x234   : > { %v4478_v40 = vpop.f32.mrf.mxu0  ;;  %5012 = vmatprep.subr.bf16.mxu0 %v7477_v33  ;;  %5052 = vmatprep.subr.bf16.mxu1 %v7480_v34  ;;  %v4518_v42 = vpop.f32.mrf.mxu1  ;;  %v7528_v33 = vld [vmem:[%s7887_s26 + $0x820] ss:$316 sps:$4 sm:$0xff]   ;;  %v6695_v36 = vcombine.high %v2072_v29, %v2072_v29  ;;  %v6694_v60 = vcombine.low %v2072_v29, %v2072_v29  ;;  %v6696_v63 = vcombine.low %v8405_v32, %v8405_v32 }
 0x235   : > { %v4517_v41 = vadd.f32 %v4516_v39, %v4477_v38  ;;  %5034 = vmatprep.mubr.bf16.mxu0 %v6687_v35  ;;  %5074 = vmatprep.mubr.bf16.mxu1 %v6689_v37  ;;  %v7533_v34 = vld [vmem:[%s7887_s26 + $0x5a4] ss:$316 sps:$4 sm:$0xff]   ;;  %v7536_v35 = vld [vmem:[%s7887_s26 + $0x5ac] ss:$316 sps:$4 sm:$0xff]   ;;  %v6697_v38 = vcombine.high %v8405_v32, %v8405_v32 }
 0x236   : > { %v4479_v43 = vpop.f32.mrf.mxu0  ;;  %v4519_v45 = vpop.f32.mrf.mxu1 }
 0x237   : > { %v7531_v45 = vld [vmem:[%s7887_s26 + $0x5a0] ss:$316 sps:$4 sm:$0xff]  }
 0x238   : > { %v4480_v46 = vpop.f32.mrf.mxu0  ;;  %v4520_v50 = vpop.f32.mrf.mxu1 }
 0x239   : > { %v7542_v50 = vld [vmem:[%s7887_s26 + $0x334] ss:$316 sps:$4 sm:$0xff]  }
 0x23b   : > { %5013 = vmatpush1.bf16.xpose.msra.mxu0 %v7475_v44  ;;  %5053 = vmatpush1.bf16.xpose.msra.mxu1 %v7478_v47 }
 0x23c   : > { %5014 = vmatprep.subr.bf16.mxu0 %v7483_v48  ;;  %5054 = vmatprep.subr.bf16.mxu1 %v7486_v49  ;;  %v7534_v48 = vld [vmem:[%s7887_s26 + $0x5a8] ss:$316 sps:$4 sm:$0xff]  }
 0x23d   : > { %v7539_v49 = vld [vmem:[%s7887_s26 + $0x32c] ss:$316 sps:$4 sm:$0xff]  }
 0x243   : > { %5015 = vmatpush1.bf16.xpose.msra.mxu0 %v7481_v51  ;;  %5055 = vmatpush1.bf16.xpose.msra.mxu1 %v7484_v52  ;;  %v7537_v52 = vld [vmem:[%s7887_s26 + $0x328] ss:$316 sps:$4 sm:$0xff]  }
 0x244   : > { %5016 = vmatprep.subr.bf16.mxu0 %v7489_v53  ;;  %5056 = vmatprep.subr.bf16.mxu1 %v7492_v54  ;;  %v7540_v53 = vld [vmem:[%s7887_s26 + $0x330] ss:$316 sps:$4 sm:$0xff]  }
 0x245   : > { %v7545_v54 = vld [vmem:[%s7887_s26 + $0xb4] ss:$316 sps:$4 sm:$0xff]  }
 0x24b   : > { %5017 = vmatpush1.bf16.xpose.msra.mxu0 %v7487_v55  ;;  %5057 = vmatpush1.bf16.xpose.msra.mxu1 %v7490_v56  ;;  %v7548_v55 = vld [vmem:[%s7887_s26 + $0xbc] ss:$316 sps:$4 sm:$0xff]   ;;  %v7543_v56 = vld [vmem:[%s7887_s26 + $0xb0] ss:$316 sps:$4 sm:$0xff]  }
 0x24c   : > { %5090 = vmatprep.subr.bf16.mxu0 %v7497_v57  ;;  %5130 = vmatprep.subr.bf16.mxu1 %v7502_v58  ;;  %v7546_v57 = vld [vmem:[%s7887_s26 + $0xb8] ss:$316 sps:$4 sm:$0xff]   ;;  %v7553_v58 = vld [vmem:[%s7887_s26 + $0x82c] ss:$316 sps:$4 sm:$0xff]  }
 0x252   : > { %v4556_v4 = vpop.f32.mrf.mxu0  ;;  %5035 = vmatmul.mubr.bf16.vlgmr.msra.gmra.mxu0 %v6686_v59  ;;  %v4596_v7 = vpop.f32.mrf.mxu1  ;;  %5075 = vmatmul.mubr.bf16.vlgmr.msra.gmra.mxu1 %v6688_v62  ;;  %v7558_v59 = vld [vmem:[%s7887_s26 + $0x834] ss:$316 sps:$4 sm:$0xff]   ;;  %v7551_v62 = vld [vmem:[%s7887_s26 + $0x828] ss:$316 sps:$4 sm:$0xff]  }
 0x253   : > { %v4557_v6 = vadd.f32 %v4556_v4, %v4517_v41  ;;  %5091 = vmatpush1.bf16.xpose.msra.mxu0 %v7495_v61  ;;  %5131 = vmatpush1.bf16.xpose.msra.mxu1 %v7500_v0  ;;  %v2074_v61 = vld [vmem:[%s8749_s3 + $0xc0] sm:$0xff]  ;;  %v8433_v0 = vld [vmem:[%s8749_s3 + $0xc8] sm:$0xff] }
 0x254   : > { %v4558_v8 = vpop.f32.mrf.mxu0  ;;  %5092 = vmatprep.subr.bf16.mxu0 %v7505_v1  ;;  %5132 = vmatprep.subr.bf16.mxu1 %v7508_v2  ;;  %v4598_v11 = vpop.f32.mrf.mxu1  ;;  %v7556_v1 = vld [vmem:[%s7887_s26 + $0x830] ss:$316 sps:$4 sm:$0xff]   ;;  %v6699_v4 = vcombine.high %v2074_v61, %v2074_v61  ;;  %v6698_v29 = vcombine.low %v2074_v61, %v2074_v61  ;;  %v6700_v32 = vcombine.low %v8433_v0, %v8433_v0 }
 0x255   : > { %v4597_v10 = vadd.f32 %v4596_v7, %v4557_v6  ;;  %5114 = vmatprep.mubr.bf16.mxu0 %v6691_v3  ;;  %5154 = vmatprep.mubr.bf16.mxu1 %v6693_v5  ;;  %v7561_v2 = vld [vmem:[%s7887_s26 + $0x5b4] ss:$316 sps:$4 sm:$0xff]   ;;  %v7564_v3 = vld [vmem:[%s7887_s26 + $0x5bc] ss:$316 sps:$4 sm:$0xff]   ;;  %v6701_v6 = vcombine.high %v8433_v0, %v8433_v0 }
 0x256   : > { %v4559_v12 = vpop.f32.mrf.mxu0  ;;  %v4599_v14 = vpop.f32.mrf.mxu1 }
 0x257   : > { %v7559_v14 = vld [vmem:[%s7887_s26 + $0x5b0] ss:$316 sps:$4 sm:$0xff]  }
 0x258   : > { %v4560_v15 = vpop.f32.mrf.mxu0  ;;  %v4600_v19 = vpop.f32.mrf.mxu1 }
 0x259   : > { %v7570_v19 = vld [vmem:[%s7887_s26 + $0x344] ss:$316 sps:$4 sm:$0xff]  }
 0x25b   : > { %5093 = vmatpush1.bf16.xpose.msra.mxu0 %v7503_v13  ;;  %5133 = vmatpush1.bf16.xpose.msra.mxu1 %v7506_v16 }
 0x25c   : > { %5094 = vmatprep.subr.bf16.mxu0 %v7511_v17  ;;  %5134 = vmatprep.subr.bf16.mxu1 %v7514_v18  ;;  %v7562_v17 = vld [vmem:[%s7887_s26 + $0x5b8] ss:$316 sps:$4 sm:$0xff]  }
 0x25d   : > { %v7567_v18 = vld [vmem:[%s7887_s26 + $0x33c] ss:$316 sps:$4 sm:$0xff]  }
 0x263   : > { %5095 = vmatpush1.bf16.xpose.msra.mxu0 %v7509_v20  ;;  %5135 = vmatpush1.bf16.xpose.msra.mxu1 %v7512_v21  ;;  %v7565_v21 = vld [vmem:[%s7887_s26 + $0x338] ss:$316 sps:$4 sm:$0xff]  }
 0x264   : > { %5096 = vmatprep.subr.bf16.mxu0 %v7517_v22  ;;  %5136 = vmatprep.subr.bf16.mxu1 %v7520_v23  ;;  %v7568_v22 = vld [vmem:[%s7887_s26 + $0x340] ss:$316 sps:$4 sm:$0xff]  }
 0x265   : > { %v7573_v23 = vld [vmem:[%s7887_s26 + $0xc4] ss:$316 sps:$4 sm:$0xff]  }
 0x26b   : > { %5097 = vmatpush1.bf16.xpose.msra.mxu0 %v7515_v24  ;;  %5137 = vmatpush1.bf16.xpose.msra.mxu1 %v7518_v25  ;;  %v7576_v24 = vld [vmem:[%s7887_s26 + $0xcc] ss:$316 sps:$4 sm:$0xff]   ;;  %v7571_v25 = vld [vmem:[%s7887_s26 + $0xc0] ss:$316 sps:$4 sm:$0xff]  }
 0x26c   : > { %5170 = vmatprep.subr.bf16.mxu0 %v7525_v26  ;;  %5210 = vmatprep.subr.bf16.mxu1 %v7530_v27  ;;  %v7574_v26 = vld [vmem:[%s7887_s26 + $0xc8] ss:$316 sps:$4 sm:$0xff]   ;;  %v7581_v27 = vld [vmem:[%s7887_s26 + $0x83c] ss:$316 sps:$4 sm:$0xff]  }
 0x272   : > { %v4636_v37 = vpop.f32.mrf.mxu0  ;;  %5115 = vmatmul.mubr.bf16.vlgmr.msra.gmra.mxu0 %v6690_v28  ;;  %v4676_v40 = vpop.f32.mrf.mxu1  ;;  %5155 = vmatmul.mubr.bf16.vlgmr.msra.gmra.mxu1 %v6692_v31  ;;  %v7586_v28 = vld [vmem:[%s7887_s26 + $0x844] ss:$316 sps:$4 sm:$0xff]   ;;  %v7579_v31 = vld [vmem:[%s7887_s26 + $0x838] ss:$316 sps:$4 sm:$0xff]  }
 0x273   : > { %v4637_v39 = vadd.f32 %v4636_v37, %v4597_v10  ;;  %5171 = vmatpush1.bf16.xpose.msra.mxu0 %v7523_v30  ;;  %5211 = vmatpush1.bf16.xpose.msra.mxu1 %v7528_v33  ;;  %v2076_v30 = vld [vmem:[%s8749_s3 + $0xd0] sm:$0xff]  ;;  %v8461_v33 = vld [vmem:[%s8749_s3 + $0xd8] sm:$0xff] }
 0x274   : > { %v4638_v41 = vpop.f32.mrf.mxu0  ;;  %5172 = vmatprep.subr.bf16.mxu0 %v7533_v34  ;;  %5212 = vmatprep.subr.bf16.mxu1 %v7536_v35  ;;  %v4678_v43 = vpop.f32.mrf.mxu1  ;;  %v7584_v34 = vld [vmem:[%s7887_s26 + $0x840] ss:$316 sps:$4 sm:$0xff]   ;;  %v6703_v37 = vcombine.high %v2076_v30, %v2076_v30  ;;  %v6702_v61 = vcombine.low %v2076_v30, %v2076_v30  ;;  %v6704_v0 = vcombine.low %v8461_v33, %v8461_v33 }
 0x275   : > { %v4677_v42 = vadd.f32 %v4676_v40, %v4637_v39  ;;  %5194 = vmatprep.mubr.bf16.mxu0 %v6695_v36  ;;  %5234 = vmatprep.mubr.bf16.mxu1 %v6697_v38  ;;  %v7589_v35 = vld [vmem:[%s7887_s26 + $0x5c4] ss:$316 sps:$4 sm:$0xff]   ;;  %v7592_v36 = vld [vmem:[%s7887_s26 + $0x5cc] ss:$316 sps:$4 sm:$0xff]   ;;  %v6705_v39 = vcombine.high %v8461_v33, %v8461_v33 }
 0x276   : > { %v4639_v44 = vpop.f32.mrf.mxu0  ;;  %v4679_v46 = vpop.f32.mrf.mxu1 }
 0x277   : > { %v7587_v46 = vld [vmem:[%s7887_s26 + $0x5c0] ss:$316 sps:$4 sm:$0xff]  }
 0x278   : > { %v4640_v47 = vpop.f32.mrf.mxu0  ;;  %v4680_v51 = vpop.f32.mrf.mxu1 }
 0x279   : > { %v7598_v51 = vld [vmem:[%s7887_s26 + $0x354] ss:$316 sps:$4 sm:$0xff]  }
 0x27b   : > { %5173 = vmatpush1.bf16.xpose.msra.mxu0 %v7531_v45  ;;  %5213 = vmatpush1.bf16.xpose.msra.mxu1 %v7534_v48 }
 0x27c   : > { %5174 = vmatprep.subr.bf16.mxu0 %v7539_v49  ;;  %5214 = vmatprep.subr.bf16.mxu1 %v7542_v50  ;;  %v7590_v49 = vld [vmem:[%s7887_s26 + $0x5c8] ss:$316 sps:$4 sm:$0xff]  }
 0x27d   : > { %v7595_v50 = vld [vmem:[%s7887_s26 + $0x34c] ss:$316 sps:$4 sm:$0xff]  }
 0x283   : > { %5175 = vmatpush1.bf16.xpose.msra.mxu0 %v7537_v52  ;;  %5215 = vmatpush1.bf16.xpose.msra.mxu1 %v7540_v53  ;;  %v7593_v53 = vld [vmem:[%s7887_s26 + $0x348] ss:$316 sps:$4 sm:$0xff]  }
 0x284   : > { %5176 = vmatprep.subr.bf16.mxu0 %v7545_v54  ;;  %5216 = vmatprep.subr.bf16.mxu1 %v7548_v55  ;;  %v7596_v54 = vld [vmem:[%s7887_s26 + $0x350] ss:$316 sps:$4 sm:$0xff]  }
 0x285   : > { %v7601_v55 = vld [vmem:[%s7887_s26 + $0xd4] ss:$316 sps:$4 sm:$0xff]  }
 0x28b   : > { %5177 = vmatpush1.bf16.xpose.msra.mxu0 %v7543_v56  ;;  %5217 = vmatpush1.bf16.xpose.msra.mxu1 %v7546_v57  ;;  %v7604_v56 = vld [vmem:[%s7887_s26 + $0xdc] ss:$316 sps:$4 sm:$0xff]   ;;  %v7599_v57 = vld [vmem:[%s7887_s26 + $0xd0] ss:$316 sps:$4 sm:$0xff]  }
 0x28c   : > { %5250 = vmatprep.subr.bf16.mxu0 %v7553_v58  ;;  %5290 = vmatprep.subr.bf16.mxu1 %v7558_v59  ;;  %v7602_v58 = vld [vmem:[%s7887_s26 + $0xd8] ss:$316 sps:$4 sm:$0xff]   ;;  %v7609_v59 = vld [vmem:[%s7887_s26 + $0x84c] ss:$316 sps:$4 sm:$0xff]  }
 0x292   : > { %v4716_v5 = vpop.f32.mrf.mxu0  ;;  %5195 = vmatmul.mubr.bf16.vlgmr.msra.gmra.mxu0 %v6694_v60  ;;  %v4756_v8 = vpop.f32.mrf.mxu1  ;;  %5235 = vmatmul.mubr.bf16.vlgmr.msra.gmra.mxu1 %v6696_v63  ;;  %v7614_v60 = vld [vmem:[%s7887_s26 + $0x854] ss:$316 sps:$4 sm:$0xff]   ;;  %v7607_v63 = vld [vmem:[%s7887_s26 + $0x848] ss:$316 sps:$4 sm:$0xff]  }
 0x293   : > { %v4717_v7 = vadd.f32 %v4716_v5, %v4677_v42  ;;  %5251 = vmatpush1.bf16.xpose.msra.mxu0 %v7551_v62  ;;  %5291 = vmatpush1.bf16.xpose.msra.mxu1 %v7556_v1  ;;  %v2078_v62 = vld [vmem:[%s8749_s3 + $0xe0] sm:$0xff]  ;;  %v8489_v1 = vld [vmem:[%s8749_s3 + $0xe8] sm:$0xff] }
 0x294   : > { %v4718_v10 = vpop.f32.mrf.mxu0  ;;  %5252 = vmatprep.subr.bf16.mxu0 %v7561_v2  ;;  %5292 = vmatprep.subr.bf16.mxu1 %v7564_v3  ;;  %v4758_v12 = vpop.f32.mrf.mxu1  ;;  %v7612_v2 = vld [vmem:[%s7887_s26 + $0x850] ss:$316 sps:$4 sm:$0xff]   ;;  %v6707_v5 = vcombine.high %v2078_v62, %v2078_v62  ;;  %v6706_v30 = vcombine.low %v2078_v62, %v2078_v62  ;;  %v6708_v33 = vcombine.low %v8489_v1, %v8489_v1 }
 0x295   : > { %v4757_v11 = vadd.f32 %v4756_v8, %v4717_v7  ;;  %5274 = vmatprep.mubr.bf16.mxu0 %v6699_v4  ;;  %5314 = vmatprep.mubr.bf16.mxu1 %v6701_v6  ;;  %v7617_v3 = vld [vmem:[%s7887_s26 + $0x5d4] ss:$316 sps:$4 sm:$0xff]   ;;  %v7620_v4 = vld [vmem:[%s7887_s26 + $0x5dc] ss:$316 sps:$4 sm:$0xff]   ;;  %v6709_v7 = vcombine.high %v8489_v1, %v8489_v1 }
 0x296   : > { %v4719_v13 = vpop.f32.mrf.mxu0  ;;  %v4759_v15 = vpop.f32.mrf.mxu1 }
 0x297   : > { %v7615_v15 = vld [vmem:[%s7887_s26 + $0x5d0] ss:$316 sps:$4 sm:$0xff]  }
 0x298   : > { %v4720_v16 = vpop.f32.mrf.mxu0  ;;  %v4760_v20 = vpop.f32.mrf.mxu1 }
 0x299   : > { %v7626_v20 = vld [vmem:[%s7887_s26 + $0x364] ss:$316 sps:$4 sm:$0xff]  }
 0x29b   : > { %5253 = vmatpush1.bf16.xpose.msra.mxu0 %v7559_v14  ;;  %5293 = vmatpush1.bf16.xpose.msra.mxu1 %v7562_v17 }
 0x29c   : > { %5254 = vmatprep.subr.bf16.mxu0 %v7567_v18  ;;  %5294 = vmatprep.subr.bf16.mxu1 %v7570_v19  ;;  %v7618_v18 = vld [vmem:[%s7887_s26 + $0x5d8] ss:$316 sps:$4 sm:$0xff]  }
 0x29d   : > { %v7623_v19 = vld [vmem:[%s7887_s26 + $0x35c] ss:$316 sps:$4 sm:$0xff]  }
 0x2a3   : > { %5255 = vmatpush1.bf16.xpose.msra.mxu0 %v7565_v21  ;;  %5295 = vmatpush1.bf16.xpose.msra.mxu1 %v7568_v22  ;;  %v7621_v22 = vld [vmem:[%s7887_s26 + $0x358] ss:$316 sps:$4 sm:$0xff]  }
 0x2a4   : > { %5256 = vmatprep.subr.bf16.mxu0 %v7573_v23  ;;  %5296 = vmatprep.subr.bf16.mxu1 %v7576_v24  ;;  %v7624_v23 = vld [vmem:[%s7887_s26 + $0x360] ss:$316 sps:$4 sm:$0xff]  }
 0x2a5   : > { %v7629_v24 = vld [vmem:[%s7887_s26 + $0xe4] ss:$316 sps:$4 sm:$0xff]  }
 0x2ab   : > { %5257 = vmatpush1.bf16.xpose.msra.mxu0 %v7571_v25  ;;  %5297 = vmatpush1.bf16.xpose.msra.mxu1 %v7574_v26  ;;  %v7632_v25 = vld [vmem:[%s7887_s26 + $0xec] ss:$316 sps:$4 sm:$0xff]   ;;  %v7627_v26 = vld [vmem:[%s7887_s26 + $0xe0] ss:$316 sps:$4 sm:$0xff]  }
 0x2ac   : > { %5330 = vmatprep.subr.bf16.mxu0 %v7581_v27  ;;  %5370 = vmatprep.subr.bf16.mxu1 %v7586_v28  ;;  %v7630_v27 = vld [vmem:[%s7887_s26 + $0xe8] ss:$316 sps:$4 sm:$0xff]   ;;  %v7637_v28 = vld [vmem:[%s7887_s26 + $0x85c] ss:$316 sps:$4 sm:$0xff]  }
 0x2b2   : > { %v4796_v38 = vpop.f32.mrf.mxu0  ;;  %5275 = vmatmul.mubr.bf16.vlgmr.msra.gmra.mxu0 %v6698_v29  ;;  %v4836_v41 = vpop.f32.mrf.mxu1  ;;  %5315 = vmatmul.mubr.bf16.vlgmr.msra.gmra.mxu1 %v6700_v32  ;;  %v7642_v29 = vld [vmem:[%s7887_s26 + $0x864] ss:$316 sps:$4 sm:$0xff]   ;;  %v7635_v32 = vld [vmem:[%s7887_s26 + $0x858] ss:$316 sps:$4 sm:$0xff]  }
 0x2b3   : > { %v4797_v40 = vadd.f32 %v4796_v38, %v4757_v11  ;;  %5331 = vmatpush1.bf16.xpose.msra.mxu0 %v7579_v31  ;;  %5371 = vmatpush1.bf16.xpose.msra.mxu1 %v7584_v34  ;;  %v2080_v31 = vld [vmem:[%s8749_s3 + $0xf0] sm:$0xff]  ;;  %v8517_v34 = vld [vmem:[%s8749_s3 + $0xf8] sm:$0xff] }
 0x2b4   : > { %v4798_v42 = vpop.f32.mrf.mxu0  ;;  %5332 = vmatprep.subr.bf16.mxu0 %v7589_v35  ;;  %5372 = vmatprep.subr.bf16.mxu1 %v7592_v36  ;;  %v4838_v44 = vpop.f32.mrf.mxu1  ;;  %v7640_v35 = vld [vmem:[%s7887_s26 + $0x860] ss:$316 sps:$4 sm:$0xff]   ;;  %v6711_v38 = vcombine.high %v2080_v31, %v2080_v31  ;;  %v6710_v62 = vcombine.low %v2080_v31, %v2080_v31  ;;  %v6712_v1 = vcombine.low %v8517_v34, %v8517_v34 }
 0x2b5   : > { %v4837_v43 = vadd.f32 %v4836_v41, %v4797_v40  ;;  %5354 = vmatprep.mubr.bf16.mxu0 %v6703_v37  ;;  %5394 = vmatprep.mubr.bf16.mxu1 %v6705_v39  ;;  %v7645_v36 = vld [vmem:[%s7887_s26 + $0x5e4] ss:$316 sps:$4 sm:$0xff]   ;;  %v7648_v37 = vld [vmem:[%s7887_s26 + $0x5ec] ss:$316 sps:$4 sm:$0xff]   ;;  %v6713_v40 = vcombine.high %v8517_v34, %v8517_v34 }
 0x2b6   : > { %v4799_v45 = vpop.f32.mrf.mxu0  ;;  %v4839_v47 = vpop.f32.mrf.mxu1 }
 0x2b7   : > { %v7643_v47 = vld [vmem:[%s7887_s26 + $0x5e0] ss:$316 sps:$4 sm:$0xff]  }
 0x2b8   : > { %v4800_v48 = vpop.f32.mrf.mxu0  ;;  %v4840_v52 = vpop.f32.mrf.mxu1 }
 0x2b9   : > { %v7654_v52 = vld [vmem:[%s7887_s26 + $0x374] ss:$316 sps:$4 sm:$0xff]  }
 0x2bb   : > { %5333 = vmatpush1.bf16.xpose.msra.mxu0 %v7587_v46  ;;  %5373 = vmatpush1.bf16.xpose.msra.mxu1 %v7590_v49 }
 0x2bc   : > { %5334 = vmatprep.subr.bf16.mxu0 %v7595_v50  ;;  %5374 = vmatprep.subr.bf16.mxu1 %v7598_v51  ;;  %v7646_v50 = vld [vmem:[%s7887_s26 + $0x5e8] ss:$316 sps:$4 sm:$0xff]  }
 0x2bd   : > { %v7651_v51 = vld [vmem:[%s7887_s26 + $0x36c] ss:$316 sps:$4 sm:$0xff]  }
 0x2c3   : > { %5335 = vmatpush1.bf16.xpose.msra.mxu0 %v7593_v53  ;;  %5375 = vmatpush1.bf16.xpose.msra.mxu1 %v7596_v54  ;;  %v7649_v54 = vld [vmem:[%s7887_s26 + $0x368] ss:$316 sps:$4 sm:$0xff]  }
 0x2c4   : > { %5336 = vmatprep.subr.bf16.mxu0 %v7601_v55  ;;  %5376 = vmatprep.subr.bf16.mxu1 %v7604_v56  ;;  %v7652_v55 = vld [vmem:[%s7887_s26 + $0x370] ss:$316 sps:$4 sm:$0xff]  }
 0x2c5   : > { %v7657_v56 = vld [vmem:[%s7887_s26 + $0xf4] ss:$316 sps:$4 sm:$0xff]  }
 0x2cb   : > { %5337 = vmatpush1.bf16.xpose.msra.mxu0 %v7599_v57  ;;  %5377 = vmatpush1.bf16.xpose.msra.mxu1 %v7602_v58  ;;  %v7660_v57 = vld [vmem:[%s7887_s26 + $0xfc] ss:$316 sps:$4 sm:$0xff]   ;;  %v7655_v58 = vld [vmem:[%s7887_s26 + $0xf0] ss:$316 sps:$4 sm:$0xff]  }
 0x2cc   : > { %5410 = vmatprep.subr.bf16.mxu0 %v7609_v59  ;;  %5450 = vmatprep.subr.bf16.mxu1 %v7614_v60  ;;  %v7658_v59 = vld [vmem:[%s7887_s26 + $0xf8] ss:$316 sps:$4 sm:$0xff]   ;;  %v7665_v60 = vld [vmem:[%s7887_s26 + $0x86c] ss:$316 sps:$4 sm:$0xff]  }
 0x2d2   : > { %v4876_v6 = vpop.f32.mrf.mxu0  ;;  %5355 = vmatmul.mubr.bf16.vlgmr.msra.gmra.mxu0 %v6702_v61  ;;  %v4916_v10 = vpop.f32.mrf.mxu1  ;;  %5395 = vmatmul.mubr.bf16.vlgmr.msra.gmra.mxu1 %v6704_v0  ;;  %v7670_v61 = vld [vmem:[%s7887_s26 + $0x874] ss:$316 sps:$4 sm:$0xff]   ;;  %v7663_v0 = vld [vmem:[%s7887_s26 + $0x868] ss:$316 sps:$4 sm:$0xff]  }
 0x2d3   : > { %v4877_v8 = vadd.f32 %v4876_v6, %v4837_v43  ;;  %5411 = vmatpush1.bf16.xpose.msra.mxu0 %v7607_v63  ;;  %5451 = vmatpush1.bf16.xpose.msra.mxu1 %v7612_v2  ;;  %v2082_v63 = vld [vmem:[%s8749_s3 + $0x100] sm:$0xff]  ;;  %v8545_v2 = vld [vmem:[%s8749_s3 + $0x108] sm:$0xff] }
 0x2d4   : > { %v4878_v11 = vpop.f32.mrf.mxu0  ;;  %5412 = vmatprep.subr.bf16.mxu0 %v7617_v3  ;;  %5452 = vmatprep.subr.bf16.mxu1 %v7620_v4  ;;  %v4918_v13 = vpop.f32.mrf.mxu1  ;;  %v7668_v3 = vld [vmem:[%s7887_s26 + $0x870] ss:$316 sps:$4 sm:$0xff]   ;;  %v6715_v6 = vcombine.high %v2082_v63, %v2082_v63  ;;  %v6714_v31 = vcombine.low %v2082_v63, %v2082_v63  ;;  %v6716_v34 = vcombine.low %v8545_v2, %v8545_v2 }
 0x2d5   : > { %v4917_v12 = vadd.f32 %v4916_v10, %v4877_v8  ;;  %5434 = vmatprep.mubr.bf16.mxu0 %v6707_v5  ;;  %5474 = vmatprep.mubr.bf16.mxu1 %v6709_v7  ;;  %v7673_v4 = vld [vmem:[%s7887_s26 + $0x5f4] ss:$316 sps:$4 sm:$0xff]   ;;  %v7676_v5 = vld [vmem:[%s7887_s26 + $0x5fc] ss:$316 sps:$4 sm:$0xff]   ;;  %v6717_v8 = vcombine.high %v8545_v2, %v8545_v2 }
 0x2d6   : > { %v4879_v14 = vpop.f32.mrf.mxu0  ;;  %v4919_v16 = vpop.f32.mrf.mxu1 }
 0x2d7   : > { %v7671_v16 = vld [vmem:[%s7887_s26 + $0x5f0] ss:$316 sps:$4 sm:$0xff]  }
 0x2d8   : > { %v4880_v17 = vpop.f32.mrf.mxu0  ;;  %v4920_v21 = vpop.f32.mrf.mxu1 }
 0x2d9   : > { %v7682_v21 = vld [vmem:[%s7887_s26 + $0x384] ss:$316 sps:$4 sm:$0xff]  }
 0x2db   : > { %5413 = vmatpush1.bf16.xpose.msra.mxu0 %v7615_v15  ;;  %5453 = vmatpush1.bf16.xpose.msra.mxu1 %v7618_v18 }
 0x2dc   : > { %5414 = vmatprep.subr.bf16.mxu0 %v7623_v19  ;;  %5454 = vmatprep.subr.bf16.mxu1 %v7626_v20  ;;  %v7674_v19 = vld [vmem:[%s7887_s26 + $0x5f8] ss:$316 sps:$4 sm:$0xff]  }
 0x2dd   : > { %v7679_v20 = vld [vmem:[%s7887_s26 + $0x37c] ss:$316 sps:$4 sm:$0xff]  }
 0x2e3   : > { %5415 = vmatpush1.bf16.xpose.msra.mxu0 %v7621_v22  ;;  %5455 = vmatpush1.bf16.xpose.msra.mxu1 %v7624_v23  ;;  %v7677_v23 = vld [vmem:[%s7887_s26 + $0x378] ss:$316 sps:$4 sm:$0xff]  }
 0x2e4   : > { %5416 = vmatprep.subr.bf16.mxu0 %v7629_v24  ;;  %5456 = vmatprep.subr.bf16.mxu1 %v7632_v25  ;;  %v7680_v24 = vld [vmem:[%s7887_s26 + $0x380] ss:$316 sps:$4 sm:$0xff]  }
 0x2e5   : > { %v7685_v25 = vld [vmem:[%s7887_s26 + $0x104] ss:$316 sps:$4 sm:$0xff]  }
 0x2eb   : > { %5417 = vmatpush1.bf16.xpose.msra.mxu0 %v7627_v26  ;;  %5457 = vmatpush1.bf16.xpose.msra.mxu1 %v7630_v27  ;;  %v7688_v26 = vld [vmem:[%s7887_s26 + $0x10c] ss:$316 sps:$4 sm:$0xff]   ;;  %v7683_v27 = vld [vmem:[%s7887_s26 + $0x100] ss:$316 sps:$4 sm:$0xff]  }
 0x2ec   : > { %5490 = vmatprep.subr.bf16.mxu0 %v7637_v28  ;;  %5530 = vmatprep.subr.bf16.mxu1 %v7642_v29  ;;  %v7686_v28 = vld [vmem:[%s7887_s26 + $0x108] ss:$316 sps:$4 sm:$0xff]   ;;  %v7693_v29 = vld [vmem:[%s7887_s26 + $0x87c] ss:$316 sps:$4 sm:$0xff]  }
 0x2f2   : > { %v4956_v39 = vpop.f32.mrf.mxu0  ;;  %5435 = vmatmul.mubr.bf16.vlgmr.msra.gmra.mxu0 %v6706_v30  ;;  %v4996_v42 = vpop.f32.mrf.mxu1  ;;  %5475 = vmatmul.mubr.bf16.vlgmr.msra.gmra.mxu1 %v6708_v33  ;;  %v7698_v30 = vld [vmem:[%s7887_s26 + $0x884] ss:$316 sps:$4 sm:$0xff]   ;;  %v7691_v33 = vld [vmem:[%s7887_s26 + $0x878] ss:$316 sps:$4 sm:$0xff]  }
 0x2f3   : > { %v4957_v41 = vadd.f32 %v4956_v39, %v4917_v12  ;;  %5491 = vmatpush1.bf16.xpose.msra.mxu0 %v7635_v32  ;;  %5531 = vmatpush1.bf16.xpose.msra.mxu1 %v7640_v35  ;;  %v2084_v32 = vld [vmem:[%s8749_s3 + $0x110] sm:$0xff]  ;;  %v8573_v35 = vld [vmem:[%s8749_s3 + $0x118] sm:$0xff] }
 0x2f4   : > { %v4958_v43 = vpop.f32.mrf.mxu0  ;;  %5492 = vmatprep.subr.bf16.mxu0 %v7645_v36  ;;  %5532 = vmatprep.subr.bf16.mxu1 %v7648_v37  ;;  %v4998_v45 = vpop.f32.mrf.mxu1  ;;  %v7696_v36 = vld [vmem:[%s7887_s26 + $0x880] ss:$316 sps:$4 sm:$0xff]   ;;  %v6719_v39 = vcombine.high %v2084_v32, %v2084_v32  ;;  %v6718_v63 = vcombine.low %v2084_v32, %v2084_v32  ;;  %v6720_v2 = vcombine.low %v8573_v35, %v8573_v35 }
 0x2f5   : > { %v4997_v44 = vadd.f32 %v4996_v42, %v4957_v41  ;;  %5514 = vmatprep.mubr.bf16.mxu0 %v6711_v38  ;;  %5554 = vmatprep.mubr.bf16.mxu1 %v6713_v40  ;;  %v7701_v37 = vld [vmem:[%s7887_s26 + $0x604] ss:$316 sps:$4 sm:$0xff]   ;;  %v7704_v38 = vld [vmem:[%s7887_s26 + $0x60c] ss:$316 sps:$4 sm:$0xff]   ;;  %v6721_v41 = vcombine.high %v8573_v35, %v8573_v35  ;;  %v7747_v35 = vld [vmem:[%s7887_s26 + $0x898] ss:$316 sps:$4 sm:$0xff]  }
 0x2f6   : > { %v4959_v46 = vpop.f32.mrf.mxu0  ;;  %v4999_v48 = vpop.f32.mrf.mxu1  ;;  %v7752_v32 = vld [vmem:[%s7887_s26 + $0x8a0] ss:$316 sps:$4 sm:$0xff]  }
 0x2f7   : > { %v7699_v48 = vld [vmem:[%s7887_s26 + $0x600] ss:$316 sps:$4 sm:$0xff]  }
 0x2f8   : > { %v4960_v49 = vpop.f32.mrf.mxu0  ;;  %v5000_v53 = vpop.f32.mrf.mxu1 }
 0x2f9   : > { %v7710_v53 = vld [vmem:[%s7887_s26 + $0x394] ss:$316 sps:$4 sm:$0xff]  }
 0x2fb   : > { %5493 = vmatpush1.bf16.xpose.msra.mxu0 %v7643_v47  ;;  %5533 = vmatpush1.bf16.xpose.msra.mxu1 %v7646_v50 }
 0x2fc   : > { %5494 = vmatprep.subr.bf16.mxu0 %v7651_v51  ;;  %5534 = vmatprep.subr.bf16.mxu1 %v7654_v52  ;;  %v7702_v51 = vld [vmem:[%s7887_s26 + $0x608] ss:$316 sps:$4 sm:$0xff]  }
 0x2fd   : > { %v7707_v52 = vld [vmem:[%s7887_s26 + $0x38c] ss:$316 sps:$4 sm:$0xff]  }
 0x303   : > { %5495 = vmatpush1.bf16.xpose.msra.mxu0 %v7649_v54  ;;  %5535 = vmatpush1.bf16.xpose.msra.mxu1 %v7652_v55  ;;  %v7705_v55 = vld [vmem:[%s7887_s26 + $0x388] ss:$316 sps:$4 sm:$0xff]  }
 0x304   : > { %5496 = vmatprep.subr.bf16.mxu0 %v7657_v56  ;;  %5536 = vmatprep.subr.bf16.mxu1 %v7660_v57  ;;  %v7708_v56 = vld [vmem:[%s7887_s26 + $0x390] ss:$316 sps:$4 sm:$0xff]  }
 0x305   : > { %v7713_v57 = vld [vmem:[%s7887_s26 + $0x114] ss:$316 sps:$4 sm:$0xff]  }
 0x30b   : > { %5497 = vmatpush1.bf16.xpose.msra.mxu0 %v7655_v58  ;;  %5537 = vmatpush1.bf16.xpose.msra.mxu1 %v7658_v59  ;;  %v7716_v58 = vld [vmem:[%s7887_s26 + $0x11c] ss:$316 sps:$4 sm:$0xff]   ;;  %v7711_v59 = vld [vmem:[%s7887_s26 + $0x110] ss:$316 sps:$4 sm:$0xff]  }
 0x30c   : > { %5570 = vmatprep.subr.bf16.mxu0 %v7665_v60  ;;  %5610 = vmatprep.subr.bf16.mxu1 %v7670_v61  ;;  %v7714_v60 = vld [vmem:[%s7887_s26 + $0x118] ss:$316 sps:$4 sm:$0xff]   ;;  %v7721_v61 = vld [vmem:[%s7887_s26 + $0x88c] ss:$316 sps:$4 sm:$0xff]  }
 0x312   : > { %v5036_v7 = vpop.f32.mrf.mxu0  ;;  %5515 = vmatmul.mubr.bf16.vlgmr.msra.gmra.mxu0 %v6710_v62  ;;  %v5076_v11 = vpop.f32.mrf.mxu1  ;;  %5555 = vmatmul.mubr.bf16.vlgmr.msra.gmra.mxu1 %v6712_v1  ;;  %v7726_v62 = vld [vmem:[%s7887_s26 + $0x894] ss:$316 sps:$4 sm:$0xff]   ;;  %v7719_v1 = vld [vmem:[%s7887_s26 + $0x888] ss:$316 sps:$4 sm:$0xff]  }
 0x313   : > { %v5037_v10 = vadd.f32 %v5036_v7, %v4997_v44  ;;  %5571 = vmatpush1.bf16.xpose.msra.mxu0 %v7663_v0  ;;  %5611 = vmatpush1.bf16.xpose.msra.mxu1 %v7668_v3  ;;  %v2086_v0 = vld [vmem:[%s8749_s3 + $0x120] sm:$0xff]  ;;  %v2087_v3 = vld [vmem:[%s8749_s3 + $0x128] sm:$0xff] }
 0x314   : > { %v5038_v12 = vpop.f32.mrf.mxu0  ;;  %5572 = vmatprep.subr.bf16.mxu0 %v7673_v4  ;;  %5612 = vmatprep.subr.bf16.mxu1 %v7676_v5  ;;  %v5078_v14 = vpop.f32.mrf.mxu1  ;;  %v7724_v4 = vld [vmem:[%s7887_s26 + $0x890] ss:$316 sps:$4 sm:$0xff]   ;;  %v6723_v7 = vcombine.high %v2086_v0, %v2086_v0 }
 0x315   : > { %v5077_v13 = vadd.f32 %v5076_v11, %v5037_v10  ;;  %5594 = vmatprep.mubr.bf16.mxu0 %v6715_v6  ;;  %5634 = vmatprep.mubr.bf16.mxu1 %v6717_v8  ;;  %v7729_v5 = vld [vmem:[%s7887_s26 + $0x614] ss:$316 sps:$4 sm:$0xff]   ;;  %v7732_v6 = vld [vmem:[%s7887_s26 + $0x61c] ss:$316 sps:$4 sm:$0xff]   ;;  %v6725_v10 = vcombine.high %v2087_v3, %v2087_v3 }
 0x316   : > { %v5039_v15 = vpop.f32.mrf.mxu0  ;;  %v5079_v17 = vpop.f32.mrf.mxu1 }
 0x317   : > { %v7727_v17 = vld [vmem:[%s7887_s26 + $0x610] ss:$316 sps:$4 sm:$0xff]  }
 0x318   : > { %v5040_v18 = vpop.f32.mrf.mxu0  ;;  %v5080_v22 = vpop.f32.mrf.mxu1 }
 0x319   : > { %v7738_v22 = vld [vmem:[%s7887_s26 + $0x3a4] ss:$316 sps:$4 sm:$0xff]  }
 0x31b   : > { %5573 = vmatpush1.bf16.xpose.msra.mxu0 %v7671_v16  ;;  %5613 = vmatpush1.bf16.xpose.msra.mxu1 %v7674_v19 }
 0x31c   : > { %5574 = vmatprep.subr.bf16.mxu0 %v7679_v20  ;;  %5614 = vmatprep.subr.bf16.mxu1 %v7682_v21  ;;  %v7730_v20 = vld [vmem:[%s7887_s26 + $0x618] ss:$316 sps:$4 sm:$0xff]  }
 0x31d   : > { %v7735_v21 = vld [vmem:[%s7887_s26 + $0x39c] ss:$316 sps:$4 sm:$0xff]  }
 0x323   : > { %5575 = vmatpush1.bf16.xpose.msra.mxu0 %v7677_v23  ;;  %5615 = vmatpush1.bf16.xpose.msra.mxu1 %v7680_v24  ;;  %v7733_v24 = vld [vmem:[%s7887_s26 + $0x398] ss:$316 sps:$4 sm:$0xff]  }
 0x324   : > { %5576 = vmatprep.subr.bf16.mxu0 %v7685_v25  ;;  %5616 = vmatprep.subr.bf16.mxu1 %v7688_v26  ;;  %v7736_v25 = vld [vmem:[%s7887_s26 + $0x3a0] ss:$316 sps:$4 sm:$0xff]  }
 0x325   : > { %v7741_v26 = vld [vmem:[%s7887_s26 + $0x124] ss:$316 sps:$4 sm:$0xff]  }
 0x32b   : > { %5577 = vmatpush1.bf16.xpose.msra.mxu0 %v7683_v27  ;;  %5617 = vmatpush1.bf16.xpose.msra.mxu1 %v7686_v28  ;;  %v7744_v27 = vld [vmem:[%s7887_s26 + $0x12c] ss:$316 sps:$4 sm:$0xff]   ;;  %v7739_v28 = vld [vmem:[%s7887_s26 + $0x120] ss:$316 sps:$4 sm:$0xff]  }
 0x32c   : > { %5650 = vmatprep.subr.bf16.mxu0 %v7693_v29  ;;  %5690 = vmatprep.subr.bf16.mxu1 %v7698_v30  ;;  %v7742_v29 = vld [vmem:[%s7887_s26 + $0x128] ss:$316 sps:$4 sm:$0xff]   ;;  %v7749_v30 = vld [vmem:[%s7887_s26 + $0x89c] ss:$316 sps:$4 sm:$0xff]  }
 0x332   : > { %v5116_v40 = vpop.f32.mrf.mxu0  ;;  %5595 = vmatmul.mubr.bf16.vlgmr.msra.gmra.mxu0 %v6714_v31  ;;  %v5156_v43 = vpop.f32.mrf.mxu1  ;;  %5635 = vmatmul.mubr.bf16.vlgmr.msra.gmra.mxu1 %v6716_v34  ;;  %v7782_v31 = vmov 0.0   ;;  %v2088_v34 = vld [vmem:[%s8749_s3 + $0x130] sm:$0xff] }
 0x333   : > { %v5117_v42 = vadd.f32 %v5116_v40, %v5077_v13  ;;  %5651 = vmatpush1.bf16.xpose.msra.mxu0 %v7691_v33  ;;  %5691 = vmatpush1.bf16.xpose.msra.mxu1 %v7696_v36  ;;  %v6722_v33 = vcombine.low %v2086_v0, %v2086_v0  ;;  %v6724_v36 = vcombine.low %v2087_v3, %v2087_v3 }
 0x334   : > { %v5118_v44 = vpop.f32.mrf.mxu0  ;;  %5652 = vmatprep.subr.bf16.mxu0 %v7701_v37  ;;  %5692 = vmatprep.subr.bf16.mxu1 %v7704_v38  ;;  %v5158_v46 = vpop.f32.mrf.mxu1  ;;  %v7755_v37 = vld [vmem:[%s7887_s26 + $0x624] ss:$316 sps:$4 sm:$0xff]   ;;  %v4280_v38 = vsel %vm4266_vm1, %v7752_v32, 0 }
 0x335   : > { %v5157_v45 = vadd.f32 %v5156_v43, %v5117_v42  ;;  %5674 = vmatprep.mubr.bf16.mxu0 %v6719_v39  ;;  %5714 = vmatprep.mubr.bf16.mxu1 %v6721_v41  ;;  %v6727_v39 = vcombine.high %v2088_v34, %v2088_v34 }
 0x336   : > { %v5119_v47 = vpop.f32.mrf.mxu0  ;;  %v5159_v49 = vpop.f32.mrf.mxu1 }
 0x338   : > { %v5120_v50 = vpop.f32.mrf.mxu0  ;;  %v5160_v54 = vpop.f32.mrf.mxu1 }
 0x339   : > { %v7760_v54 = vld [vmem:[%s7887_s26 + $0x3b0] ss:$316 sps:$4 sm:$0xff]  }
 0x33b   : > { %5653 = vmatpush1.bf16.xpose.msra.mxu0 %v7699_v48  ;;  %5693 = vmatpush1.bf16.xpose.msra.mxu1 %v7702_v51  ;;  %v7753_v48 = vld [vmem:[%s7887_s26 + $0x620] ss:$316 sps:$4 sm:$0xff]   ;;  %v7759_v51 = vld [vmem:[%s7887_s26 + $0x3ac] ss:$316 sps:$4 sm:$0xff]  }
 0x33c   : > { %5654 = vmatprep.subr.bf16.mxu0 %v7707_v52  ;;  %5694 = vmatprep.subr.bf16.mxu1 %v7710_v53 }
 0x343   : > { %5655 = vmatpush1.bf16.xpose.msra.mxu0 %v7705_v55  ;;  %5695 = vmatpush1.bf16.xpose.msra.mxu1 %v7708_v56  ;;  %v7757_v55 = vld [vmem:[%s7887_s26 + $0x3a8] ss:$316 sps:$4 sm:$0xff]   ;;  %v7763_v56 = vld [vmem:[%s7887_s26 + $0x134] ss:$316 sps:$4 sm:$0xff]  }
 0x344   : > { %5656 = vmatprep.subr.bf16.mxu0 %v7713_v57  ;;  %5696 = vmatprep.subr.bf16.mxu1 %v7716_v58  ;;  %v4274_v57 = vsel %vm4266_vm1, %v7760_v54, 0  ;;  %v7764_v58 = vld [vmem:[%s7887_s26 + $0x138] ss:$316 sps:$4 sm:$0xff]  }
 0x34b   : > { %5657 = vmatpush1.bf16.xpose.msra.mxu0 %v7711_v59  ;;  %5697 = vmatpush1.bf16.xpose.msra.mxu1 %v7714_v60  ;;  %v7761_v59 = vld [vmem:[%s7887_s26 + $0x130] ss:$316 sps:$4 sm:$0xff]   ;;  %v4271_v60 = vsel %vm4266_vm1, %v7764_v58, 0 }
 0x34c   : > { %5730 = vmatprep.subr.bf16.mxu0 %v7721_v61  ;;  %5770 = vmatprep.subr.bf16.mxu1 %v7726_v62  ;;  %v6726_v61 = vcombine.low %v2088_v34, %v2088_v34  ;;  %v7767_v62 = vld [vmem:[%s8749_s3 + $0x138] ss:$0 sps:$4 sm:$0xff]  }
 0x352   : > { %v5196_v8 = vpop.f32.mrf.mxu0  ;;  %5675 = vmatmul.mubr.bf16.vlgmr.msra.gmra.mxu0 %v6718_v63  ;;  %v5236_v12 = vpop.f32.mrf.mxu1  ;;  %5715 = vmatmul.mubr.bf16.vlgmr.msra.gmra.mxu1 %v6720_v2  ;;  %v2049_v63 = vld [vmem:[%s8646_s25 + $0x38] sm:$0xff] }
 0x353   : > { %v5197_v11 = vadd.f32 %v5196_v8, %v5157_v45  ;;  %5731 = vmatpush1.bf16.xpose.msra.mxu0 %v7719_v1  ;;  %5771 = vmatpush1.bf16.xpose.msra.mxu1 %v7724_v4  ;;  %v7756_v45 = vld [vmem:[%s7887_s26 + $0x628] ss:$316 sps:$4 sm:$0xff]   ;;  %v2048_v4 = vld [vmem:[%s8646_s25 + $0x30] sm:$0xff] }
 0x354   : > { %v5198_v13 = vpop.f32.mrf.mxu0  ;;  %5732 = vmatprep.subr.bf16.mxu0 %v7729_v5  ;;  %5772 = vmatprep.subr.bf16.mxu1 %v7732_v6  ;;  %v5238_v15 = vpop.f32.mrf.mxu1  ;;  %v4277_v52 = vsel %vm4266_vm1, %v7756_v45, 0 }
 0x355   : > { %v5237_v14 = vadd.f32 %v5236_v12, %v5197_v11  ;;  %5754 = vmatprep.mubr.bf16.mxu0 %v6723_v7  ;;  %5794 = vmatprep.mubr.bf16.mxu1 %v6725_v10  ;;  %v2047_v11 = vld [vmem:[%s8646_s25 + $0x28] sm:$0xff]  ;;  %v2046_v13 = vld [vmem:[%s8646_s25 + $0x20] sm:$0xff]  ;;  %v2044_v15 = vld [vmem:[%s8646_s25 + $0x10] sm:$0xff] }
 0x356   : > { %v5199_v16 = vpop.f32.mrf.mxu0  ;;  %v5239_v18 = vpop.f32.mrf.mxu1 }
 0x357   : > { %v2043_v16 = vld [vmem:[%s8646_s25 + $0x8] sm:$0xff]  ;;  %v2041_v18 = vmax.f32 %v8278_v9, 0.0 }
 0x358   : > { %v5200_v19 = vpop.f32.mrf.mxu0  ;;  %v5240_v23 = vpop.f32.mrf.mxu1 }
 0x35b   : > { %5733 = vmatpush1.bf16.xpose.msra.mxu0 %v7727_v17  ;;  %5773 = vmatpush1.bf16.xpose.msra.mxu1 %v7730_v20  ;;  %v2042_v17 = vld [vmem:[%s8646_s25] sm:$0xff] }
 0x35c   : > { %5734 = vmatprep.subr.bf16.mxu0 %v7735_v21  ;;  %5774 = vmatprep.subr.bf16.mxu1 %v7738_v22 }
 0x363   : > { %5735 = vmatpush1.bf16.xpose.msra.mxu0 %v7733_v24  ;;  %5775 = vmatpush1.bf16.xpose.msra.mxu1 %v7736_v25 }
 0x364   : > { %5736 = vmatprep.subr.bf16.mxu0 %v7741_v26  ;;  %5776 = vmatprep.subr.bf16.mxu1 %v7744_v27 }
 0x36b   : > { %5737 = vmatpush1.bf16.xpose.msra.mxu0 %v7739_v28  ;;  %5777 = vmatpush1.bf16.xpose.msra.mxu1 %v7742_v29 }
 0x36c   : > { %5810 = vmatprep.subr.bf16.mxu0 %v7749_v30  ;;  %7107 = vmatprep.subr.bf16.mxu1 %v7782_v31 }
 0x372   : > { %v5276_v40 = vpop.f32.mrf.mxu0  ;;  %5755 = vmatmul.mubr.bf16.vlgmr.msra.gmra.mxu0 %v6722_v33  ;;  %v5316_v42 = vpop.f32.mrf.mxu1  ;;  %5795 = vmatmul.mubr.bf16.vlgmr.msra.gmra.mxu1 %v6724_v36 }
 0x373   : > { %v5277_v41 = vadd.f32 %v5276_v40, %v5237_v14  ;;  %5811 = vmatpush1.bf16.xpose.msra.mxu0 %v7747_v35  ;;  %7108 = vmatpush3.bf16.xpose.msra.mxu1 %v4280_v38  ;;  %v2045_v14 = vld [vmem:[%s8646_s25 + $0x18] sm:$0xff]  ;;  %s485_s25 = scalar_lea.vmem %s8756_s10, %s6483_s22 }
 0x374   : > { %v5278_v43 = vpop.f32.mrf.mxu0  ;;  %5812 = vmatprep.subr.bf16.mxu0 %v7755_v37  ;;  %7109 = vmatprep.subr.bf16.mxu1 %v7782_v31  ;;  %v5318_v46 = vpop.f32.mrf.mxu1 }
 0x375   : > { %v5317_v44 = vadd.f32 %v5316_v42, %v5277_v41  ;;  %5834 = vmatprep.mubr.bf16.mxu0 %v6727_v39  ;;  %7115 = vmatprep.mubr.msk.bf16.mxu1 %vm7783_vm2, %v7782_v31 }
 0x376   : > { %v5279_v47 = vpop.f32.mrf.mxu0  ;;  %v5319_v49 = vpop.f32.mrf.mxu1 }
 0x378   : > { %v5280_v50 = vpop.f32.mrf.mxu0  ;;  %v5320_v53 = vpop.f32.mrf.mxu1 }
 0x37b   : > { %5813 = vmatpush1.bf16.xpose.msra.mxu0 %v7753_v48  ;;  %7110 = vmatpush3.bf16.xpose.msra.mxu1 %v4277_v52 }
 0x37c   : > { %5814 = vmatprep.subr.bf16.mxu0 %v7759_v51  ;;  %7111 = vmatprep.subr.bf16.mxu1 %v7782_v31 }
 0x383   : > { %5815 = vmatpush1.bf16.xpose.msra.mxu0 %v7757_v55  ;;  %7112 = vmatpush3.bf16.xpose.msra.mxu1 %v4274_v57 }
 0x384   : > { %5816 = vmatprep.subr.bf16.mxu0 %v7763_v56  ;;  %7113 = vmatprep.subr.bf16.mxu1 %v7782_v31 }
 0x38b   : > { %5817 = vmatpush1.bf16.xpose.msra.mxu0 %v7761_v59  ;;  %7114 = vmatpush3.bf16.xpose.msra.mxu1 %v4271_v60 }
 0x38c   : > { %7119 = vmatprep.subr.mxu0 %v7782_v31  ;;  %7138 = vmatprep.subr.mxu1 %v7782_v31 }
 0x392   : > { %v5356_v0 = vpop.f32.mrf.mxu0  ;;  %5835 = vmatmul.mubr.bf16.vlgmr.msra.gmra.mxu0 %v6726_v61  ;;  %v5396_v2 = vpop.f32.mrf.mxu1  ;;  %7116 = vmatmul.mubr.msk.bf16.vlgmr.msra.gmra.mxu1 %vm4266_vm1, %v7767_v62 }
 0x393   : > { %v5357_v1 = vadd.f32 %v5356_v0, %v5317_v44  ;;  %7120 = vmatpush3.xpose.msk.msra.mxu0 %vm5882_vm3, %v2049_v63  ;;  %7135 = vmatprep.mubr.msk.f32.mxu0 %vm7783_vm2, %v7782_v31 }
 0x394   : > { %v5358_v3 = vpop.f32.mrf.mxu0  ;;  %7121 = vmatprep.subr.mxu0 %v7782_v31  ;;  %v5398_v6 = vpop.f32.mrf.mxu1  ;;  %7140 = vmatprep.mubr.msk.f32.mxu1 %vm7783_vm2, %v7782_v31 }
 0x395   : > { %v5397_v5 = vadd.f32 %v5396_v2, %v5357_v1 }
 0x396   : > { %v5359_v7 = vpop.f32.mrf.mxu0  ;;  %v5399_v8 = vpop.f32.mrf.mxu1 }
 0x397   : > { %7122 = vmatpush3.xpose.msk.msra.mxu0 %vm5882_vm3, %v2048_v4 }
 0x398   : > { %v5360_v10 = vpop.f32.mrf.mxu0  ;;  %7123 = vmatprep.subr.mxu0 %v7782_v31  ;;  %v5400_v12 = vpop.f32.mrf.mxu1 }
 0x39b   : > { %7124 = vmatpush3.xpose.msk.msra.mxu0 %vm5882_vm3, %v2047_v11 }
 0x39c   : > { %7125 = vmatprep.subr.mxu0 %v7782_v31 }
 0x39f   : > { %7126 = vmatpush3.xpose.msk.msra.mxu0 %vm5882_vm3, %v2046_v13 }
 0x3a0   : > { %7127 = vmatprep.subr.mxu0 %v7782_v31 }
 0x3a3   : > { %7128 = vmatpush3.xpose.msk.msra.mxu0 %vm5882_vm3, %v2045_v14 }
 0x3a4   : > { %7129 = vmatprep.subr.mxu0 %v7782_v31 }
 0x3a7   : > { %7130 = vmatpush3.xpose.msk.msra.mxu0 %vm5882_vm3, %v2044_v15 }
 0x3a8   : > { %7131 = vmatprep.subr.mxu0 %v7782_v31 }
 0x3ab   : > { %7132 = vmatpush3.xpose.msk.msra.mxu0 %vm5882_vm3, %v2043_v16 }
 0x3ac   : > { %7133 = vmatprep.subr.mxu0 %v7782_v31 }
 0x3af   : > { %7134 = vmatpush3.xpose.msk.msra.mxu0 %vm5882_vm3, %v2042_v17 }
 0x3b0   : > { %7162 = vmatprep.subr.mxu0 %v7782_v31 }
 0x3b2   : > { %v5436_v19 = vpop.f32.mrf.mxu0  ;;  %7136 = vmatmul.mubr.msk.f32.vlgmr.msra.gmra.mxu0 %vm5882_vm3, %v2041_v18  ;;  %v5476_v21 = vpop.f32.mrf.mxu1  ;;  %v5980_v18 = vld [vmem:[%s8752_s6] sm:$0xff] }
 0x3b3   : > { %v5437_v20 = vadd.f32 %v5436_v19, %v5397_v5  ;;  %7164 = vmatprep.mubr.msk.f32.mxu0 %vm7783_vm2, %v7782_v31 }
 0x3b4   : > { %v5438_v22 = vpop.f32.mrf.mxu0  ;;  %v5478_v24 = vpop.f32.mrf.mxu1 }
 0x3b5   : > { %v5477_v23 = vadd.f32 %v5476_v21, %v5437_v20  ;;  %v6063_v20 = vld [vmem:[%s8690_s30 + $0x38] sm:$0xff]  ;;  %v6062_v21 = vld [vmem:[%s8690_s30 + $0x30] sm:$0xff]  ;;  %v6061_v22 = vld [vmem:[%s8690_s30 + $0x28] sm:$0xff] }
 0x3b6   : > { %v5439_v25 = vpop.f32.mrf.mxu0  ;;  %v5479_v26 = vpop.f32.mrf.mxu1  ;;  %v6059_v24 = vld [vmem:[%s8690_s30 + $0x18] sm:$0xff] }
 0x3b7   : > { %v6058_v25 = vld [vmem:[%s8690_s30 + $0x10] sm:$0xff]  ;;  %v6057_v26 = vld [vmem:[%s8690_s30 + $0x8] sm:$0xff] }
 0x3b8   : > { %v5440_v27 = vpop.f32.mrf.mxu0  ;;  %v5480_v28 = vpop.f32.mrf.mxu1 }
 0x3b9   : > { %v6056_v27 = vld [vmem:[%s8690_s30] sm:$0xff] }
 0x3d2   : > { %v5516_v29 = vpop.f32.mrf.mxu0  ;;  %v5556_v9 = vpop.f32.mrf.mxu1 }
 0x3d3   : > { %v5517_v30 = vadd.f32 %v5516_v29, %v5477_v23  ;;  %v6060_v23 = vld [vmem:[%s8690_s30 + $0x20] sm:$0xff] }
 0x3d4   : > { %v5518_v32 = vpop.f32.mrf.mxu0  ;;  %v5558_v34 = vpop.f32.mrf.mxu1 }
 0x3d5   : > { %v5557_v33 = vadd.f32 %v5556_v9, %v5517_v30  ;;  %v6232_v34 = vld [vmem:[%s478_s18] sm:$0xff] }
 0x3d6   : > { %v5519_v35 = vpop.f32.mrf.mxu0  ;;  %v5559_v36 = vpop.f32.mrf.mxu1 }
 0x3d8   : > { %v5520_v37 = vpop.f32.mrf.mxu0  ;;  %v5560_v38 = vpop.f32.mrf.mxu1 }
 0x3d9   : > { %v7066_v38 = vld [vmem:[%s481_s21] ss:$0 sm:$0xff] }
 0x3f2   : > { %v5596_v39 = vpop.f32.mrf.mxu0  ;;  %v5636_v41 = vpop.f32.mrf.mxu1 }
 0x3f3   : > { %v5597_v40 = vadd.f32 %v5596_v39, %v5557_v33  ;;  %v6233_v33 = vld [vmem:[%s478_s18 + $0x8] sm:$0x3] }
 0x3f4   : > { %v5598_v42 = vpop.f32.mrf.mxu0  ;;  %v5638_v44 = vpop.f32.mrf.mxu1 }
 0x3f5   : > { %v5637_v43 = vadd.f32 %v5636_v41, %v5597_v40 }
 0x3f6   : > { %v5599_v45 = vpop.f32.mrf.mxu0  ;;  %v5639_v46 = vpop.f32.mrf.mxu1 }
 0x3f7   : > { %v6329_v46 = vlaneseq }
 0x3f8   : > { %v5600_v47 = vpop.f32.mrf.mxu0  ;;  %v5640_v48 = vpop.f32.mrf.mxu1 }
 0x3f9   : > { %v6330_v48 = vand.u32 127, %v6329_v46 }
 0x3fb   : > { %vm6331_vm5 = vcmp.lt.s32.totalorder %v6330_v48, 5 }
 0x412   : > { %v5676_v49 = vpop.f32.mrf.mxu0  ;;  %v5716_v51 = vpop.f32.mrf.mxu1 }
 0x413   : > { %v5677_v50 = vadd.f32 %v5676_v49, %v5637_v43 }
 0x414   : > { %v5678_v52 = vpop.f32.mrf.mxu0  ;;  %v5718_v54 = vpop.f32.mrf.mxu1 }
 0x415   : > { %v5717_v53 = vadd.f32 %v5716_v51, %v5677_v50 }
 0x416   : > { %v5679_v55 = vpop.f32.mrf.mxu0  ;;  %v5719_v56 = vpop.f32.mrf.mxu1 }
 0x418   : > { %v5680_v57 = vpop.f32.mrf.mxu0  ;;  %v5720_v58 = vpop.f32.mrf.mxu1 }
 0x432   : > { %v5756_v59 = vpop.f32.mrf.mxu0  ;;  %v5796_v60 = vpop.f32.mrf.mxu1 }
 0x433   : > { %v5757_v12 = vadd.f32 %v5756_v59, %v5717_v53 }
 0x434   : > { %v5758_v61 = vpop.f32.mrf.mxu0  ;;  %v5798_v62 = vpop.f32.mrf.mxu1 }
 0x435   : > { %v5797_v13 = vadd.f32 %v5796_v60, %v5757_v12 }
 0x436   : > { %v5759_v63 = vpop.f32.mrf.mxu0  ;;  %v5799_v0 = vpop.f32.mrf.mxu1 }
 0x438   : > { %v5760_v1 = vpop.f32.mrf.mxu0  ;;  %v5800_v2 = vpop.f32.mrf.mxu1 }
 0x452   : > { %v5836_v3 = vpop.f32.mrf.mxu0  ;;  %v5876_v4 = vpop.f32.mrf.mxu1 }
 0x453   : > { %v5837_v14 = vadd.f32 %v5836_v3, %v5797_v13 }
 0x454   : > { %v5838_v5 = vpop.f32.mrf.mxu0  ;;  %v7117_v6 = vpop.f32.mrf.mxu1 }
 0x455   : > { %v5877_v15 = vadd.f32 %v5876_v4, %v5837_v14 }
 0x456   : > { %v5839_v7 = vpop.f32.mrf.mxu0  ;;  %v5879_v8 = vpop.f32.mrf.mxu1 }
 0x458   : > { %v5840_v10 = vpop.f32.mrf.mxu0  ;;  %v7118_v11 = vpop.f32.mrf.mxu1 }
 0x472   : > { %v5976_v16 = vpop.f32.mrf.mxu0 }
 0x473   : > { %v5977_v17 = vadd.f32 %v5976_v16, %v5877_v15 }
 0x474   : > { %v7137_v19 = vpop.f32.mrf.mxu0 }
 0x475   : > { %7139 = vmatpush3.msra.mxu1 %v5977_v17 }
 0x476   : > { %7141 = vmatmul.mubr.msk.f32.vlgmr.msra.gmra.mxu1 %vm5981_vm4, %v5980_v18  ;;  %7143 = vmatprep.subr.mxu1 %v7782_v31 }
 0x477   : > { %7144 = vmatpush3.xpose.msk.msra.mxu1 %vm5882_vm3, %v6063_v20  ;;  %7159 = vmatprep.mubr.msk.f32.mxu1 %vm7783_vm2, %v7782_v31 }
 0x478   : > { %7145 = vmatprep.subr.mxu1 %v7782_v31 }
 0x47b   : > { %7146 = vmatpush3.xpose.msk.msra.mxu1 %vm5882_vm3, %v6062_v21 }
 0x47c   : > { %7147 = vmatprep.subr.mxu1 %v7782_v31 }
 0x47f   : > { %7148 = vmatpush3.xpose.msk.msra.mxu1 %vm5882_vm3, %v6061_v22 }
 0x480   : > { %7149 = vmatprep.subr.mxu1 %v7782_v31 }
 0x483   : > { %7150 = vmatpush3.xpose.msk.msra.mxu1 %vm5882_vm3, %v6060_v23 }
 0x484   : > { %7151 = vmatprep.subr.mxu1 %v7782_v31 }
 0x487   : > { %7152 = vmatpush3.xpose.msk.msra.mxu1 %vm5882_vm3, %v6059_v24 }
 0x488   : > { %7153 = vmatprep.subr.mxu1 %v7782_v31 }
 0x48b   : > { %7154 = vmatpush3.xpose.msk.msra.mxu1 %vm5882_vm3, %v6058_v25 }
 0x48c   : > { %7155 = vmatprep.subr.mxu1 %v7782_v31 }
 0x48f   : > { %7156 = vmatpush3.xpose.msk.msra.mxu1 %vm5882_vm3, %v6057_v26 }
 0x490   : > { %7157 = vmatprep.subr.mxu1 %v7782_v31 }
 0x493   : > { %7158 = vmatpush3.xpose.msk.msra.mxu1 %vm5882_vm3, %v6056_v27 }
 0x536   : > { %v6051_v28 = vpop.f32.mrf.mxu1 }
 0x537   : > { %v6055_v29 = vmax.f32 %v6051_v28, 0.0 }
 0x538   : > { %v7142_v30 = vpop.f32.mrf.mxu1 }
 0x539   : > { %7160 = vmatmul.mubr.msk.f32.vlgmr.msra.gmra.mxu1 %vm5882_vm3, %v6055_v29 }
 0x5f9   : > { %v6157_v9 = vpop.f32.mrf.mxu1 }
 0x5fa   : > { %7163 = vmatpush3.msra.mxu0 %v6157_v9 }
 0x5fb   : > { %7165 = vmatmul.mubr.msk.f32.vlgmr.msra.gmra.mxu0 %vm5981_vm4, %v5980_v18  ;;  %v7161_v32 = vpop.f32.mrf.mxu1  ;;  %7167 = vmatprep.subr.mxu0 %v7782_v31 }
 0x5fc   : > { %7171 = vmatprep.mubr.msk.f32.mxu0 %vm7783_vm2, %v7782_v31  ;;  %7168 = vmatpush3.xpose.msk.msra.mxu0 %vm5882_vm3, %v6233_v33 }
 0x5fd   : > { %7169 = vmatprep.subr.mxu0 %v7782_v31 }
 0x600   : > { %7170 = vmatpush3.xpose.msk.msra.mxu0 %vm5882_vm3, %v6232_v34 }
 0x6bb   : > { %v6227_v35 = vpop.f32.mrf.mxu0 }
 0x6bc   : > { %7768 = vtanh.f32 %v6227_v35 }
 0x6bd   : > { %v7166_v36 = vpop.f32.mrf.mxu0 }
 0x6c9   : > { %v7769_v37 = vpop.eup %7768 }
 0x6ca   : > { %7172 = vmatmul.mubr.msk.f32.vlgmr.msra.gmra.mxu0 %vm5882_vm3, %v7769_v37 }
 0x78a   : > { %v6316_v39 = vpop.f32.mrf.mxu0 }
 0x78b   : > { %v6317_v40 = vadd.f32 %v7066_v38, %v6316_v39 }
 0x78c   : > { %v7173_v41 = vpop.f32.mrf.mxu0 }
 0x78d   : > { %v6321_v42 = vand.u32 2147483647, %v6317_v40  ;;  %v6320_v49 = vmax.f32 %v6317_v40, 0.0 }
 0x78f   : > { %v6322_v31 = vsub.f32 0.0, %v6321_v42 }
 0x791   : > { %v6323_v43 = vmul.f32 1.442695, %v6322_v31 }
 0x793   : > { %7770 = vpow2.f32 %v6323_v43 }
 0x7a0   : > { %v7771_v44 = vpop.eup %7770 }
 0x7a1   : > { %v6325_v45 = vadd.f32 1.0, %v7771_v44 }
 0x7a3   : > { %7772 = vlog2.f32 %v6325_v45 }
 0x7b0   : > { %v7773_v47 = vpop.eup %7772 }
 0x7b1   : > { %v6327_v50 = vmul.f32 0.6931472, %v7773_v47 }
 0x7b3   : > { %v6328_v51 = vadd.f32 %v6327_v50, %v6320_v49 }
 0x7b5   : > { %v6332_v52 = vadd.f32 1e-06, %v6328_v51 }
 0x7b7   : > { %v6333_v53 = vsel %vm6331_vm5, %v6317_v40, %v6332_v52 }
 0x7b8   : > { %6335 = vst.msk [vmem:[%s485_s25] sm:$0xff] %vm6334_vm6, %v6333_v53 }
 0x7b9 PF: > { %s20_s13 = sadd.s32 1, %s7780_s13  }
 0x7ba   : > { %p17_p4 = scmp.ge.s32.totalorder %s20_s13, 4  }
 0x7bc   :  { %19 = sbr.rel (!%p17_p4) target bundleno = 1 (0x1), region = 111 }

</bundles_post_ra>
